<compile_context>
chip_gen: v6e
topology: v6e:2x2x1
jax: 0.10.0
libtpu: 0.0.40
codegen_flags: <defaults>
</compile_context>

<pallas_src>
import functools
import math

import jax
import jax.numpy as jnp
from jax.experimental import pallas as pl
from jax.experimental.pallas import tpu as pltpu

# ----------------------- small synthetic model config -----------------------
CONV_LAYERS = [(32, 10, 5), (32, 3, 2), (32, 2, 2)]   # (out_ch, kernel, stride)
EXTRACTOR_DIM = CONV_LAYERS[-1][0]                    # 32
ENC_DIM = 64
NUM_HEADS = 4
HEAD_DIM = ENC_DIM // NUM_HEADS
FFN_DIM = 128
NUM_LAYERS = 2
POS_CONV_KERNEL = 3
POS_CONV_GROUPS = 4
NUM_LABELS = 10
AUX_PAD = 128                                         # lane-dense padded label dim
LN_EPS = 1e-5
DTYPE = jnp.float32
MXU_DTYPE = jnp.bfloat16                              # MXU operand dtype (f32 accum)


# ----------------------------- in-kernel helpers -----------------------------
def _gelu(x):
    c = math.sqrt(2.0 / math.pi)
    return 0.5 * x * (1.0 + jnp.tanh(c * (x + 0.044715 * x * x * x)))


def _mdot(a, b):
    """MXU matmul: bf16 operands (weights already bf16), f32 accumulation."""
    return jnp.dot(a.astype(MXU_DTYPE), b.astype(MXU_DTYPE),
                   preferred_element_type=jnp.float32)


def _layernorm(x, g, b, eps=LN_EPS):
    mu = jnp.mean(x, axis=-1, keepdims=True)
    var = jnp.mean(jnp.square(x - mu), axis=-1, keepdims=True)
    return (x - mu) * jax.lax.rsqrt(var + eps) * g + b


def _conv_stage(x, w, k, s):
    """Bias-free Conv1d(kernel=k, stride=s) + GELU on a (T, C) value.

    Realized as a stride-1 conv (k static shifts, tap-major patch concat)
    followed by a 0/1 row-selection matmul for the stride (no reshapes /
    strided loads needed).  Rows selected by the matmul only ever touch
    in-range shift data, so the zero padding never contaminates the output.
    """
    t_in, c = x.shape
    t_out = (t_in - k) // s + 1
    taps = [x]
    for j in range(1, k):
        taps.append(jnp.concatenate(
            [x[j:, :], jnp.zeros((j, c), jnp.float32)], axis=0))
    patches = jnp.concatenate(taps, axis=-1)              # (t_in, k*c)
    y_full = _mdot(patches, w)                             # stride-1 conv output
    if s > 1:
        rows = jax.lax.broadcasted_iota(jnp.int32, (t_out, t_in), 0)
        cols = jax.lax.broadcasted_iota(jnp.int32, (t_out, t_in), 1)
        sel = (cols == s * rows).astype(jnp.float32)       # exact 0/1 selection
        y = jnp.dot(sel, y_full, preferred_element_type=jnp.float32)
    else:
        y = y_full[:t_out]
    return _gelu(y), t_out


# ============================ fused Pallas kernel ============================
def _w2v2_kernel(wav_ref,
                 c0w_ref, gng_ref, gnb_ref, c1w_ref, c2w_ref,
                 fplng_ref, fplnb_ref, fpw_ref, fpb_ref,
                 posw_ref, posb_ref,
                 wqkv_ref, bqkv_ref, wo_ref, bo_ref, ln1g_ref, ln1b_ref,
                 ffw1_ref, ffb1_ref, ffw2_ref, ffb2_ref, ln2g_ref, ln2b_ref,
                 trg_ref, trb_ref, auxw_ref, auxb_ref,
                 out_ref, *, samples):
    """Entire wav2vec2 forward for one batch element (grid over batch)."""
    # ---------------- feature extractor: 3 fused conv blocks -----------------
    _c0, k0, s0 = CONV_LAYERS[0]
    wav = wav_ref[0].astype(jnp.float32)                   # (samples//s0, s0)
    m0 = k0 // s0                                          # taps per stride row
    t = (samples - k0) // s0 + 1
    # stride-s0 im2col directly from the (rows, s0) view: row r = wav[s0*r : s0*r+s0]
    p0 = jnp.concatenate([wav[i:i + t, :] for i in range(m0)], axis=-1)  # (t, k0)
    y = _mdot(p0, c0w_ref[...])                            # (t, C)
    # GroupNorm(num_groups=C): per-channel normalization over time
    mu = jnp.mean(y, axis=0, keepdims=True)
    var = jnp.mean(jnp.square(y - mu), axis=0, keepdims=True)
    y = (y - mu) * jax.lax.rsqrt(var + LN_EPS) * gng_ref[...] + gnb_ref[...]
    x = _gelu(y)                                           # (t, 32)

    for w_ref, (_c, k, s) in zip((c1w_ref, c2w_ref), CONV_LAYERS[1:]):
        x, t = _conv_stage(x, w_ref[...], k, s)
    # x: (frames, EXTRACTOR_DIM)

    # ------------- feature projection + grouped positional conv --------------
    y = _layernorm(x, fplng_ref[...], fplnb_ref[...])
    h = _mdot(y, fpw_ref[...]) + fpb_ref[...]              # (frames, D) f32
    f, d = h.shape
    pad = (POS_CONV_KERNEL - 1) // 2
    wins = []
    for tap in range(POS_CONV_KERNEL):                     # static tap loop
        off = tap - pad
        if off < 0:
            win = jnp.concatenate(
                [jnp.zeros((-off, d), jnp.float32), h[:f + off, :]], axis=0)
        elif off > 0:
            win = jnp.concatenate(
                [h[off:, :], jnp.zeros((off, d), jnp.float32)], axis=0)
        else:
            win = h
        wins.append(win)
    pp = jnp.concatenate(wins, axis=-1)                    # (frames, K*D)
    pos = _gelu(_mdot(pp, posw_ref[...]) + posb_ref[...])  # block-diag dense conv
    x = h + pos                                            # residual (Transformer._preprocess)

    # ------------------- transformer encoder layers (post-LN) ----------------
    scale = HEAD_DIM ** -0.5
    for l in range(NUM_LAYERS):                            # static layer loop
        wqkv = wqkv_ref[l]
        wo_l = wo_ref[l]
        residual = x
        qkv = _mdot(x, wqkv) + bqkv_ref[l]                 # (F, 3D)
        attn = jnp.zeros((f, d), jnp.float32)
        for hh in range(NUM_HEADS):                        # static head loop
            lo = hh * HEAD_DIM
            q = qkv[:, lo:lo + HEAD_DIM] * scale
            kmat = qkv[:, d + lo:d + lo + HEAD_DIM]
            v = qkv[:, 2 * d + lo:2 * d + lo + HEAD_DIM]
            sc = _mdot(q, kmat.T)                          # (F, F)
            sc = sc - jnp.max(sc, axis=-1, keepdims=True)
            p = jnp.exp(sc)
            # approx reciprocal (EUP); use exact divide if bit parity is needed
            p = p * pl.reciprocal(jnp.sum(p, axis=-1, keepdims=True), approx=True)
            oh = _mdot(p, v)                               # (F, head_dim)
            # fold head-concat into the output projection (no cross-lane concat)
            attn = attn + _mdot(oh, wo_l[lo:lo + HEAD_DIM, :])
        attn = attn + bo_ref[l]
        x = _layernorm(residual + attn, ln1g_ref[l], ln1b_ref[l])
        ff = _gelu(_mdot(x, ffw1_ref[l]) + ffb1_ref[l])
        ff = _mdot(ff, ffw2_ref[l]) + ffb2_ref[l]
        x = _layernorm(x + ff, ln2g_ref[l], ln2b_ref[l])

    # ---------------- final LayerNorm + aux projection (padded) --------------
    y = _layernorm(x, trg_ref[...], trb_ref[...])
    out = _mdot(y, auxw_ref[...]) + auxb_ref[...]          # (frames, 128) lane-dense
    out_ref[0] = out.astype(out_ref.dtype)


# ============================ wrapper / pallas_call ==========================
def _const_index_map(ndim):
    zeros = (0,) * ndim

    def idx(b):
        return zeros

    return idx


def _num_frames(samples):
    t = samples
    for _c, k, s in CONV_LAYERS:
        t = (t - k) // s + 1
    return t


def _cost_estimate(batch, samples, bytes_accessed):
    flops, trans = 0, 0
    t, c_in = samples, 1
    for c_out, k, s in CONV_LAYERS:
        t_out = (t - k) // s + 1
        flops += 2 * t * (k * c_in) * c_out
        if s > 1:
            flops += 2 * t_out * t * c_out                  # downsample matmul
        trans += t_out * c_out                              # GELU
        t, c_in = t_out, c_out
    f, d = t, ENC_DIM
    flops += 2 * f * c_in * d                               # feature projection
    flops += 2 * f * (POS_CONV_KERNEL * d) * d              # positional conv
    trans += f * d
    per_layer = (2 * f * d * 3 * d                          # QKV proj
                 + 2 * NUM_HEADS * f * f * HEAD_DIM * 2     # QK^T + PV
                 + 2 * f * d * d                            # output proj
                 + 2 * 2 * f * d * FFN_DIM)                 # FFN
    flops += NUM_LAYERS * per_layer
    trans += NUM_LAYERS * (NUM_HEADS * f * f + f * FFN_DIM)
    flops += 2 * f * d * AUX_PAD                            # aux projection
    return pl.CostEstimate(flops=int(batch * flops),
                           transcendentals=int(batch * trans),
                           bytes_accessed=int(bytes_accessed))


def wav2vec2_forward(params, waveforms, lengths=None):
    assert lengths is None  # TODO(synk): lengths / attention-mask path not implemented

    B, samples = waveforms.shape
    _c0, k0, s0 = CONV_LAYERS[0]
    assert samples % s0 == 0 and k0 % s0 == 0
    # free contiguous reshape: lane-dense waveform, no XLA-side im2col / gather
    wav = waveforms.astype(DTYPE).reshape(B, samples // s0, s0)
    frames = _num_frames(samples)

    weight_args = (
        params["conv0_w"], params["conv0_gn_g"], params["conv0_gn_b"],
        params["conv1_w"], params["conv2_w"],
        params["fp_ln_g"], params["fp_ln_b"], params["fp_w"], params["fp_b"],
        params["pos_w"], params["pos_b"],
        params["w_qkv"], params["b_qkv"], params["wo"], params["bo"],
        params["ln_g"], params["ln_b"],
        params["ff_w1"], params["ff_b1"], params["ff_w2"], params["ff_b2"],
        params["fln_g"], params["fln_b"],
        params["tr_ln_g"], params["tr_ln_b"],
        params["aux_w"], params["aux_b"])

    in_specs = [pl.BlockSpec((1, wav.shape[1], wav.shape[2]), lambda b: (b, 0, 0))]
    in_specs += [pl.BlockSpec(a.shape, _const_index_map(a.ndim)) for a in weight_args]

    weight_bytes = sum(int(a.size) * a.dtype.itemsize for a in weight_args)
    cost = _cost_estimate(
        B, samples,
        int(wav.size) * 4 + weight_bytes + B * frames * AUX_PAD * 4)

    kernel = functools.partial(_w2v2_kernel, samples=samples)

    out = pl.pallas_call(
        kernel,
        out_shape=jax.ShapeDtypeStruct((B, frames, AUX_PAD), DTYPE),
        grid=(B,),
        in_specs=in_specs,
        out_specs=pl.BlockSpec((1, frames, AUX_PAD), lambda b: (b, 0, 0)),
        compiler_params=pltpu.CompilerParams(
            dimension_semantics=("parallel",)),          # batch axis -> v7x's 2 TCs
        cost_estimate=cost,
    )(wav, *weight_args)

    logits = out[..., :NUM_LABELS]
    return logits, lengths


# ============================ parameters =====================================
def init_params(key):
    keys = iter(jax.random.split(key, 64))

    def nrm(shape, scale=0.05, dtype=DTYPE):
        return (scale * jax.random.normal(next(keys), shape,
                                          dtype=jnp.float32)).astype(dtype)

    p = {}
    # conv weights flattened im2col-style, rows = (tap, c_in)-major, bf16
    c_in = 1
    for i, (c_out, k, _s) in enumerate(CONV_LAYERS):
        p[f"conv{i}_w"] = nrm((k * c_in, c_out), dtype=MXU_DTYPE)
        c_in = c_out
    p["conv0_gn_g"] = jnp.ones((1, CONV_LAYERS[0][0]), DTYPE)
    p["conv0_gn_b"] = jnp.zeros((1, CONV_LAYERS[0][0]), DTYPE)

    p["fp_ln_g"] = jnp.ones((1, EXTRACTOR_DIM), DTYPE)
    p["fp_ln_b"] = jnp.zeros((1, EXTRACTOR_DIM), DTYPE)
    p["fp_w"] = nrm((EXTRACTOR_DIM, ENC_DIM), dtype=MXU_DTYPE)
    p["fp_b"] = nrm((1, ENC_DIM), 0.01)

    # grouped positional conv -> block-diagonal dense weight (K*D, D), bf16
    cg = ENC_DIM // POS_CONV_GROUPS
    pos_w_g = 0.05 * jax.random.normal(
        next(keys), (POS_CONV_GROUPS, POS_CONV_KERNEL, cg, cg), dtype=jnp.float32)
    dense = jnp.zeros((POS_CONV_KERNEL, ENC_DIM, ENC_DIM), jnp.float32)
    for g in range(POS_CONV_GROUPS):
        dense = dense.at[:, g * cg:(g + 1) * cg, g * cg:(g + 1) * cg].set(pos_w_g[g])
    p["pos_w"] = dense.reshape(POS_CONV_KERNEL * ENC_DIM, ENC_DIM).astype(MXU_DTYPE)
    p["pos_b"] = nrm((1, ENC_DIM), 0.01)

    # encoder layers: stacked with a leading layer dim (static loop in-kernel)
    L = NUM_LAYERS
    p["w_qkv"] = nrm((L, ENC_DIM, 3 * ENC_DIM), dtype=MXU_DTYPE)
    p["b_qkv"] = nrm((L, 1, 3 * ENC_DIM), 0.01)
    p["wo"] = nrm((L, ENC_DIM, ENC_DIM), dtype=MXU_DTYPE)
    p["bo"] = nrm((L, 1, ENC_DIM), 0.01)
    p["ln_g"] = jnp.ones((L, 1, ENC_DIM), DTYPE)
    p["ln_b"] = jnp.zeros((L, 1, ENC_DIM), DTYPE)
    p["ff_w1"] = nrm((L, ENC_DIM, FFN_DIM), dtype=MXU_DTYPE)
    p["ff_b1"] = nrm((L, 1, FFN_DIM), 0.01)
    p["ff_w2"] = nrm((L, FFN_DIM, ENC_DIM), dtype=MXU_DTYPE)
    p["ff_b2"] = nrm((L, 1, ENC_DIM), 0.01)
    p["fln_g"] = jnp.ones((L, 1, ENC_DIM), DTYPE)
    p["fln_b"] = jnp.zeros((L, 1, ENC_DIM), DTYPE)

    p["tr_ln_g"] = jnp.ones((1, ENC_DIM), DTYPE)
    p["tr_ln_b"] = jnp.zeros((1, ENC_DIM), DTYPE)

    # aux projection padded to a lane-dense 128-wide output slab
    aux_w = nrm((ENC_DIM, NUM_LABELS))
    aux_b = nrm((1, NUM_LABELS), 0.01)
    p["aux_w"] = (jnp.zeros((ENC_DIM, AUX_PAD), jnp.float32)
                  .at[:, :NUM_LABELS].set(aux_w).astype(MXU_DTYPE))
    p["aux_b"] = jnp.zeros((1, AUX_PAD), DTYPE).at[:, :NUM_LABELS].set(aux_b)
    return p


# ============================ driver =========================================
if __name__ == "__main__":
    key = jax.random.PRNGKey(0)
    pkey, wkey = jax.random.split(key)
    params = init_params(pkey)

    batch, n_samples = 2, 400                              # 400 samples -> 19 frames
    waveforms = jax.random.normal(wkey, (batch, n_samples), dtype=DTYPE)

    fwd = jax.jit(wav2vec2_forward)
    logits, out_lengths = fwd(params, waveforms)
    logits = jax.block_until_ready(logits)

    expected_frames = n_samples
    for _c, k, s in CONV_LAYERS:
        expected_frames = (expected_frames - k) // s + 1
    assert logits.shape == (batch, expected_frames, NUM_LABELS), logits.shape
    assert out_lengths is None
    assert bool(jnp.all(jnp.isfinite(logits)))
    print("KERNEL_OK")
</pallas_src>

<mosaic_0001>
module attributes {stable_mosaic.version = 11 : i64} {
  func.func @_w2v2_kernel(%arg0: i32, %arg1: memref<1x80x5xf32, #tpu.memory_space<vmem>>, %arg2: memref<10x32xbf16, #tpu.memory_space<vmem>>, %arg3: memref<1x32xf32, #tpu.memory_space<vmem>>, %arg4: memref<1x32xf32, #tpu.memory_space<vmem>>, %arg5: memref<96x32xbf16, #tpu.memory_space<vmem>>, %arg6: memref<64x32xbf16, #tpu.memory_space<vmem>>, %arg7: memref<1x32xf32, #tpu.memory_space<vmem>>, %arg8: memref<1x32xf32, #tpu.memory_space<vmem>>, %arg9: memref<32x64xbf16, #tpu.memory_space<vmem>>, %arg10: memref<1x64xf32, #tpu.memory_space<vmem>>, %arg11: memref<192x64xbf16, #tpu.memory_space<vmem>>, %arg12: memref<1x64xf32, #tpu.memory_space<vmem>>, %arg13: memref<2x64x192xbf16, #tpu.memory_space<vmem>>, %arg14: memref<2x1x192xf32, #tpu.memory_space<vmem>>, %arg15: memref<2x64x64xbf16, #tpu.memory_space<vmem>>, %arg16: memref<2x1x64xf32, #tpu.memory_space<vmem>>, %arg17: memref<2x1x64xf32, #tpu.memory_space<vmem>>, %arg18: memref<2x1x64xf32, #tpu.memory_space<vmem>>, %arg19: memref<2x64x128xbf16, #tpu.memory_space<vmem>>, %arg20: memref<2x1x128xf32, #tpu.memory_space<vmem>>, %arg21: memref<2x128x64xbf16, #tpu.memory_space<vmem>>, %arg22: memref<2x1x64xf32, #tpu.memory_space<vmem>>, %arg23: memref<2x1x64xf32, #tpu.memory_space<vmem>>, %arg24: memref<2x1x64xf32, #tpu.memory_space<vmem>>, %arg25: memref<1x64xf32, #tpu.memory_space<vmem>>, %arg26: memref<1x64xf32, #tpu.memory_space<vmem>>, %arg27: memref<64x128xbf16, #tpu.memory_space<vmem>>, %arg28: memref<1x128xf32, #tpu.memory_space<vmem>>, %arg29: memref<1x19x128xf32, #tpu.memory_space<vmem>>) attributes {dimension_semantics = [#tpu.dimension_semantics<parallel>], iteration_bounds = array<i64: 2>, scalar_prefetch = 0 : i64, scratch_operands = 0 : i64, tpu.core_type = #tpu.core_type<tc>, window_params = [{transform_indices = @transform_0, window_bounds = array<i64: 1, 80, 5>}, {pipeline_mode = #tpu.pipeline_mode<synchronous>, transform_indices = @transform_1, window_bounds = array<i64: 10, 32>}, {pipeline_mode = #tpu.pipeline_mode<synchronous>, transform_indices = @transform_2, window_bounds = array<i64: 1, 32>}, {pipeline_mode = #tpu.pipeline_mode<synchronous>, transform_indices = @transform_3, window_bounds = array<i64: 1, 32>}, {pipeline_mode = #tpu.pipeline_mode<synchronous>, transform_indices = @transform_4, window_bounds = array<i64: 96, 32>}, {pipeline_mode = #tpu.pipeline_mode<synchronous>, transform_indices = @transform_5, window_bounds = array<i64: 64, 32>}, {pipeline_mode = #tpu.pipeline_mode<synchronous>, transform_indices = @transform_6, window_bounds = array<i64: 1, 32>}, {pipeline_mode = #tpu.pipeline_mode<synchronous>, transform_indices = @transform_7, window_bounds = array<i64: 1, 32>}, {pipeline_mode = #tpu.pipeline_mode<synchronous>, transform_indices = @transform_8, window_bounds = array<i64: 32, 64>}, {pipeline_mode = #tpu.pipeline_mode<synchronous>, transform_indices = @transform_9, window_bounds = array<i64: 1, 64>}, {pipeline_mode = #tpu.pipeline_mode<synchronous>, transform_indices = @transform_10, window_bounds = array<i64: 192, 64>}, {pipeline_mode = #tpu.pipeline_mode<synchronous>, transform_indices = @transform_11, window_bounds = array<i64: 1, 64>}, {pipeline_mode = #tpu.pipeline_mode<synchronous>, transform_indices = @transform_12, window_bounds = array<i64: 2, 64, 192>}, {pipeline_mode = #tpu.pipeline_mode<synchronous>, transform_indices = @transform_13, window_bounds = array<i64: 2, 1, 192>}, {pipeline_mode = #tpu.pipeline_mode<synchronous>, transform_indices = @transform_14, window_bounds = array<i64: 2, 64, 64>}, {pipeline_mode = #tpu.pipeline_mode<synchronous>, transform_indices = @transform_15, window_bounds = array<i64: 2, 1, 64>}, {pipeline_mode = #tpu.pipeline_mode<synchronous>, transform_indices = @transform_16, window_bounds = array<i64: 2, 1, 64>}, {pipeline_mode = #tpu.pipeline_mode<synchronous>, transform_indices = @transform_17, window_bounds = array<i64: 2, 1, 64>}, {pipeline_mode = #tpu.pipeline_mode<synchronous>, transform_indices = @transform_18, window_bounds = array<i64: 2, 64, 128>}, {pipeline_mode = #tpu.pipeline_mode<synchronous>, transform_indices = @transform_19, window_bounds = array<i64: 2, 1, 128>}, {pipeline_mode = #tpu.pipeline_mode<synchronous>, transform_indices = @transform_20, window_bounds = array<i64: 2, 128, 64>}, {pipeline_mode = #tpu.pipeline_mode<synchronous>, transform_indices = @transform_21, window_bounds = array<i64: 2, 1, 64>}, {pipeline_mode = #tpu.pipeline_mode<synchronous>, transform_indices = @transform_22, window_bounds = array<i64: 2, 1, 64>}, {pipeline_mode = #tpu.pipeline_mode<synchronous>, transform_indices = @transform_23, window_bounds = array<i64: 2, 1, 64>}, {pipeline_mode = #tpu.pipeline_mode<synchronous>, transform_indices = @transform_24, window_bounds = array<i64: 1, 64>}, {pipeline_mode = #tpu.pipeline_mode<synchronous>, transform_indices = @transform_25, window_bounds = array<i64: 1, 64>}, {pipeline_mode = #tpu.pipeline_mode<synchronous>, transform_indices = @transform_26, window_bounds = array<i64: 64, 128>}, {pipeline_mode = #tpu.pipeline_mode<synchronous>, transform_indices = @transform_27, window_bounds = array<i64: 1, 128>}, {transform_indices = @transform_28, window_bounds = array<i64: 1, 19, 128>}]} {
    %c0 = arith.constant 0 : index
    %c0_0 = arith.constant 0 : index
    %c0_1 = arith.constant 0 : index
    %0 = vector.load %arg1[%c0, %c0_0, %c0_1] : memref<1x80x5xf32, #tpu.memory_space<vmem>>, vector<1x80x5xf32>
    %1 = vector.shape_cast %0 : vector<1x80x5xf32> to vector<80x5xf32>
    %2 = vector.extract_strided_slice %1 {offsets = [0, 0], sizes = [79, 5], strides = [1, 1]} : vector<80x5xf32> to vector<79x5xf32>
    %3 = vector.extract_strided_slice %1 {offsets = [1, 0], sizes = [79, 5], strides = [1, 1]} : vector<80x5xf32> to vector<79x5xf32>
    %4 = tpu.concatenate %2, %3 in 1 : vector<79x5xf32>, vector<79x5xf32> -> vector<79x10xf32>
    %c0_2 = arith.constant 0 : index
    %c0_3 = arith.constant 0 : index
    %5 = vector.load %arg2[%c0_2, %c0_3] : memref<10x32xbf16, #tpu.memory_space<vmem>>, vector<10x32xbf16>
    %6 = arith.truncf %4 : vector<79x10xf32> to vector<79x10xbf16>
    %cst = arith.constant dense<0.000000e+00> : vector<79x32xf32>
    %7 = tpu.matmul %6, %5, %cst {dimension_numbers = #tpu.dot_dimension_numbers<[1], [0], [0], [1], [0, 0, 1, 1], [], []>} : vector<79x10xbf16>, vector<10x32xbf16>, vector<79x32xf32> -> vector<79x32xf32>
    %cst_4 = arith.constant dense<0.000000e+00> : vector<32xf32>
    %8 = vector.multi_reduction <add>, %7, %cst_4 [0] : vector<79x32xf32> to vector<32xf32>
    %9 = vector.shape_cast %8 : vector<32xf32> to vector<1x32xf32>
    %cst_5 = arith.constant 7.900000e+01 : f32
    %10 = vector.broadcast %cst_5 : f32 to vector<1x32xf32>
    %11 = arith.divf %9, %10 : vector<1x32xf32>
    %12 = vector.broadcast %11 : vector<1x32xf32> to vector<79x32xf32>
    %13 = arith.subf %7, %12 : vector<79x32xf32>
    %14 = arith.mulf %13, %13 : vector<79x32xf32>
    %cst_6 = arith.constant dense<0.000000e+00> : vector<32xf32>
    %15 = vector.multi_reduction <add>, %14, %cst_6 [0] : vector<79x32xf32> to vector<32xf32>
    %16 = vector.shape_cast %15 : vector<32xf32> to vector<1x32xf32>
    %cst_7 = arith.constant 7.900000e+01 : f32
    %17 = vector.broadcast %cst_7 : f32 to vector<1x32xf32>
    %18 = arith.divf %16, %17 : vector<1x32xf32>
    %19 = vector.broadcast %11 : vector<1x32xf32> to vector<79x32xf32>
    %20 = arith.subf %7, %19 : vector<79x32xf32>
    %cst_8 = arith.constant 9.99999974E-6 : f32
    %21 = vector.broadcast %cst_8 : f32 to vector<1x32xf32>
    %22 = arith.addf %18, %21 : vector<1x32xf32>
    %23 = math.rsqrt %22 : vector<1x32xf32>
    %24 = vector.broadcast %23 : vector<1x32xf32> to vector<79x32xf32>
    %25 = arith.mulf %20, %24 : vector<79x32xf32>
    %c0_9 = arith.constant 0 : index
    %c0_10 = arith.constant 0 : index
    %26 = vector.load %arg3[%c0_9, %c0_10] : memref<1x32xf32, #tpu.memory_space<vmem>>, vector<1x32xf32>
    %27 = vector.broadcast %26 : vector<1x32xf32> to vector<79x32xf32>
    %28 = arith.mulf %25, %27 : vector<79x32xf32>
    %c0_11 = arith.constant 0 : index
    %c0_12 = arith.constant 0 : index
    %29 = vector.load %arg4[%c0_11, %c0_12] : memref<1x32xf32, #tpu.memory_space<vmem>>, vector<1x32xf32>
    %30 = vector.broadcast %29 : vector<1x32xf32> to vector<79x32xf32>
    %31 = arith.addf %28, %30 : vector<79x32xf32>
    %cst_13 = arith.constant 5.000000e-01 : f32
    %32 = vector.broadcast %cst_13 : f32 to vector<79x32xf32>
    %33 = arith.mulf %32, %31 : vector<79x32xf32>
    %cst_14 = arith.constant 4.471500e-02 : f32
    %34 = vector.broadcast %cst_14 : f32 to vector<79x32xf32>
    %35 = arith.mulf %34, %31 : vector<79x32xf32>
    %36 = arith.mulf %35, %31 : vector<79x32xf32>
    %37 = arith.mulf %36, %31 : vector<79x32xf32>
    %38 = arith.addf %31, %37 : vector<79x32xf32>
    %cst_15 = arith.constant 0.797884583 : f32
    %39 = vector.broadcast %cst_15 : f32 to vector<79x32xf32>
    %40 = arith.mulf %39, %38 : vector<79x32xf32>
    %41 = math.tanh %40 : vector<79x32xf32>
    %cst_16 = arith.constant 1.000000e+00 : f32
    %42 = vector.broadcast %cst_16 : f32 to vector<79x32xf32>
    %43 = arith.addf %42, %41 : vector<79x32xf32>
    %44 = arith.mulf %33, %43 : vector<79x32xf32>
    %c0_17 = arith.constant 0 : index
    %c0_18 = arith.constant 0 : index
    %45 = vector.load %arg5[%c0_17, %c0_18] : memref<96x32xbf16, #tpu.memory_space<vmem>>, vector<96x32xbf16>
    %46 = vector.extract_strided_slice %44 {offsets = [1, 0], sizes = [78, 32], strides = [1, 1]} : vector<79x32xf32> to vector<78x32xf32>
    %cst_19 = arith.constant 0.000000e+00 : f32
    %47 = vector.broadcast %cst_19 : f32 to vector<1x32xf32>
    %48 = tpu.concatenate %46, %47 in 0 : vector<78x32xf32>, vector<1x32xf32> -> vector<79x32xf32>
    %49 = vector.extract_strided_slice %44 {offsets = [2, 0], sizes = [77, 32], strides = [1, 1]} : vector<79x32xf32> to vector<77x32xf32>
    %cst_20 = arith.constant 0.000000e+00 : f32
    %50 = vector.broadcast %cst_20 : f32 to vector<2x32xf32>
    %51 = tpu.concatenate %49, %50 in 0 : vector<77x32xf32>, vector<2x32xf32> -> vector<79x32xf32>
    %52 = tpu.concatenate %44, %48, %51 in 1 : vector<79x32xf32>, vector<79x32xf32>, vector<79x32xf32> -> vector<79x96xf32>
    %53 = arith.truncf %52 : vector<79x96xf32> to vector<79x96xbf16>
    %cst_21 = arith.constant dense<0.000000e+00> : vector<79x32xf32>
    %54 = tpu.matmul %53, %45, %cst_21 {dimension_numbers = #tpu.dot_dimension_numbers<[1], [0], [0], [1], [0, 0, 1, 1], [], []>} : vector<79x96xbf16>, vector<96x32xbf16>, vector<79x32xf32> -> vector<79x32xf32>
    %55 = tpu.iota {dimensions = array<i32: 0>} : vector<39x79xi32>
    %56 = tpu.iota {dimensions = array<i32: 1>} : vector<39x79xi32>
    %c2_i32 = arith.constant 2 : i32
    %57 = vector.broadcast %c2_i32 : i32 to vector<39x79xi32>
    %58 = arith.muli %57, %55 : vector<39x79xi32>
    %59 = arith.cmpi eq, %56, %58 : vector<39x79xi32>
    %60 = arith.extui %59 : vector<39x79xi1> to vector<39x79xi32>
    %61 = arith.sitofp %60 : vector<39x79xi32> to vector<39x79xf32>
    %cst_22 = arith.constant dense<0.000000e+00> : vector<39x32xf32>
    %62 = tpu.matmul %61, %54, %cst_22 {dimension_numbers = #tpu.dot_dimension_numbers<[1], [0], [0], [1], [0, 0, 1, 1], [], []>} : vector<39x79xf32>, vector<79x32xf32>, vector<39x32xf32> -> vector<39x32xf32>
    %cst_23 = arith.constant 5.000000e-01 : f32
    %63 = vector.broadcast %cst_23 : f32 to vector<39x32xf32>
    %64 = arith.mulf %63, %62 : vector<39x32xf32>
    %cst_24 = arith.constant 4.471500e-02 : f32
    %65 = vector.broadcast %cst_24 : f32 to vector<39x32xf32>
    %66 = arith.mulf %65, %62 : vector<39x32xf32>
    %67 = arith.mulf %66, %62 : vector<39x32xf32>
    %68 = arith.mulf %67, %62 : vector<39x32xf32>
    %69 = arith.addf %62, %68 : vector<39x32xf32>
    %cst_25 = arith.constant 0.797884583 : f32
    %70 = vector.broadcast %cst_25 : f32 to vector<39x32xf32>
    %71 = arith.mulf %70, %69 : vector<39x32xf32>
    %72 = math.tanh %71 : vector<39x32xf32>
    %cst_26 = arith.constant 1.000000e+00 : f32
    %73 = vector.broadcast %cst_26 : f32 to vector<39x32xf32>
    %74 = arith.addf %73, %72 : vector<39x32xf32>
    %75 = arith.mulf %64, %74 : vector<39x32xf32>
    %c0_27 = arith.constant 0 : index
    %c0_28 = arith.constant 0 : index
    %76 = vector.load %arg6[%c0_27, %c0_28] : memref<64x32xbf16, #tpu.memory_space<vmem>>, vector<64x32xbf16>
    %77 = vector.extract_strided_slice %75 {offsets = [1, 0], sizes = [38, 32], strides = [1, 1]} : vector<39x32xf32> to vector<38x32xf32>
    %cst_29 = arith.constant 0.000000e+00 : f32
    %78 = vector.broadcast %cst_29 : f32 to vector<1x32xf32>
    %79 = tpu.concatenate %77, %78 in 0 : vector<38x32xf32>, vector<1x32xf32> -> vector<39x32xf32>
    %80 = tpu.concatenate %75, %79 in 1 : vector<39x32xf32>, vector<39x32xf32> -> vector<39x64xf32>
    %81 = arith.truncf %80 : vector<39x64xf32> to vector<39x64xbf16>
    %cst_30 = arith.constant dense<0.000000e+00> : vector<39x32xf32>
    %82 = tpu.matmul %81, %76, %cst_30 {dimension_numbers = #tpu.dot_dimension_numbers<[1], [0], [0], [1], [0, 0, 1, 1], [], []>} : vector<39x64xbf16>, vector<64x32xbf16>, vector<39x32xf32> -> vector<39x32xf32>
    %83 = tpu.iota {dimensions = array<i32: 0>} : vector<19x39xi32>
    %84 = tpu.iota {dimensions = array<i32: 1>} : vector<19x39xi32>
    %c2_i32_31 = arith.constant 2 : i32
    %85 = vector.broadcast %c2_i32_31 : i32 to vector<19x39xi32>
    %86 = arith.muli %85, %83 : vector<19x39xi32>
    %87 = arith.cmpi eq, %84, %86 : vector<19x39xi32>
    %88 = arith.extui %87 : vector<19x39xi1> to vector<19x39xi32>
    %89 = arith.sitofp %88 : vector<19x39xi32> to vector<19x39xf32>
    %cst_32 = arith.constant dense<0.000000e+00> : vector<19x32xf32>
    %90 = tpu.matmul %89, %82, %cst_32 {dimension_numbers = #tpu.dot_dimension_numbers<[1], [0], [0], [1], [0, 0, 1, 1], [], []>} : vector<19x39xf32>, vector<39x32xf32>, vector<19x32xf32> -> vector<19x32xf32>
    %cst_33 = arith.constant 5.000000e-01 : f32
    %91 = vector.broadcast %cst_33 : f32 to vector<19x32xf32>
    %92 = arith.mulf %91, %90 : vector<19x32xf32>
    %cst_34 = arith.constant 4.471500e-02 : f32
    %93 = vector.broadcast %cst_34 : f32 to vector<19x32xf32>
    %94 = arith.mulf %93, %90 : vector<19x32xf32>
    %95 = arith.mulf %94, %90 : vector<19x32xf32>
    %96 = arith.mulf %95, %90 : vector<19x32xf32>
    %97 = arith.addf %90, %96 : vector<19x32xf32>
    %cst_35 = arith.constant 0.797884583 : f32
    %98 = vector.broadcast %cst_35 : f32 to vector<19x32xf32>
    %99 = arith.mulf %98, %97 : vector<19x32xf32>
    %100 = math.tanh %99 : vector<19x32xf32>
    %cst_36 = arith.constant 1.000000e+00 : f32
    %101 = vector.broadcast %cst_36 : f32 to vector<19x32xf32>
    %102 = arith.addf %101, %100 : vector<19x32xf32>
    %103 = arith.mulf %92, %102 : vector<19x32xf32>
    %c0_37 = arith.constant 0 : index
    %c0_38 = arith.constant 0 : index
    %104 = vector.load %arg7[%c0_37, %c0_38] : memref<1x32xf32, #tpu.memory_space<vmem>>, vector<1x32xf32>
    %c0_39 = arith.constant 0 : index
    %c0_40 = arith.constant 0 : index
    %105 = vector.load %arg8[%c0_39, %c0_40] : memref<1x32xf32, #tpu.memory_space<vmem>>, vector<1x32xf32>
    %cst_41 = arith.constant dense<0.000000e+00> : vector<19xf32>
    %106 = vector.multi_reduction <add>, %103, %cst_41 [1] : vector<19x32xf32> to vector<19xf32>
    %107 = vector.shape_cast %106 : vector<19xf32> to vector<19x1xf32>
    %cst_42 = arith.constant 3.200000e+01 : f32
    %108 = vector.broadcast %cst_42 : f32 to vector<19x1xf32>
    %109 = arith.divf %107, %108 : vector<19x1xf32>
    %110 = vector.broadcast %109 : vector<19x1xf32> to vector<19x32xf32>
    %111 = arith.subf %103, %110 : vector<19x32xf32>
    %112 = arith.mulf %111, %111 : vector<19x32xf32>
    %cst_43 = arith.constant dense<0.000000e+00> : vector<19xf32>
    %113 = vector.multi_reduction <add>, %112, %cst_43 [1] : vector<19x32xf32> to vector<19xf32>
    %114 = vector.shape_cast %113 : vector<19xf32> to vector<19x1xf32>
    %cst_44 = arith.constant 3.200000e+01 : f32
    %115 = vector.broadcast %cst_44 : f32 to vector<19x1xf32>
    %116 = arith.divf %114, %115 : vector<19x1xf32>
    %117 = vector.broadcast %109 : vector<19x1xf32> to vector<19x32xf32>
    %118 = arith.subf %103, %117 : vector<19x32xf32>
    %cst_45 = arith.constant 9.99999974E-6 : f32
    %119 = vector.broadcast %cst_45 : f32 to vector<19x1xf32>
    %120 = arith.addf %116, %119 : vector<19x1xf32>
    %121 = math.rsqrt %120 : vector<19x1xf32>
    %122 = vector.broadcast %121 : vector<19x1xf32> to vector<19x32xf32>
    %123 = arith.mulf %118, %122 : vector<19x32xf32>
    %124 = vector.broadcast %104 : vector<1x32xf32> to vector<19x32xf32>
    %125 = arith.mulf %123, %124 : vector<19x32xf32>
    %126 = vector.broadcast %105 : vector<1x32xf32> to vector<19x32xf32>
    %127 = arith.addf %125, %126 : vector<19x32xf32>
    %c0_46 = arith.constant 0 : index
    %c0_47 = arith.constant 0 : index
    %128 = vector.load %arg9[%c0_46, %c0_47] : memref<32x64xbf16, #tpu.memory_space<vmem>>, vector<32x64xbf16>
    %129 = arith.truncf %127 : vector<19x32xf32> to vector<19x32xbf16>
    %cst_48 = arith.constant dense<0.000000e+00> : vector<19x64xf32>
    %130 = tpu.matmul %129, %128, %cst_48 {dimension_numbers = #tpu.dot_dimension_numbers<[1], [0], [0], [1], [0, 0, 1, 1], [], []>} : vector<19x32xbf16>, vector<32x64xbf16>, vector<19x64xf32> -> vector<19x64xf32>
    %c0_49 = arith.constant 0 : index
    %c0_50 = arith.constant 0 : index
    %131 = vector.load %arg10[%c0_49, %c0_50] : memref<1x64xf32, #tpu.memory_space<vmem>>, vector<1x64xf32>
    %132 = vector.broadcast %131 : vector<1x64xf32> to vector<19x64xf32>
    %133 = arith.addf %130, %132 : vector<19x64xf32>
    %cst_51 = arith.constant 0.000000e+00 : f32
    %134 = vector.broadcast %cst_51 : f32 to vector<1x64xf32>
    %135 = vector.extract_strided_slice %133 {offsets = [0, 0], sizes = [18, 64], strides = [1, 1]} : vector<19x64xf32> to vector<18x64xf32>
    %136 = tpu.concatenate %134, %135 in 0 : vector<1x64xf32>, vector<18x64xf32> -> vector<19x64xf32>
    %137 = vector.extract_strided_slice %133 {offsets = [1, 0], sizes = [18, 64], strides = [1, 1]} : vector<19x64xf32> to vector<18x64xf32>
    %cst_52 = arith.constant 0.000000e+00 : f32
    %138 = vector.broadcast %cst_52 : f32 to vector<1x64xf32>
    %139 = tpu.concatenate %137, %138 in 0 : vector<18x64xf32>, vector<1x64xf32> -> vector<19x64xf32>
    %140 = tpu.concatenate %136, %133, %139 in 1 : vector<19x64xf32>, vector<19x64xf32>, vector<19x64xf32> -> vector<19x192xf32>
    %c0_53 = arith.constant 0 : index
    %c0_54 = arith.constant 0 : index
    %141 = vector.load %arg11[%c0_53, %c0_54] : memref<192x64xbf16, #tpu.memory_space<vmem>>, vector<192x64xbf16>
    %142 = arith.truncf %140 : vector<19x192xf32> to vector<19x192xbf16>
    %cst_55 = arith.constant dense<0.000000e+00> : vector<19x64xf32>
    %143 = tpu.matmul %142, %141, %cst_55 {dimension_numbers = #tpu.dot_dimension_numbers<[1], [0], [0], [1], [0, 0, 1, 1], [], []>} : vector<19x192xbf16>, vector<192x64xbf16>, vector<19x64xf32> -> vector<19x64xf32>
    %c0_56 = arith.constant 0 : index
    %c0_57 = arith.constant 0 : index
    %144 = vector.load %arg12[%c0_56, %c0_57] : memref<1x64xf32, #tpu.memory_space<vmem>>, vector<1x64xf32>
    %145 = vector.broadcast %144 : vector<1x64xf32> to vector<19x64xf32>
    %146 = arith.addf %143, %145 : vector<19x64xf32>
    %cst_58 = arith.constant 5.000000e-01 : f32
    %147 = vector.broadcast %cst_58 : f32 to vector<19x64xf32>
    %148 = arith.mulf %147, %146 : vector<19x64xf32>
    %cst_59 = arith.constant 4.471500e-02 : f32
    %149 = vector.broadcast %cst_59 : f32 to vector<19x64xf32>
    %150 = arith.mulf %149, %146 : vector<19x64xf32>
    %151 = arith.mulf %150, %146 : vector<19x64xf32>
    %152 = arith.mulf %151, %146 : vector<19x64xf32>
    %153 = arith.addf %146, %152 : vector<19x64xf32>
    %cst_60 = arith.constant 0.797884583 : f32
    %154 = vector.broadcast %cst_60 : f32 to vector<19x64xf32>
    %155 = arith.mulf %154, %153 : vector<19x64xf32>
    %156 = math.tanh %155 : vector<19x64xf32>
    %cst_61 = arith.constant 1.000000e+00 : f32
    %157 = vector.broadcast %cst_61 : f32 to vector<19x64xf32>
    %158 = arith.addf %157, %156 : vector<19x64xf32>
    %159 = arith.mulf %148, %158 : vector<19x64xf32>
    %160 = arith.addf %133, %159 : vector<19x64xf32>
    %c0_62 = arith.constant 0 : index
    %c0_63 = arith.constant 0 : index
    %c0_64 = arith.constant 0 : index
    %161 = vector.load %arg13[%c0_62, %c0_63, %c0_64] : memref<2x64x192xbf16, #tpu.memory_space<vmem>>, vector<1x64x192xbf16>
    %162 = vector.shape_cast %161 : vector<1x64x192xbf16> to vector<64x192xbf16>
    %c0_65 = arith.constant 0 : index
    %c0_66 = arith.constant 0 : index
    %c0_67 = arith.constant 0 : index
    %163 = vector.load %arg15[%c0_65, %c0_66, %c0_67] : memref<2x64x64xbf16, #tpu.memory_space<vmem>>, vector<1x64x64xbf16>
    %164 = vector.shape_cast %163 : vector<1x64x64xbf16> to vector<64x64xbf16>
    %165 = arith.truncf %160 : vector<19x64xf32> to vector<19x64xbf16>
    %cst_68 = arith.constant dense<0.000000e+00> : vector<19x192xf32>
    %166 = tpu.matmul %165, %162, %cst_68 {dimension_numbers = #tpu.dot_dimension_numbers<[1], [0], [0], [1], [0, 0, 1, 1], [], []>} : vector<19x64xbf16>, vector<64x192xbf16>, vector<19x192xf32> -> vector<19x192xf32>
    %c0_69 = arith.constant 0 : index
    %c0_70 = arith.constant 0 : index
    %c0_71 = arith.constant 0 : index
    %167 = vector.load %arg14[%c0_69, %c0_70, %c0_71] : memref<2x1x192xf32, #tpu.memory_space<vmem>>, vector<1x1x192xf32>
    %168 = vector.shape_cast %167 : vector<1x1x192xf32> to vector<1x192xf32>
    %169 = vector.broadcast %168 : vector<1x192xf32> to vector<19x192xf32>
    %170 = arith.addf %166, %169 : vector<19x192xf32>
    %cst_72 = arith.constant 0.000000e+00 : f32
    %171 = vector.broadcast %cst_72 : f32 to vector<19x64xf32>
    %172 = vector.extract_strided_slice %170 {offsets = [0, 0], sizes = [19, 16], strides = [1, 1]} : vector<19x192xf32> to vector<19x16xf32>
    %cst_73 = arith.constant 2.500000e-01 : f32
    %173 = vector.broadcast %cst_73 : f32 to vector<19x16xf32>
    %174 = arith.mulf %172, %173 : vector<19x16xf32>
    %175 = vector.extract_strided_slice %170 {offsets = [0, 64], sizes = [19, 16], strides = [1, 1]} : vector<19x192xf32> to vector<19x16xf32>
    %176 = vector.extract_strided_slice %170 {offsets = [0, 128], sizes = [19, 16], strides = [1, 1]} : vector<19x192xf32> to vector<19x16xf32>
    %177 = tpu.transpose %175, [1, 0] : vector<19x16xf32> -> vector<16x19xf32>
    %178 = arith.truncf %174 : vector<19x16xf32> to vector<19x16xbf16>
    %179 = arith.truncf %177 : vector<16x19xf32> to vector<16x19xbf16>
    %cst_74 = arith.constant dense<0.000000e+00> : vector<19x19xf32>
    %180 = tpu.matmul %178, %179, %cst_74 {dimension_numbers = #tpu.dot_dimension_numbers<[1], [0], [0], [1], [0, 0, 1, 1], [], []>} : vector<19x16xbf16>, vector<16x19xbf16>, vector<19x19xf32> -> vector<19x19xf32>
    %cst_75 = arith.constant dense<0xFF800000> : vector<19xf32>
    %181 = vector.multi_reduction <maximumf>, %180, %cst_75 [1] : vector<19x19xf32> to vector<19xf32>
    %182 = vector.shape_cast %181 : vector<19xf32> to vector<19x1xf32>
    %183 = vector.broadcast %182 : vector<19x1xf32> to vector<19x19xf32>
    %184 = arith.subf %180, %183 : vector<19x19xf32>
    %185 = math.exp %184 : vector<19x19xf32>
    %cst_76 = arith.constant dense<0.000000e+00> : vector<19xf32>
    %186 = vector.multi_reduction <add>, %185, %cst_76 [1] : vector<19x19xf32> to vector<19xf32>
    %187 = vector.shape_cast %186 : vector<19xf32> to vector<19x1xf32>
    %188 = tpu.reciprocal %187 {approx = true} : vector<19x1xf32> -> vector<19x1xf32>
    %189 = vector.broadcast %188 : vector<19x1xf32> to vector<19x19xf32>
    %190 = arith.mulf %185, %189 : vector<19x19xf32>
    %191 = arith.truncf %190 : vector<19x19xf32> to vector<19x19xbf16>
    %192 = arith.truncf %176 : vector<19x16xf32> to vector<19x16xbf16>
    %cst_77 = arith.constant dense<0.000000e+00> : vector<19x16xf32>
    %193 = tpu.matmul %191, %192, %cst_77 {dimension_numbers = #tpu.dot_dimension_numbers<[1], [0], [0], [1], [0, 0, 1, 1], [], []>} : vector<19x19xbf16>, vector<19x16xbf16>, vector<19x16xf32> -> vector<19x16xf32>
    %194 = vector.extract_strided_slice %164 {offsets = [0, 0], sizes = [16, 64], strides = [1, 1]} : vector<64x64xbf16> to vector<16x64xbf16>
    %195 = arith.truncf %193 : vector<19x16xf32> to vector<19x16xbf16>
    %cst_78 = arith.constant dense<0.000000e+00> : vector<19x64xf32>
    %196 = tpu.matmul %195, %194, %cst_78 {dimension_numbers = #tpu.dot_dimension_numbers<[1], [0], [0], [1], [0, 0, 1, 1], [], []>} : vector<19x16xbf16>, vector<16x64xbf16>, vector<19x64xf32> -> vector<19x64xf32>
    %197 = arith.addf %171, %196 : vector<19x64xf32>
    %198 = vector.extract_strided_slice %170 {offsets = [0, 16], sizes = [19, 16], strides = [1, 1]} : vector<19x192xf32> to vector<19x16xf32>
    %cst_79 = arith.constant 2.500000e-01 : f32
    %199 = vector.broadcast %cst_79 : f32 to vector<19x16xf32>
    %200 = arith.mulf %198, %199 : vector<19x16xf32>
    %201 = vector.extract_strided_slice %170 {offsets = [0, 80], sizes = [19, 16], strides = [1, 1]} : vector<19x192xf32> to vector<19x16xf32>
    %202 = vector.extract_strided_slice %170 {offsets = [0, 144], sizes = [19, 16], strides = [1, 1]} : vector<19x192xf32> to vector<19x16xf32>
    %203 = tpu.transpose %201, [1, 0] : vector<19x16xf32> -> vector<16x19xf32>
    %204 = arith.truncf %200 : vector<19x16xf32> to vector<19x16xbf16>
    %205 = arith.truncf %203 : vector<16x19xf32> to vector<16x19xbf16>
    %cst_80 = arith.constant dense<0.000000e+00> : vector<19x19xf32>
    %206 = tpu.matmul %204, %205, %cst_80 {dimension_numbers = #tpu.dot_dimension_numbers<[1], [0], [0], [1], [0, 0, 1, 1], [], []>} : vector<19x16xbf16>, vector<16x19xbf16>, vector<19x19xf32> -> vector<19x19xf32>
    %cst_81 = arith.constant dense<0xFF800000> : vector<19xf32>
    %207 = vector.multi_reduction <maximumf>, %206, %cst_81 [1] : vector<19x19xf32> to vector<19xf32>
    %208 = vector.shape_cast %207 : vector<19xf32> to vector<19x1xf32>
    %209 = vector.broadcast %208 : vector<19x1xf32> to vector<19x19xf32>
    %210 = arith.subf %206, %209 : vector<19x19xf32>
    %211 = math.exp %210 : vector<19x19xf32>
    %cst_82 = arith.constant dense<0.000000e+00> : vector<19xf32>
    %212 = vector.multi_reduction <add>, %211, %cst_82 [1] : vector<19x19xf32> to vector<19xf32>
    %213 = vector.shape_cast %212 : vector<19xf32> to vector<19x1xf32>
    %214 = tpu.reciprocal %213 {approx = true} : vector<19x1xf32> -> vector<19x1xf32>
    %215 = vector.broadcast %214 : vector<19x1xf32> to vector<19x19xf32>
    %216 = arith.mulf %211, %215 : vector<19x19xf32>
    %217 = arith.truncf %216 : vector<19x19xf32> to vector<19x19xbf16>
    %218 = arith.truncf %202 : vector<19x16xf32> to vector<19x16xbf16>
    %cst_83 = arith.constant dense<0.000000e+00> : vector<19x16xf32>
    %219 = tpu.matmul %217, %218, %cst_83 {dimension_numbers = #tpu.dot_dimension_numbers<[1], [0], [0], [1], [0, 0, 1, 1], [], []>} : vector<19x19xbf16>, vector<19x16xbf16>, vector<19x16xf32> -> vector<19x16xf32>
    %220 = vector.extract_strided_slice %164 {offsets = [16, 0], sizes = [16, 64], strides = [1, 1]} : vector<64x64xbf16> to vector<16x64xbf16>
    %221 = arith.truncf %219 : vector<19x16xf32> to vector<19x16xbf16>
    %cst_84 = arith.constant dense<0.000000e+00> : vector<19x64xf32>
    %222 = tpu.matmul %221, %220, %cst_84 {dimension_numbers = #tpu.dot_dimension_numbers<[1], [0], [0], [1], [0, 0, 1, 1], [], []>} : vector<19x16xbf16>, vector<16x64xbf16>, vector<19x64xf32> -> vector<19x64xf32>
    %223 = arith.addf %197, %222 : vector<19x64xf32>
    %224 = vector.extract_strided_slice %170 {offsets = [0, 32], sizes = [19, 16], strides = [1, 1]} : vector<19x192xf32> to vector<19x16xf32>
    %cst_85 = arith.constant 2.500000e-01 : f32
    %225 = vector.broadcast %cst_85 : f32 to vector<19x16xf32>
    %226 = arith.mulf %224, %225 : vector<19x16xf32>
    %227 = vector.extract_strided_slice %170 {offsets = [0, 96], sizes = [19, 16], strides = [1, 1]} : vector<19x192xf32> to vector<19x16xf32>
    %228 = vector.extract_strided_slice %170 {offsets = [0, 160], sizes = [19, 16], strides = [1, 1]} : vector<19x192xf32> to vector<19x16xf32>
    %229 = tpu.transpose %227, [1, 0] : vector<19x16xf32> -> vector<16x19xf32>
    %230 = arith.truncf %226 : vector<19x16xf32> to vector<19x16xbf16>
    %231 = arith.truncf %229 : vector<16x19xf32> to vector<16x19xbf16>
    %cst_86 = arith.constant dense<0.000000e+00> : vector<19x19xf32>
    %232 = tpu.matmul %230, %231, %cst_86 {dimension_numbers = #tpu.dot_dimension_numbers<[1], [0], [0], [1], [0, 0, 1, 1], [], []>} : vector<19x16xbf16>, vector<16x19xbf16>, vector<19x19xf32> -> vector<19x19xf32>
    %cst_87 = arith.constant dense<0xFF800000> : vector<19xf32>
    %233 = vector.multi_reduction <maximumf>, %232, %cst_87 [1] : vector<19x19xf32> to vector<19xf32>
    %234 = vector.shape_cast %233 : vector<19xf32> to vector<19x1xf32>
    %235 = vector.broadcast %234 : vector<19x1xf32> to vector<19x19xf32>
    %236 = arith.subf %232, %235 : vector<19x19xf32>
    %237 = math.exp %236 : vector<19x19xf32>
    %cst_88 = arith.constant dense<0.000000e+00> : vector<19xf32>
    %238 = vector.multi_reduction <add>, %237, %cst_88 [1] : vector<19x19xf32> to vector<19xf32>
    %239 = vector.shape_cast %238 : vector<19xf32> to vector<19x1xf32>
    %240 = tpu.reciprocal %239 {approx = true} : vector<19x1xf32> -> vector<19x1xf32>
    %241 = vector.broadcast %240 : vector<19x1xf32> to vector<19x19xf32>
    %242 = arith.mulf %237, %241 : vector<19x19xf32>
    %243 = arith.truncf %242 : vector<19x19xf32> to vector<19x19xbf16>
    %244 = arith.truncf %228 : vector<19x16xf32> to vector<19x16xbf16>
    %cst_89 = arith.constant dense<0.000000e+00> : vector<19x16xf32>
    %245 = tpu.matmul %243, %244, %cst_89 {dimension_numbers = #tpu.dot_dimension_numbers<[1], [0], [0], [1], [0, 0, 1, 1], [], []>} : vector<19x19xbf16>, vector<19x16xbf16>, vector<19x16xf32> -> vector<19x16xf32>
    %246 = vector.extract_strided_slice %164 {offsets = [32, 0], sizes = [16, 64], strides = [1, 1]} : vector<64x64xbf16> to vector<16x64xbf16>
    %247 = arith.truncf %245 : vector<19x16xf32> to vector<19x16xbf16>
    %cst_90 = arith.constant dense<0.000000e+00> : vector<19x64xf32>
    %248 = tpu.matmul %247, %246, %cst_90 {dimension_numbers = #tpu.dot_dimension_numbers<[1], [0], [0], [1], [0, 0, 1, 1], [], []>} : vector<19x16xbf16>, vector<16x64xbf16>, vector<19x64xf32> -> vector<19x64xf32>
    %249 = arith.addf %223, %248 : vector<19x64xf32>
    %250 = vector.extract_strided_slice %170 {offsets = [0, 48], sizes = [19, 16], strides = [1, 1]} : vector<19x192xf32> to vector<19x16xf32>
    %cst_91 = arith.constant 2.500000e-01 : f32
    %251 = vector.broadcast %cst_91 : f32 to vector<19x16xf32>
    %252 = arith.mulf %250, %251 : vector<19x16xf32>
    %253 = vector.extract_strided_slice %170 {offsets = [0, 112], sizes = [19, 16], strides = [1, 1]} : vector<19x192xf32> to vector<19x16xf32>
    %254 = vector.extract_strided_slice %170 {offsets = [0, 176], sizes = [19, 16], strides = [1, 1]} : vector<19x192xf32> to vector<19x16xf32>
    %255 = tpu.transpose %253, [1, 0] : vector<19x16xf32> -> vector<16x19xf32>
    %256 = arith.truncf %252 : vector<19x16xf32> to vector<19x16xbf16>
    %257 = arith.truncf %255 : vector<16x19xf32> to vector<16x19xbf16>
    %cst_92 = arith.constant dense<0.000000e+00> : vector<19x19xf32>
    %258 = tpu.matmul %256, %257, %cst_92 {dimension_numbers = #tpu.dot_dimension_numbers<[1], [0], [0], [1], [0, 0, 1, 1], [], []>} : vector<19x16xbf16>, vector<16x19xbf16>, vector<19x19xf32> -> vector<19x19xf32>
    %cst_93 = arith.constant dense<0xFF800000> : vector<19xf32>
    %259 = vector.multi_reduction <maximumf>, %258, %cst_93 [1] : vector<19x19xf32> to vector<19xf32>
    %260 = vector.shape_cast %259 : vector<19xf32> to vector<19x1xf32>
    %261 = vector.broadcast %260 : vector<19x1xf32> to vector<19x19xf32>
    %262 = arith.subf %258, %261 : vector<19x19xf32>
    %263 = math.exp %262 : vector<19x19xf32>
    %cst_94 = arith.constant dense<0.000000e+00> : vector<19xf32>
    %264 = vector.multi_reduction <add>, %263, %cst_94 [1] : vector<19x19xf32> to vector<19xf32>
    %265 = vector.shape_cast %264 : vector<19xf32> to vector<19x1xf32>
    %266 = tpu.reciprocal %265 {approx = true} : vector<19x1xf32> -> vector<19x1xf32>
    %267 = vector.broadcast %266 : vector<19x1xf32> to vector<19x19xf32>
    %268 = arith.mulf %263, %267 : vector<19x19xf32>
    %269 = arith.truncf %268 : vector<19x19xf32> to vector<19x19xbf16>
    %270 = arith.truncf %254 : vector<19x16xf32> to vector<19x16xbf16>
    %cst_95 = arith.constant dense<0.000000e+00> : vector<19x16xf32>
    %271 = tpu.matmul %269, %270, %cst_95 {dimension_numbers = #tpu.dot_dimension_numbers<[1], [0], [0], [1], [0, 0, 1, 1], [], []>} : vector<19x19xbf16>, vector<19x16xbf16>, vector<19x16xf32> -> vector<19x16xf32>
    %272 = vector.extract_strided_slice %164 {offsets = [48, 0], sizes = [16, 64], strides = [1, 1]} : vector<64x64xbf16> to vector<16x64xbf16>
    %273 = arith.truncf %271 : vector<19x16xf32> to vector<19x16xbf16>
    %cst_96 = arith.constant dense<0.000000e+00> : vector<19x64xf32>
    %274 = tpu.matmul %273, %272, %cst_96 {dimension_numbers = #tpu.dot_dimension_numbers<[1], [0], [0], [1], [0, 0, 1, 1], [], []>} : vector<19x16xbf16>, vector<16x64xbf16>, vector<19x64xf32> -> vector<19x64xf32>
    %275 = arith.addf %249, %274 : vector<19x64xf32>
    %c0_97 = arith.constant 0 : index
    %c0_98 = arith.constant 0 : index
    %c0_99 = arith.constant 0 : index
    %276 = vector.load %arg16[%c0_97, %c0_98, %c0_99] : memref<2x1x64xf32, #tpu.memory_space<vmem>>, vector<1x1x64xf32>
    %277 = vector.shape_cast %276 : vector<1x1x64xf32> to vector<1x64xf32>
    %278 = vector.broadcast %277 : vector<1x64xf32> to vector<19x64xf32>
    %279 = arith.addf %275, %278 : vector<19x64xf32>
    %280 = arith.addf %160, %279 : vector<19x64xf32>
    %c0_100 = arith.constant 0 : index
    %c0_101 = arith.constant 0 : index
    %c0_102 = arith.constant 0 : index
    %281 = vector.load %arg17[%c0_100, %c0_101, %c0_102] : memref<2x1x64xf32, #tpu.memory_space<vmem>>, vector<1x1x64xf32>
    %282 = vector.shape_cast %281 : vector<1x1x64xf32> to vector<1x64xf32>
    %c0_103 = arith.constant 0 : index
    %c0_104 = arith.constant 0 : index
    %c0_105 = arith.constant 0 : index
    %283 = vector.load %arg18[%c0_103, %c0_104, %c0_105] : memref<2x1x64xf32, #tpu.memory_space<vmem>>, vector<1x1x64xf32>
    %284 = vector.shape_cast %283 : vector<1x1x64xf32> to vector<1x64xf32>
    %cst_106 = arith.constant dense<0.000000e+00> : vector<19xf32>
    %285 = vector.multi_reduction <add>, %280, %cst_106 [1] : vector<19x64xf32> to vector<19xf32>
    %286 = vector.shape_cast %285 : vector<19xf32> to vector<19x1xf32>
    %cst_107 = arith.constant 6.400000e+01 : f32
    %287 = vector.broadcast %cst_107 : f32 to vector<19x1xf32>
    %288 = arith.divf %286, %287 : vector<19x1xf32>
    %289 = vector.broadcast %288 : vector<19x1xf32> to vector<19x64xf32>
    %290 = arith.subf %280, %289 : vector<19x64xf32>
    %291 = arith.mulf %290, %290 : vector<19x64xf32>
    %cst_108 = arith.constant dense<0.000000e+00> : vector<19xf32>
    %292 = vector.multi_reduction <add>, %291, %cst_108 [1] : vector<19x64xf32> to vector<19xf32>
    %293 = vector.shape_cast %292 : vector<19xf32> to vector<19x1xf32>
    %cst_109 = arith.constant 6.400000e+01 : f32
    %294 = vector.broadcast %cst_109 : f32 to vector<19x1xf32>
    %295 = arith.divf %293, %294 : vector<19x1xf32>
    %296 = vector.broadcast %288 : vector<19x1xf32> to vector<19x64xf32>
    %297 = arith.subf %280, %296 : vector<19x64xf32>
    %cst_110 = arith.constant 9.99999974E-6 : f32
    %298 = vector.broadcast %cst_110 : f32 to vector<19x1xf32>
    %299 = arith.addf %295, %298 : vector<19x1xf32>
    %300 = math.rsqrt %299 : vector<19x1xf32>
    %301 = vector.broadcast %300 : vector<19x1xf32> to vector<19x64xf32>
    %302 = arith.mulf %297, %301 : vector<19x64xf32>
    %303 = vector.broadcast %282 : vector<1x64xf32> to vector<19x64xf32>
    %304 = arith.mulf %302, %303 : vector<19x64xf32>
    %305 = vector.broadcast %284 : vector<1x64xf32> to vector<19x64xf32>
    %306 = arith.addf %304, %305 : vector<19x64xf32>
    %c0_111 = arith.constant 0 : index
    %c0_112 = arith.constant 0 : index
    %c0_113 = arith.constant 0 : index
    %307 = vector.load %arg19[%c0_111, %c0_112, %c0_113] : memref<2x64x128xbf16, #tpu.memory_space<vmem>>, vector<1x64x128xbf16>
    %308 = vector.shape_cast %307 : vector<1x64x128xbf16> to vector<64x128xbf16>
    %309 = arith.truncf %306 : vector<19x64xf32> to vector<19x64xbf16>
    %cst_114 = arith.constant dense<0.000000e+00> : vector<19x128xf32>
    %310 = tpu.matmul %309, %308, %cst_114 {dimension_numbers = #tpu.dot_dimension_numbers<[1], [0], [0], [1], [0, 0, 1, 1], [], []>} : vector<19x64xbf16>, vector<64x128xbf16>, vector<19x128xf32> -> vector<19x128xf32>
    %c0_115 = arith.constant 0 : index
    %c0_116 = arith.constant 0 : index
    %c0_117 = arith.constant 0 : index
    %311 = vector.load %arg20[%c0_115, %c0_116, %c0_117] : memref<2x1x128xf32, #tpu.memory_space<vmem>>, vector<1x1x128xf32>
    %312 = vector.shape_cast %311 : vector<1x1x128xf32> to vector<1x128xf32>
    %313 = vector.broadcast %312 : vector<1x128xf32> to vector<19x128xf32>
    %314 = arith.addf %310, %313 : vector<19x128xf32>
    %cst_118 = arith.constant 5.000000e-01 : f32
    %315 = vector.broadcast %cst_118 : f32 to vector<19x128xf32>
    %316 = arith.mulf %315, %314 : vector<19x128xf32>
    %cst_119 = arith.constant 4.471500e-02 : f32
    %317 = vector.broadcast %cst_119 : f32 to vector<19x128xf32>
    %318 = arith.mulf %317, %314 : vector<19x128xf32>
    %319 = arith.mulf %318, %314 : vector<19x128xf32>
    %320 = arith.mulf %319, %314 : vector<19x128xf32>
    %321 = arith.addf %314, %320 : vector<19x128xf32>
    %cst_120 = arith.constant 0.797884583 : f32
    %322 = vector.broadcast %cst_120 : f32 to vector<19x128xf32>
    %323 = arith.mulf %322, %321 : vector<19x128xf32>
    %324 = math.tanh %323 : vector<19x128xf32>
    %cst_121 = arith.constant 1.000000e+00 : f32
    %325 = vector.broadcast %cst_121 : f32 to vector<19x128xf32>
    %326 = arith.addf %325, %324 : vector<19x128xf32>
    %327 = arith.mulf %316, %326 : vector<19x128xf32>
    %c0_122 = arith.constant 0 : index
    %c0_123 = arith.constant 0 : index
    %c0_124 = arith.constant 0 : index
    %328 = vector.load %arg21[%c0_122, %c0_123, %c0_124] : memref<2x128x64xbf16, #tpu.memory_space<vmem>>, vector<1x128x64xbf16>
    %329 = vector.shape_cast %328 : vector<1x128x64xbf16> to vector<128x64xbf16>
    %330 = arith.truncf %327 : vector<19x128xf32> to vector<19x128xbf16>
    %cst_125 = arith.constant dense<0.000000e+00> : vector<19x64xf32>
    %331 = tpu.matmul %330, %329, %cst_125 {dimension_numbers = #tpu.dot_dimension_numbers<[1], [0], [0], [1], [0, 0, 1, 1], [], []>} : vector<19x128xbf16>, vector<128x64xbf16>, vector<19x64xf32> -> vector<19x64xf32>
    %c0_126 = arith.constant 0 : index
    %c0_127 = arith.constant 0 : index
    %c0_128 = arith.constant 0 : index
    %332 = vector.load %arg22[%c0_126, %c0_127, %c0_128] : memref<2x1x64xf32, #tpu.memory_space<vmem>>, vector<1x1x64xf32>
    %333 = vector.shape_cast %332 : vector<1x1x64xf32> to vector<1x64xf32>
    %334 = vector.broadcast %333 : vector<1x64xf32> to vector<19x64xf32>
    %335 = arith.addf %331, %334 : vector<19x64xf32>
    %336 = arith.addf %306, %335 : vector<19x64xf32>
    %c0_129 = arith.constant 0 : index
    %c0_130 = arith.constant 0 : index
    %c0_131 = arith.constant 0 : index
    %337 = vector.load %arg23[%c0_129, %c0_130, %c0_131] : memref<2x1x64xf32, #tpu.memory_space<vmem>>, vector<1x1x64xf32>
    %338 = vector.shape_cast %337 : vector<1x1x64xf32> to vector<1x64xf32>
    %c0_132 = arith.constant 0 : index
    %c0_133 = arith.constant 0 : index
    %c0_134 = arith.constant 0 : index
    %339 = vector.load %arg24[%c0_132, %c0_133, %c0_134] : memref<2x1x64xf32, #tpu.memory_space<vmem>>, vector<1x1x64xf32>
    %340 = vector.shape_cast %339 : vector<1x1x64xf32> to vector<1x64xf32>
    %cst_135 = arith.constant dense<0.000000e+00> : vector<19xf32>
    %341 = vector.multi_reduction <add>, %336, %cst_135 [1] : vector<19x64xf32> to vector<19xf32>
    %342 = vector.shape_cast %341 : vector<19xf32> to vector<19x1xf32>
    %cst_136 = arith.constant 6.400000e+01 : f32
    %343 = vector.broadcast %cst_136 : f32 to vector<19x1xf32>
    %344 = arith.divf %342, %343 : vector<19x1xf32>
    %345 = vector.broadcast %344 : vector<19x1xf32> to vector<19x64xf32>
    %346 = arith.subf %336, %345 : vector<19x64xf32>
    %347 = arith.mulf %346, %346 : vector<19x64xf32>
    %cst_137 = arith.constant dense<0.000000e+00> : vector<19xf32>
    %348 = vector.multi_reduction <add>, %347, %cst_137 [1] : vector<19x64xf32> to vector<19xf32>
    %349 = vector.shape_cast %348 : vector<19xf32> to vector<19x1xf32>
    %cst_138 = arith.constant 6.400000e+01 : f32
    %350 = vector.broadcast %cst_138 : f32 to vector<19x1xf32>
    %351 = arith.divf %349, %350 : vector<19x1xf32>
    %352 = vector.broadcast %344 : vector<19x1xf32> to vector<19x64xf32>
    %353 = arith.subf %336, %352 : vector<19x64xf32>
    %cst_139 = arith.constant 9.99999974E-6 : f32
    %354 = vector.broadcast %cst_139 : f32 to vector<19x1xf32>
    %355 = arith.addf %351, %354 : vector<19x1xf32>
    %356 = math.rsqrt %355 : vector<19x1xf32>
    %357 = vector.broadcast %356 : vector<19x1xf32> to vector<19x64xf32>
    %358 = arith.mulf %353, %357 : vector<19x64xf32>
    %359 = vector.broadcast %338 : vector<1x64xf32> to vector<19x64xf32>
    %360 = arith.mulf %358, %359 : vector<19x64xf32>
    %361 = vector.broadcast %340 : vector<1x64xf32> to vector<19x64xf32>
    %362 = arith.addf %360, %361 : vector<19x64xf32>
    %c1 = arith.constant 1 : index
    %c0_140 = arith.constant 0 : index
    %c0_141 = arith.constant 0 : index
    %363 = vector.load %arg13[%c1, %c0_140, %c0_141] : memref<2x64x192xbf16, #tpu.memory_space<vmem>>, vector<1x64x192xbf16>
    %364 = vector.shape_cast %363 : vector<1x64x192xbf16> to vector<64x192xbf16>
    %c1_142 = arith.constant 1 : index
    %c0_143 = arith.constant 0 : index
    %c0_144 = arith.constant 0 : index
    %365 = vector.load %arg15[%c1_142, %c0_143, %c0_144] : memref<2x64x64xbf16, #tpu.memory_space<vmem>>, vector<1x64x64xbf16>
    %366 = vector.shape_cast %365 : vector<1x64x64xbf16> to vector<64x64xbf16>
    %367 = arith.truncf %362 : vector<19x64xf32> to vector<19x64xbf16>
    %cst_145 = arith.constant dense<0.000000e+00> : vector<19x192xf32>
    %368 = tpu.matmul %367, %364, %cst_145 {dimension_numbers = #tpu.dot_dimension_numbers<[1], [0], [0], [1], [0, 0, 1, 1], [], []>} : vector<19x64xbf16>, vector<64x192xbf16>, vector<19x192xf32> -> vector<19x192xf32>
    %c1_146 = arith.constant 1 : index
    %c0_147 = arith.constant 0 : index
    %c0_148 = arith.constant 0 : index
    %369 = vector.load %arg14[%c1_146, %c0_147, %c0_148] : memref<2x1x192xf32, #tpu.memory_space<vmem>>, vector<1x1x192xf32>
    %370 = vector.shape_cast %369 : vector<1x1x192xf32> to vector<1x192xf32>
    %371 = vector.broadcast %370 : vector<1x192xf32> to vector<19x192xf32>
    %372 = arith.addf %368, %371 : vector<19x192xf32>
    %cst_149 = arith.constant 0.000000e+00 : f32
    %373 = vector.broadcast %cst_149 : f32 to vector<19x64xf32>
    %374 = vector.extract_strided_slice %372 {offsets = [0, 0], sizes = [19, 16], strides = [1, 1]} : vector<19x192xf32> to vector<19x16xf32>
    %cst_150 = arith.constant 2.500000e-01 : f32
    %375 = vector.broadcast %cst_150 : f32 to vector<19x16xf32>
    %376 = arith.mulf %374, %375 : vector<19x16xf32>
    %377 = vector.extract_strided_slice %372 {offsets = [0, 64], sizes = [19, 16], strides = [1, 1]} : vector<19x192xf32> to vector<19x16xf32>
    %378 = vector.extract_strided_slice %372 {offsets = [0, 128], sizes = [19, 16], strides = [1, 1]} : vector<19x192xf32> to vector<19x16xf32>
    %379 = tpu.transpose %377, [1, 0] : vector<19x16xf32> -> vector<16x19xf32>
    %380 = arith.truncf %376 : vector<19x16xf32> to vector<19x16xbf16>
    %381 = arith.truncf %379 : vector<16x19xf32> to vector<16x19xbf16>
    %cst_151 = arith.constant dense<0.000000e+00> : vector<19x19xf32>
    %382 = tpu.matmul %380, %381, %cst_151 {dimension_numbers = #tpu.dot_dimension_numbers<[1], [0], [0], [1], [0, 0, 1, 1], [], []>} : vector<19x16xbf16>, vector<16x19xbf16>, vector<19x19xf32> -> vector<19x19xf32>
    %cst_152 = arith.constant dense<0xFF800000> : vector<19xf32>
    %383 = vector.multi_reduction <maximumf>, %382, %cst_152 [1] : vector<19x19xf32> to vector<19xf32>
    %384 = vector.shape_cast %383 : vector<19xf32> to vector<19x1xf32>
    %385 = vector.broadcast %384 : vector<19x1xf32> to vector<19x19xf32>
    %386 = arith.subf %382, %385 : vector<19x19xf32>
    %387 = math.exp %386 : vector<19x19xf32>
    %cst_153 = arith.constant dense<0.000000e+00> : vector<19xf32>
    %388 = vector.multi_reduction <add>, %387, %cst_153 [1] : vector<19x19xf32> to vector<19xf32>
    %389 = vector.shape_cast %388 : vector<19xf32> to vector<19x1xf32>
    %390 = tpu.reciprocal %389 {approx = true} : vector<19x1xf32> -> vector<19x1xf32>
    %391 = vector.broadcast %390 : vector<19x1xf32> to vector<19x19xf32>
    %392 = arith.mulf %387, %391 : vector<19x19xf32>
    %393 = arith.truncf %392 : vector<19x19xf32> to vector<19x19xbf16>
    %394 = arith.truncf %378 : vector<19x16xf32> to vector<19x16xbf16>
    %cst_154 = arith.constant dense<0.000000e+00> : vector<19x16xf32>
    %395 = tpu.matmul %393, %394, %cst_154 {dimension_numbers = #tpu.dot_dimension_numbers<[1], [0], [0], [1], [0, 0, 1, 1], [], []>} : vector<19x19xbf16>, vector<19x16xbf16>, vector<19x16xf32> -> vector<19x16xf32>
    %396 = vector.extract_strided_slice %366 {offsets = [0, 0], sizes = [16, 64], strides = [1, 1]} : vector<64x64xbf16> to vector<16x64xbf16>
    %397 = arith.truncf %395 : vector<19x16xf32> to vector<19x16xbf16>
    %cst_155 = arith.constant dense<0.000000e+00> : vector<19x64xf32>
    %398 = tpu.matmul %397, %396, %cst_155 {dimension_numbers = #tpu.dot_dimension_numbers<[1], [0], [0], [1], [0, 0, 1, 1], [], []>} : vector<19x16xbf16>, vector<16x64xbf16>, vector<19x64xf32> -> vector<19x64xf32>
    %399 = arith.addf %373, %398 : vector<19x64xf32>
    %400 = vector.extract_strided_slice %372 {offsets = [0, 16], sizes = [19, 16], strides = [1, 1]} : vector<19x192xf32> to vector<19x16xf32>
    %cst_156 = arith.constant 2.500000e-01 : f32
    %401 = vector.broadcast %cst_156 : f32 to vector<19x16xf32>
    %402 = arith.mulf %400, %401 : vector<19x16xf32>
    %403 = vector.extract_strided_slice %372 {offsets = [0, 80], sizes = [19, 16], strides = [1, 1]} : vector<19x192xf32> to vector<19x16xf32>
    %404 = vector.extract_strided_slice %372 {offsets = [0, 144], sizes = [19, 16], strides = [1, 1]} : vector<19x192xf32> to vector<19x16xf32>
    %405 = tpu.transpose %403, [1, 0] : vector<19x16xf32> -> vector<16x19xf32>
    %406 = arith.truncf %402 : vector<19x16xf32> to vector<19x16xbf16>
    %407 = arith.truncf %405 : vector<16x19xf32> to vector<16x19xbf16>
    %cst_157 = arith.constant dense<0.000000e+00> : vector<19x19xf32>
    %408 = tpu.matmul %406, %407, %cst_157 {dimension_numbers = #tpu.dot_dimension_numbers<[1], [0], [0], [1], [0, 0, 1, 1], [], []>} : vector<19x16xbf16>, vector<16x19xbf16>, vector<19x19xf32> -> vector<19x19xf32>
    %cst_158 = arith.constant dense<0xFF800000> : vector<19xf32>
    %409 = vector.multi_reduction <maximumf>, %408, %cst_158 [1] : vector<19x19xf32> to vector<19xf32>
    %410 = vector.shape_cast %409 : vector<19xf32> to vector<19x1xf32>
    %411 = vector.broadcast %410 : vector<19x1xf32> to vector<19x19xf32>
    %412 = arith.subf %408, %411 : vector<19x19xf32>
    %413 = math.exp %412 : vector<19x19xf32>
    %cst_159 = arith.constant dense<0.000000e+00> : vector<19xf32>
    %414 = vector.multi_reduction <add>, %413, %cst_159 [1] : vector<19x19xf32> to vector<19xf32>
    %415 = vector.shape_cast %414 : vector<19xf32> to vector<19x1xf32>
    %416 = tpu.reciprocal %415 {approx = true} : vector<19x1xf32> -> vector<19x1xf32>
    %417 = vector.broadcast %416 : vector<19x1xf32> to vector<19x19xf32>
    %418 = arith.mulf %413, %417 : vector<19x19xf32>
    %419 = arith.truncf %418 : vector<19x19xf32> to vector<19x19xbf16>
    %420 = arith.truncf %404 : vector<19x16xf32> to vector<19x16xbf16>
    %cst_160 = arith.constant dense<0.000000e+00> : vector<19x16xf32>
    %421 = tpu.matmul %419, %420, %cst_160 {dimension_numbers = #tpu.dot_dimension_numbers<[1], [0], [0], [1], [0, 0, 1, 1], [], []>} : vector<19x19xbf16>, vector<19x16xbf16>, vector<19x16xf32> -> vector<19x16xf32>
    %422 = vector.extract_strided_slice %366 {offsets = [16, 0], sizes = [16, 64], strides = [1, 1]} : vector<64x64xbf16> to vector<16x64xbf16>
    %423 = arith.truncf %421 : vector<19x16xf32> to vector<19x16xbf16>
    %cst_161 = arith.constant dense<0.000000e+00> : vector<19x64xf32>
    %424 = tpu.matmul %423, %422, %cst_161 {dimension_numbers = #tpu.dot_dimension_numbers<[1], [0], [0], [1], [0, 0, 1, 1], [], []>} : vector<19x16xbf16>, vector<16x64xbf16>, vector<19x64xf32> -> vector<19x64xf32>
    %425 = arith.addf %399, %424 : vector<19x64xf32>
    %426 = vector.extract_strided_slice %372 {offsets = [0, 32], sizes = [19, 16], strides = [1, 1]} : vector<19x192xf32> to vector<19x16xf32>
    %cst_162 = arith.constant 2.500000e-01 : f32
    %427 = vector.broadcast %cst_162 : f32 to vector<19x16xf32>
    %428 = arith.mulf %426, %427 : vector<19x16xf32>
    %429 = vector.extract_strided_slice %372 {offsets = [0, 96], sizes = [19, 16], strides = [1, 1]} : vector<19x192xf32> to vector<19x16xf32>
    %430 = vector.extract_strided_slice %372 {offsets = [0, 160], sizes = [19, 16], strides = [1, 1]} : vector<19x192xf32> to vector<19x16xf32>
    %431 = tpu.transpose %429, [1, 0] : vector<19x16xf32> -> vector<16x19xf32>
    %432 = arith.truncf %428 : vector<19x16xf32> to vector<19x16xbf16>
    %433 = arith.truncf %431 : vector<16x19xf32> to vector<16x19xbf16>
    %cst_163 = arith.constant dense<0.000000e+00> : vector<19x19xf32>
    %434 = tpu.matmul %432, %433, %cst_163 {dimension_numbers = #tpu.dot_dimension_numbers<[1], [0], [0], [1], [0, 0, 1, 1], [], []>} : vector<19x16xbf16>, vector<16x19xbf16>, vector<19x19xf32> -> vector<19x19xf32>
    %cst_164 = arith.constant dense<0xFF800000> : vector<19xf32>
    %435 = vector.multi_reduction <maximumf>, %434, %cst_164 [1] : vector<19x19xf32> to vector<19xf32>
    %436 = vector.shape_cast %435 : vector<19xf32> to vector<19x1xf32>
    %437 = vector.broadcast %436 : vector<19x1xf32> to vector<19x19xf32>
    %438 = arith.subf %434, %437 : vector<19x19xf32>
    %439 = math.exp %438 : vector<19x19xf32>
    %cst_165 = arith.constant dense<0.000000e+00> : vector<19xf32>
    %440 = vector.multi_reduction <add>, %439, %cst_165 [1] : vector<19x19xf32> to vector<19xf32>
    %441 = vector.shape_cast %440 : vector<19xf32> to vector<19x1xf32>
    %442 = tpu.reciprocal %441 {approx = true} : vector<19x1xf32> -> vector<19x1xf32>
    %443 = vector.broadcast %442 : vector<19x1xf32> to vector<19x19xf32>
    %444 = arith.mulf %439, %443 : vector<19x19xf32>
    %445 = arith.truncf %444 : vector<19x19xf32> to vector<19x19xbf16>
    %446 = arith.truncf %430 : vector<19x16xf32> to vector<19x16xbf16>
    %cst_166 = arith.constant dense<0.000000e+00> : vector<19x16xf32>
    %447 = tpu.matmul %445, %446, %cst_166 {dimension_numbers = #tpu.dot_dimension_numbers<[1], [0], [0], [1], [0, 0, 1, 1], [], []>} : vector<19x19xbf16>, vector<19x16xbf16>, vector<19x16xf32> -> vector<19x16xf32>
    %448 = vector.extract_strided_slice %366 {offsets = [32, 0], sizes = [16, 64], strides = [1, 1]} : vector<64x64xbf16> to vector<16x64xbf16>
    %449 = arith.truncf %447 : vector<19x16xf32> to vector<19x16xbf16>
    %cst_167 = arith.constant dense<0.000000e+00> : vector<19x64xf32>
    %450 = tpu.matmul %449, %448, %cst_167 {dimension_numbers = #tpu.dot_dimension_numbers<[1], [0], [0], [1], [0, 0, 1, 1], [], []>} : vector<19x16xbf16>, vector<16x64xbf16>, vector<19x64xf32> -> vector<19x64xf32>
    %451 = arith.addf %425, %450 : vector<19x64xf32>
    %452 = vector.extract_strided_slice %372 {offsets = [0, 48], sizes = [19, 16], strides = [1, 1]} : vector<19x192xf32> to vector<19x16xf32>
    %cst_168 = arith.constant 2.500000e-01 : f32
    %453 = vector.broadcast %cst_168 : f32 to vector<19x16xf32>
    %454 = arith.mulf %452, %453 : vector<19x16xf32>
    %455 = vector.extract_strided_slice %372 {offsets = [0, 112], sizes = [19, 16], strides = [1, 1]} : vector<19x192xf32> to vector<19x16xf32>
    %456 = vector.extract_strided_slice %372 {offsets = [0, 176], sizes = [19, 16], strides = [1, 1]} : vector<19x192xf32> to vector<19x16xf32>
    %457 = tpu.transpose %455, [1, 0] : vector<19x16xf32> -> vector<16x19xf32>
    %458 = arith.truncf %454 : vector<19x16xf32> to vector<19x16xbf16>
    %459 = arith.truncf %457 : vector<16x19xf32> to vector<16x19xbf16>
    %cst_169 = arith.constant dense<0.000000e+00> : vector<19x19xf32>
    %460 = tpu.matmul %458, %459, %cst_169 {dimension_numbers = #tpu.dot_dimension_numbers<[1], [0], [0], [1], [0, 0, 1, 1], [], []>} : vector<19x16xbf16>, vector<16x19xbf16>, vector<19x19xf32> -> vector<19x19xf32>
    %cst_170 = arith.constant dense<0xFF800000> : vector<19xf32>
    %461 = vector.multi_reduction <maximumf>, %460, %cst_170 [1] : vector<19x19xf32> to vector<19xf32>
    %462 = vector.shape_cast %461 : vector<19xf32> to vector<19x1xf32>
    %463 = vector.broadcast %462 : vector<19x1xf32> to vector<19x19xf32>
    %464 = arith.subf %460, %463 : vector<19x19xf32>
    %465 = math.exp %464 : vector<19x19xf32>
    %cst_171 = arith.constant dense<0.000000e+00> : vector<19xf32>
    %466 = vector.multi_reduction <add>, %465, %cst_171 [1] : vector<19x19xf32> to vector<19xf32>
    %467 = vector.shape_cast %466 : vector<19xf32> to vector<19x1xf32>
    %468 = tpu.reciprocal %467 {approx = true} : vector<19x1xf32> -> vector<19x1xf32>
    %469 = vector.broadcast %468 : vector<19x1xf32> to vector<19x19xf32>
    %470 = arith.mulf %465, %469 : vector<19x19xf32>
    %471 = arith.truncf %470 : vector<19x19xf32> to vector<19x19xbf16>
    %472 = arith.truncf %456 : vector<19x16xf32> to vector<19x16xbf16>
    %cst_172 = arith.constant dense<0.000000e+00> : vector<19x16xf32>
    %473 = tpu.matmul %471, %472, %cst_172 {dimension_numbers = #tpu.dot_dimension_numbers<[1], [0], [0], [1], [0, 0, 1, 1], [], []>} : vector<19x19xbf16>, vector<19x16xbf16>, vector<19x16xf32> -> vector<19x16xf32>
    %474 = vector.extract_strided_slice %366 {offsets = [48, 0], sizes = [16, 64], strides = [1, 1]} : vector<64x64xbf16> to vector<16x64xbf16>
    %475 = arith.truncf %473 : vector<19x16xf32> to vector<19x16xbf16>
    %cst_173 = arith.constant dense<0.000000e+00> : vector<19x64xf32>
    %476 = tpu.matmul %475, %474, %cst_173 {dimension_numbers = #tpu.dot_dimension_numbers<[1], [0], [0], [1], [0, 0, 1, 1], [], []>} : vector<19x16xbf16>, vector<16x64xbf16>, vector<19x64xf32> -> vector<19x64xf32>
    %477 = arith.addf %451, %476 : vector<19x64xf32>
    %c1_174 = arith.constant 1 : index
    %c0_175 = arith.constant 0 : index
    %c0_176 = arith.constant 0 : index
    %478 = vector.load %arg16[%c1_174, %c0_175, %c0_176] : memref<2x1x64xf32, #tpu.memory_space<vmem>>, vector<1x1x64xf32>
    %479 = vector.shape_cast %478 : vector<1x1x64xf32> to vector<1x64xf32>
    %480 = vector.broadcast %479 : vector<1x64xf32> to vector<19x64xf32>
    %481 = arith.addf %477, %480 : vector<19x64xf32>
    %482 = arith.addf %362, %481 : vector<19x64xf32>
    %c1_177 = arith.constant 1 : index
    %c0_178 = arith.constant 0 : index
    %c0_179 = arith.constant 0 : index
    %483 = vector.load %arg17[%c1_177, %c0_178, %c0_179] : memref<2x1x64xf32, #tpu.memory_space<vmem>>, vector<1x1x64xf32>
    %484 = vector.shape_cast %483 : vector<1x1x64xf32> to vector<1x64xf32>
    %c1_180 = arith.constant 1 : index
    %c0_181 = arith.constant 0 : index
    %c0_182 = arith.constant 0 : index
    %485 = vector.load %arg18[%c1_180, %c0_181, %c0_182] : memref<2x1x64xf32, #tpu.memory_space<vmem>>, vector<1x1x64xf32>
    %486 = vector.shape_cast %485 : vector<1x1x64xf32> to vector<1x64xf32>
    %cst_183 = arith.constant dense<0.000000e+00> : vector<19xf32>
    %487 = vector.multi_reduction <add>, %482, %cst_183 [1] : vector<19x64xf32> to vector<19xf32>
    %488 = vector.shape_cast %487 : vector<19xf32> to vector<19x1xf32>
    %cst_184 = arith.constant 6.400000e+01 : f32
    %489 = vector.broadcast %cst_184 : f32 to vector<19x1xf32>
    %490 = arith.divf %488, %489 : vector<19x1xf32>
    %491 = vector.broadcast %490 : vector<19x1xf32> to vector<19x64xf32>
    %492 = arith.subf %482, %491 : vector<19x64xf32>
    %493 = arith.mulf %492, %492 : vector<19x64xf32>
    %cst_185 = arith.constant dense<0.000000e+00> : vector<19xf32>
    %494 = vector.multi_reduction <add>, %493, %cst_185 [1] : vector<19x64xf32> to vector<19xf32>
    %495 = vector.shape_cast %494 : vector<19xf32> to vector<19x1xf32>
    %cst_186 = arith.constant 6.400000e+01 : f32
    %496 = vector.broadcast %cst_186 : f32 to vector<19x1xf32>
    %497 = arith.divf %495, %496 : vector<19x1xf32>
    %498 = vector.broadcast %490 : vector<19x1xf32> to vector<19x64xf32>
    %499 = arith.subf %482, %498 : vector<19x64xf32>
    %cst_187 = arith.constant 9.99999974E-6 : f32
    %500 = vector.broadcast %cst_187 : f32 to vector<19x1xf32>
    %501 = arith.addf %497, %500 : vector<19x1xf32>
    %502 = math.rsqrt %501 : vector<19x1xf32>
    %503 = vector.broadcast %502 : vector<19x1xf32> to vector<19x64xf32>
    %504 = arith.mulf %499, %503 : vector<19x64xf32>
    %505 = vector.broadcast %484 : vector<1x64xf32> to vector<19x64xf32>
    %506 = arith.mulf %504, %505 : vector<19x64xf32>
    %507 = vector.broadcast %486 : vector<1x64xf32> to vector<19x64xf32>
    %508 = arith.addf %506, %507 : vector<19x64xf32>
    %c1_188 = arith.constant 1 : index
    %c0_189 = arith.constant 0 : index
    %c0_190 = arith.constant 0 : index
    %509 = vector.load %arg19[%c1_188, %c0_189, %c0_190] : memref<2x64x128xbf16, #tpu.memory_space<vmem>>, vector<1x64x128xbf16>
    %510 = vector.shape_cast %509 : vector<1x64x128xbf16> to vector<64x128xbf16>
    %511 = arith.truncf %508 : vector<19x64xf32> to vector<19x64xbf16>
    %cst_191 = arith.constant dense<0.000000e+00> : vector<19x128xf32>
    %512 = tpu.matmul %511, %510, %cst_191 {dimension_numbers = #tpu.dot_dimension_numbers<[1], [0], [0], [1], [0, 0, 1, 1], [], []>} : vector<19x64xbf16>, vector<64x128xbf16>, vector<19x128xf32> -> vector<19x128xf32>
    %c1_192 = arith.constant 1 : index
    %c0_193 = arith.constant 0 : index
    %c0_194 = arith.constant 0 : index
    %513 = vector.load %arg20[%c1_192, %c0_193, %c0_194] : memref<2x1x128xf32, #tpu.memory_space<vmem>>, vector<1x1x128xf32>
    %514 = vector.shape_cast %513 : vector<1x1x128xf32> to vector<1x128xf32>
    %515 = vector.broadcast %514 : vector<1x128xf32> to vector<19x128xf32>
    %516 = arith.addf %512, %515 : vector<19x128xf32>
    %cst_195 = arith.constant 5.000000e-01 : f32
    %517 = vector.broadcast %cst_195 : f32 to vector<19x128xf32>
    %518 = arith.mulf %517, %516 : vector<19x128xf32>
    %cst_196 = arith.constant 4.471500e-02 : f32
    %519 = vector.broadcast %cst_196 : f32 to vector<19x128xf32>
    %520 = arith.mulf %519, %516 : vector<19x128xf32>
    %521 = arith.mulf %520, %516 : vector<19x128xf32>
    %522 = arith.mulf %521, %516 : vector<19x128xf32>
    %523 = arith.addf %516, %522 : vector<19x128xf32>
    %cst_197 = arith.constant 0.797884583 : f32
    %524 = vector.broadcast %cst_197 : f32 to vector<19x128xf32>
    %525 = arith.mulf %524, %523 : vector<19x128xf32>
    %526 = math.tanh %525 : vector<19x128xf32>
    %cst_198 = arith.constant 1.000000e+00 : f32
    %527 = vector.broadcast %cst_198 : f32 to vector<19x128xf32>
    %528 = arith.addf %527, %526 : vector<19x128xf32>
    %529 = arith.mulf %518, %528 : vector<19x128xf32>
    %c1_199 = arith.constant 1 : index
    %c0_200 = arith.constant 0 : index
    %c0_201 = arith.constant 0 : index
    %530 = vector.load %arg21[%c1_199, %c0_200, %c0_201] : memref<2x128x64xbf16, #tpu.memory_space<vmem>>, vector<1x128x64xbf16>
    %531 = vector.shape_cast %530 : vector<1x128x64xbf16> to vector<128x64xbf16>
    %532 = arith.truncf %529 : vector<19x128xf32> to vector<19x128xbf16>
    %cst_202 = arith.constant dense<0.000000e+00> : vector<19x64xf32>
    %533 = tpu.matmul %532, %531, %cst_202 {dimension_numbers = #tpu.dot_dimension_numbers<[1], [0], [0], [1], [0, 0, 1, 1], [], []>} : vector<19x128xbf16>, vector<128x64xbf16>, vector<19x64xf32> -> vector<19x64xf32>
    %c1_203 = arith.constant 1 : index
    %c0_204 = arith.constant 0 : index
    %c0_205 = arith.constant 0 : index
    %534 = vector.load %arg22[%c1_203, %c0_204, %c0_205] : memref<2x1x64xf32, #tpu.memory_space<vmem>>, vector<1x1x64xf32>
    %535 = vector.shape_cast %534 : vector<1x1x64xf32> to vector<1x64xf32>
    %536 = vector.broadcast %535 : vector<1x64xf32> to vector<19x64xf32>
    %537 = arith.addf %533, %536 : vector<19x64xf32>
    %538 = arith.addf %508, %537 : vector<19x64xf32>
    %c1_206 = arith.constant 1 : index
    %c0_207 = arith.constant 0 : index
    %c0_208 = arith.constant 0 : index
    %539 = vector.load %arg23[%c1_206, %c0_207, %c0_208] : memref<2x1x64xf32, #tpu.memory_space<vmem>>, vector<1x1x64xf32>
    %540 = vector.shape_cast %539 : vector<1x1x64xf32> to vector<1x64xf32>
    %c1_209 = arith.constant 1 : index
    %c0_210 = arith.constant 0 : index
    %c0_211 = arith.constant 0 : index
    %541 = vector.load %arg24[%c1_209, %c0_210, %c0_211] : memref<2x1x64xf32, #tpu.memory_space<vmem>>, vector<1x1x64xf32>
    %542 = vector.shape_cast %541 : vector<1x1x64xf32> to vector<1x64xf32>
    %cst_212 = arith.constant dense<0.000000e+00> : vector<19xf32>
    %543 = vector.multi_reduction <add>, %538, %cst_212 [1] : vector<19x64xf32> to vector<19xf32>
    %544 = vector.shape_cast %543 : vector<19xf32> to vector<19x1xf32>
    %cst_213 = arith.constant 6.400000e+01 : f32
    %545 = vector.broadcast %cst_213 : f32 to vector<19x1xf32>
    %546 = arith.divf %544, %545 : vector<19x1xf32>
    %547 = vector.broadcast %546 : vector<19x1xf32> to vector<19x64xf32>
    %548 = arith.subf %538, %547 : vector<19x64xf32>
    %549 = arith.mulf %548, %548 : vector<19x64xf32>
    %cst_214 = arith.constant dense<0.000000e+00> : vector<19xf32>
    %550 = vector.multi_reduction <add>, %549, %cst_214 [1] : vector<19x64xf32> to vector<19xf32>
    %551 = vector.shape_cast %550 : vector<19xf32> to vector<19x1xf32>
    %cst_215 = arith.constant 6.400000e+01 : f32
    %552 = vector.broadcast %cst_215 : f32 to vector<19x1xf32>
    %553 = arith.divf %551, %552 : vector<19x1xf32>
    %554 = vector.broadcast %546 : vector<19x1xf32> to vector<19x64xf32>
    %555 = arith.subf %538, %554 : vector<19x64xf32>
    %cst_216 = arith.constant 9.99999974E-6 : f32
    %556 = vector.broadcast %cst_216 : f32 to vector<19x1xf32>
    %557 = arith.addf %553, %556 : vector<19x1xf32>
    %558 = math.rsqrt %557 : vector<19x1xf32>
    %559 = vector.broadcast %558 : vector<19x1xf32> to vector<19x64xf32>
    %560 = arith.mulf %555, %559 : vector<19x64xf32>
    %561 = vector.broadcast %540 : vector<1x64xf32> to vector<19x64xf32>
    %562 = arith.mulf %560, %561 : vector<19x64xf32>
    %563 = vector.broadcast %542 : vector<1x64xf32> to vector<19x64xf32>
    %564 = arith.addf %562, %563 : vector<19x64xf32>
    %c0_217 = arith.constant 0 : index
    %c0_218 = arith.constant 0 : index
    %565 = vector.load %arg25[%c0_217, %c0_218] : memref<1x64xf32, #tpu.memory_space<vmem>>, vector<1x64xf32>
    %c0_219 = arith.constant 0 : index
    %c0_220 = arith.constant 0 : index
    %566 = vector.load %arg26[%c0_219, %c0_220] : memref<1x64xf32, #tpu.memory_space<vmem>>, vector<1x64xf32>
    %cst_221 = arith.constant dense<0.000000e+00> : vector<19xf32>
    %567 = vector.multi_reduction <add>, %564, %cst_221 [1] : vector<19x64xf32> to vector<19xf32>
    %568 = vector.shape_cast %567 : vector<19xf32> to vector<19x1xf32>
    %cst_222 = arith.constant 6.400000e+01 : f32
    %569 = vector.broadcast %cst_222 : f32 to vector<19x1xf32>
    %570 = arith.divf %568, %569 : vector<19x1xf32>
    %571 = vector.broadcast %570 : vector<19x1xf32> to vector<19x64xf32>
    %572 = arith.subf %564, %571 : vector<19x64xf32>
    %573 = arith.mulf %572, %572 : vector<19x64xf32>
    %cst_223 = arith.constant dense<0.000000e+00> : vector<19xf32>
    %574 = vector.multi_reduction <add>, %573, %cst_223 [1] : vector<19x64xf32> to vector<19xf32>
    %575 = vector.shape_cast %574 : vector<19xf32> to vector<19x1xf32>
    %cst_224 = arith.constant 6.400000e+01 : f32
    %576 = vector.broadcast %cst_224 : f32 to vector<19x1xf32>
    %577 = arith.divf %575, %576 : vector<19x1xf32>
    %578 = vector.broadcast %570 : vector<19x1xf32> to vector<19x64xf32>
    %579 = arith.subf %564, %578 : vector<19x64xf32>
    %cst_225 = arith.constant 9.99999974E-6 : f32
    %580 = vector.broadcast %cst_225 : f32 to vector<19x1xf32>
    %581 = arith.addf %577, %580 : vector<19x1xf32>
    %582 = math.rsqrt %581 : vector<19x1xf32>
    %583 = vector.broadcast %582 : vector<19x1xf32> to vector<19x64xf32>
    %584 = arith.mulf %579, %583 : vector<19x64xf32>
    %585 = vector.broadcast %565 : vector<1x64xf32> to vector<19x64xf32>
    %586 = arith.mulf %584, %585 : vector<19x64xf32>
    %587 = vector.broadcast %566 : vector<1x64xf32> to vector<19x64xf32>
    %588 = arith.addf %586, %587 : vector<19x64xf32>
    %c0_226 = arith.constant 0 : index
    %c0_227 = arith.constant 0 : index
    %589 = vector.load %arg27[%c0_226, %c0_227] : memref<64x128xbf16, #tpu.memory_space<vmem>>, vector<64x128xbf16>
    %590 = arith.truncf %588 : vector<19x64xf32> to vector<19x64xbf16>
    %cst_228 = arith.constant dense<0.000000e+00> : vector<19x128xf32>
    %591 = tpu.matmul %590, %589, %cst_228 {dimension_numbers = #tpu.dot_dimension_numbers<[1], [0], [0], [1], [0, 0, 1, 1], [], []>} : vector<19x64xbf16>, vector<64x128xbf16>, vector<19x128xf32> -> vector<19x128xf32>
    %c0_229 = arith.constant 0 : index
    %c0_230 = arith.constant 0 : index
    %592 = vector.load %arg28[%c0_229, %c0_230] : memref<1x128xf32, #tpu.memory_space<vmem>>, vector<1x128xf32>
    %593 = vector.broadcast %592 : vector<1x128xf32> to vector<19x128xf32>
    %594 = arith.addf %591, %593 : vector<19x128xf32>
    %c0_231 = arith.constant 0 : index
    %c0_232 = arith.constant 0 : index
    %c0_233 = arith.constant 0 : index
    %595 = vector.load %arg29[%c0_231, %c0_232, %c0_233] : memref<1x19x128xf32, #tpu.memory_space<vmem>>, vector<1x19x128xf32>
    %596 = vector.shape_cast %595 : vector<1x19x128xf32> to vector<19x128xf32>
    %597 = vector.shape_cast %594 : vector<19x128xf32> to vector<1x19x128xf32>
    tpu.vector_store %arg29[%c0_231, %c0_232, %c0_233], %597 {strides = array<i32>} : memref<1x19x128xf32, #tpu.memory_space<vmem>>, vector<1x19x128xf32>,
    return
  }
  func.func @transform_0(%arg0: i32) -> (i32, i32, i32) {
    %c0_i32 = arith.constant 0 : i32
    %c0_i32_0 = arith.constant 0 : i32
    %c0_i32_1 = arith.constant 0 : i32
    return %arg0, %c0_i32, %c0_i32_0 : i32, i32, i32
  }
  func.func @transform_1(%arg0: i32) -> (i32, i32) {
    %c0_i32 = arith.constant 0 : i32
    %c0_i32_0 = arith.constant 0 : i32
    %c0_i32_1 = arith.constant 0 : i32
    return %c0_i32, %c0_i32_0 : i32, i32
  }
  func.func @transform_2(%arg0: i32) -> (i32, i32) {
    %c0_i32 = arith.constant 0 : i32
    %c0_i32_0 = arith.constant 0 : i32
    %c0_i32_1 = arith.constant 0 : i32
    return %c0_i32, %c0_i32_0 : i32, i32
  }
  func.func @transform_3(%arg0: i32) -> (i32, i32) {
    %c0_i32 = arith.constant 0 : i32
    %c0_i32_0 = arith.constant 0 : i32
    %c0_i32_1 = arith.constant 0 : i32
    return %c0_i32, %c0_i32_0 : i32, i32
  }
  func.func @transform_4(%arg0: i32) -> (i32, i32) {
    %c0_i32 = arith.constant 0 : i32
    %c0_i32_0 = arith.constant 0 : i32
    %c0_i32_1 = arith.constant 0 : i32
    return %c0_i32, %c0_i32_0 : i32, i32
  }
  func.func @transform_5(%arg0: i32) -> (i32, i32) {
    %c0_i32 = arith.constant 0 : i32
    %c0_i32_0 = arith.constant 0 : i32
    %c0_i32_1 = arith.constant 0 : i32
    return %c0_i32, %c0_i32_0 : i32, i32
  }
  func.func @transform_6(%arg0: i32) -> (i32, i32) {
    %c0_i32 = arith.constant 0 : i32
    %c0_i32_0 = arith.constant 0 : i32
    %c0_i32_1 = arith.constant 0 : i32
    return %c0_i32, %c0_i32_0 : i32, i32
  }
  func.func @transform_7(%arg0: i32) -> (i32, i32) {
    %c0_i32 = arith.constant 0 : i32
    %c0_i32_0 = arith.constant 0 : i32
    %c0_i32_1 = arith.constant 0 : i32
    return %c0_i32, %c0_i32_0 : i32, i32
  }
  func.func @transform_8(%arg0: i32) -> (i32, i32) {
    %c0_i32 = arith.constant 0 : i32
    %c0_i32_0 = arith.constant 0 : i32
    %c0_i32_1 = arith.constant 0 : i32
    return %c0_i32, %c0_i32_0 : i32, i32
  }
  func.func @transform_9(%arg0: i32) -> (i32, i32) {
    %c0_i32 = arith.constant 0 : i32
    %c0_i32_0 = arith.constant 0 : i32
    %c0_i32_1 = arith.constant 0 : i32
    return %c0_i32, %c0_i32_0 : i32, i32
  }
  func.func @transform_10(%arg0: i32) -> (i32, i32) {
    %c0_i32 = arith.constant 0 : i32
    %c0_i32_0 = arith.constant 0 : i32
    %c0_i32_1 = arith.constant 0 : i32
    return %c0_i32, %c0_i32_0 : i32, i32
  }
  func.func @transform_11(%arg0: i32) -> (i32, i32) {
    %c0_i32 = arith.constant 0 : i32
    %c0_i32_0 = arith.constant 0 : i32
    %c0_i32_1 = arith.constant 0 : i32
    return %c0_i32, %c0_i32_0 : i32, i32
  }
  func.func @transform_12(%arg0: i32) -> (i32, i32, i32) {
    %c0_i32 = arith.constant 0 : i32
    %c0_i32_0 = arith.constant 0 : i32
    %c0_i32_1 = arith.constant 0 : i32
    %c0_i32_2 = arith.constant 0 : i32
    return %c0_i32, %c0_i32_0, %c0_i32_1 : i32, i32, i32
  }
  func.func @transform_13(%arg0: i32) -> (i32, i32, i32) {
    %c0_i32 = arith.constant 0 : i32
    %c0_i32_0 = arith.constant 0 : i32
    %c0_i32_1 = arith.constant 0 : i32
    %c0_i32_2 = arith.constant 0 : i32
    return %c0_i32, %c0_i32_0, %c0_i32_1 : i32, i32, i32
  }
  func.func @transform_14(%arg0: i32) -> (i32, i32, i32) {
    %c0_i32 = arith.constant 0 : i32
    %c0_i32_0 = arith.constant 0 : i32
    %c0_i32_1 = arith.constant 0 : i32
    %c0_i32_2 = arith.constant 0 : i32
    return %c0_i32, %c0_i32_0, %c0_i32_1 : i32, i32, i32
  }
  func.func @transform_15(%arg0: i32) -> (i32, i32, i32) {
    %c0_i32 = arith.constant 0 : i32
    %c0_i32_0 = arith.constant 0 : i32
    %c0_i32_1 = arith.constant 0 : i32
    %c0_i32_2 = arith.constant 0 : i32
    return %c0_i32, %c0_i32_0, %c0_i32_1 : i32, i32, i32
  }
  func.func @transform_16(%arg0: i32) -> (i32, i32, i32) {
    %c0_i32 = arith.constant 0 : i32
    %c0_i32_0 = arith.constant 0 : i32
    %c0_i32_1 = arith.constant 0 : i32
    %c0_i32_2 = arith.constant 0 : i32
    return %c0_i32, %c0_i32_0, %c0_i32_1 : i32, i32, i32
  }
  func.func @transform_17(%arg0: i32) -> (i32, i32, i32) {
    %c0_i32 = arith.constant 0 : i32
    %c0_i32_0 = arith.constant 0 : i32
    %c0_i32_1 = arith.constant 0 : i32
    %c0_i32_2 = arith.constant 0 : i32
    return %c0_i32, %c0_i32_0, %c0_i32_1 : i32, i32, i32
  }
  func.func @transform_18(%arg0: i32) -> (i32, i32, i32) {
    %c0_i32 = arith.constant 0 : i32
    %c0_i32_0 = arith.constant 0 : i32
    %c0_i32_1 = arith.constant 0 : i32
    %c0_i32_2 = arith.constant 0 : i32
    return %c0_i32, %c0_i32_0, %c0_i32_1 : i32, i32, i32
  }
  func.func @transform_19(%arg0: i32) -> (i32, i32, i32) {
    %c0_i32 = arith.constant 0 : i32
    %c0_i32_0 = arith.constant 0 : i32
    %c0_i32_1 = arith.constant 0 : i32
    %c0_i32_2 = arith.constant 0 : i32
    return %c0_i32, %c0_i32_0, %c0_i32_1 : i32, i32, i32
  }
  func.func @transform_20(%arg0: i32) -> (i32, i32, i32) {
    %c0_i32 = arith.constant 0 : i32
    %c0_i32_0 = arith.constant 0 : i32
    %c0_i32_1 = arith.constant 0 : i32
    %c0_i32_2 = arith.constant 0 : i32
    return %c0_i32, %c0_i32_0, %c0_i32_1 : i32, i32, i32
  }
  func.func @transform_21(%arg0: i32) -> (i32, i32, i32) {
    %c0_i32 = arith.constant 0 : i32
    %c0_i32_0 = arith.constant 0 : i32
    %c0_i32_1 = arith.constant 0 : i32
    %c0_i32_2 = arith.constant 0 : i32
    return %c0_i32, %c0_i32_0, %c0_i32_1 : i32, i32, i32
  }
  func.func @transform_22(%arg0: i32) -> (i32, i32, i32) {
    %c0_i32 = arith.constant 0 : i32
    %c0_i32_0 = arith.constant 0 : i32
    %c0_i32_1 = arith.constant 0 : i32
    %c0_i32_2 = arith.constant 0 : i32
    return %c0_i32, %c0_i32_0, %c0_i32_1 : i32, i32, i32
  }
  func.func @transform_23(%arg0: i32) -> (i32, i32, i32) {
    %c0_i32 = arith.constant 0 : i32
    %c0_i32_0 = arith.constant 0 : i32
    %c0_i32_1 = arith.constant 0 : i32
    %c0_i32_2 = arith.constant 0 : i32
    return %c0_i32, %c0_i32_0, %c0_i32_1 : i32, i32, i32
  }
  func.func @transform_24(%arg0: i32) -> (i32, i32) {
    %c0_i32 = arith.constant 0 : i32
    %c0_i32_0 = arith.constant 0 : i32
    %c0_i32_1 = arith.constant 0 : i32
    return %c0_i32, %c0_i32_0 : i32, i32
  }
  func.func @transform_25(%arg0: i32) -> (i32, i32) {
    %c0_i32 = arith.constant 0 : i32
    %c0_i32_0 = arith.constant 0 : i32
    %c0_i32_1 = arith.constant 0 : i32
    return %c0_i32, %c0_i32_0 : i32, i32
  }
  func.func @transform_26(%arg0: i32) -> (i32, i32) {
    %c0_i32 = arith.constant 0 : i32
    %c0_i32_0 = arith.constant 0 : i32
    %c0_i32_1 = arith.constant 0 : i32
    return %c0_i32, %c0_i32_0 : i32, i32
  }
  func.func @transform_27(%arg0: i32) -> (i32, i32) {
    %c0_i32 = arith.constant 0 : i32
    %c0_i32_0 = arith.constant 0 : i32
    %c0_i32_1 = arith.constant 0 : i32
    return %c0_i32, %c0_i32_0 : i32, i32
  }
  func.func @transform_28(%arg0: i32) -> (i32, i32, i32) {
    %c0_i32 = arith.constant 0 : i32
    %c0_i32_0 = arith.constant 0 : i32
    %c0_i32_1 = arith.constant 0 : i32
    return %arg0, %c0_i32, %c0_i32_0 : i32, i32, i32
  }
}

</mosaic_0001>

<bundles_post_ra>
// kernel: wav2vec2_forward.1
= control target key start
LH: loop header
LB: loop body
LE: loop exit
PB: predicated region body
PF: predicated region fallthrough
CT: control target
= control target key end

     0   :  { %s8123_s0 = inlined_call_operand.vmem [shape: f32[2,80,5], index: 0, kind: input, shape index: {}]   ;;  %s8124_s1 = inlined_call_operand.vmem [shape: bf16[10,32], index: 1, kind: input, shape index: {}]   ;;  %s8125_s2 = inlined_call_operand.vmem [shape: f32[1,32], index: 2, kind: input, shape index: {}]   ;;  %s8126_s3 = inlined_call_operand.vmem [shape: f32[1,32], index: 3, kind: input, shape index: {}]   ;;  %s8127_s4 = inlined_call_operand.vmem [shape: bf16[96,32], index: 4, kind: input, shape index: {}]   ;;  %s8128_s5 = inlined_call_operand.vmem [shape: bf16[64,32], index: 5, kind: input, shape index: {}]   ;;  %s8129_s6 = inlined_call_operand.vmem [shape: f32[1,32], index: 6, kind: input, shape index: {}]   ;;  %s8130_s7 = inlined_call_operand.vmem [shape: f32[1,32], index: 7, kind: input, shape index: {}]   ;;  %s8131_s8 = inlined_call_operand.vmem [shape: bf16[32,64], index: 8, kind: input, shape index: {}]   ;;  %s8132_s9 = inlined_call_operand.vmem [shape: f32[1,64], index: 9, kind: input, shape index: {}]   ;;  %s8133_s10 = inlined_call_operand.vmem [shape: bf16[192,64], index: 10, kind: input, shape index: {}]   ;;  %s8134_s11 = inlined_call_operand.vmem [shape: f32[1,64], index: 11, kind: input, shape index: {}]   ;;  %s8135_s12 = inlined_call_operand.vmem [shape: bf16[2,64,192], index: 12, kind: input, shape index: {}]   ;;  %s8136_s13 = inlined_call_operand.vmem [shape: f32[2,1,192], index: 13, kind: input, shape index: {}]   ;;  %s8137_s14 = inlined_call_operand.vmem [shape: bf16[2,64,64], index: 14, kind: input, shape index: {}]   ;;  %s8138_s15 = inlined_call_operand.vmem [shape: f32[2,1,64], index: 15, kind: input, shape index: {}]   ;;  %s8139_s16 = inlined_call_operand.vmem [shape: f32[2,1,64], index: 16, kind: input, shape index: {}]   ;;  %s8140_s17 = inlined_call_operand.vmem [shape: f32[2,1,64], index: 17, kind: input, shape index: {}]   ;;  %s8141_s18 = inlined_call_operand.vmem [shape: bf16[2,64,128], index: 18, kind: input, shape index: {}]   ;;  %s8142_s19 = inlined_call_operand.vmem [shape: f32[2,1,128], index: 19, kind: input, shape index: {}]   ;;  %s8143_s20 = inlined_call_operand.vmem [shape: bf16[2,128,64], index: 20, kind: input, shape index: {}]   ;;  %s8144_s21 = inlined_call_operand.vmem [shape: f32[2,1,64], index: 21, kind: input, shape index: {}]   ;;  %s8145_s22 = inlined_call_operand.vmem [shape: f32[2,1,64], index: 22, kind: input, shape index: {}]   ;;  %s8146_s23 = inlined_call_operand.vmem [shape: f32[2,1,64], index: 23, kind: input, shape index: {}]   ;;  %s8147_s24 = inlined_call_operand.vmem [shape: f32[1,64], index: 24, kind: input, shape index: {}]   ;;  %s8148_s25 = inlined_call_operand.vmem [shape: f32[1,64], index: 25, kind: input, shape index: {}]   ;;  %s8149_s26 = inlined_call_operand.vmem [shape: bf16[64,128], index: 26, kind: input, shape index: {}]   ;;  %s8150_s27 = inlined_call_operand.vmem [shape: f32[1,128], index: 27, kind: input, shape index: {}]   ;;  %s8151_s28 = inlined_call_operand.vmem [shape: f32[2,19,128], index: 28, kind: output, shape index: {}]  }
   0x1   :  { %8175 = sst [smem:[#allocation2_spill]] %s8123_s0 }
   0x2   :  { %8176 = sst [smem:[#allocation3_spill]] %s8124_s1 }
   0x3   :  { %8177 = sst [smem:[#allocation4_spill]] %s8125_s2 }
   0x4   :  { %8178 = sst [smem:[#allocation5_spill]] %s8126_s3 }
   0x5   :  { %8179 = sst [smem:[#allocation6_spill]] %s8127_s4 }
   0x6   :  { %8180 = sst [smem:[#allocation7_spill]] %s8128_s5 }
   0x7   :  { %8181 = sst [smem:[#allocation8_spill]] %s8129_s6 }
   0x8   :  { %8182 = sst [smem:[#allocation9_spill]] %s8130_s7 }
   0x9   :  { %8183 = sst [smem:[#allocation10_spill]] %s8131_s8  ;;  %s7010_s8 = smov 0  }
   0xa   :  { %8184 = sst [smem:[#allocation11_spill]] %s8132_s9 }
   0xb   :  { %8185 = sst [smem:[#allocation12_spill]] %s8133_s10 }
   0xc   :  { %8186 = sst [smem:[#allocation13_spill]] %s8134_s11 }
   0xd   :  { %8187 = sst [smem:[#allocation14_spill]] %s8135_s12 }
   0xe LB: > { %s5657_s5 = sadd.s32 4294967295, %s6851_s8   ;;  %p5661_p0 = scmp.ge.s32.totalorder %s6851_s8, 1  ;;  %s6851_s8 = sphi %s7010_s8, %s38_s8  }
   0xf   : > { %p762_p1 = scmp.lt.s32.totalorder %s6851_s8, 3 }
  0x11   : > { %p763_p2 = pnand %p5661_p0, %p762_p1 }
  0x12   : > { %p836_p3 = scmp.lt.s32.totalorder (!%p763_p2), %s5657_s5, 1  ;;  %s8188_s3 = sld [smem:[#allocation3_spill]] (!%p763_p2) }
  0x13   : > { %766 = sbr.rel (%p763_p2) target bundleno = 11035 (0x2b1b), region = 132  ;;  %s8189_s11 = sld [smem:[#allocation2_spill]] (!%p763_p2) }
  0x14   : > { %s6855_s2 = smov (!%p763_p2), 5   ;;  %s8190_s1 = sld [smem:[#allocation6_spill]] (!%p763_p2) }
  0x15   : > { %s8191_s7 = sld [smem:[#allocation4_spill]] (!%p763_p2)  ;;  %s8157_s10 = smov (!%p763_p2), 32  }
  0x16   : > { %s8192_s9 = sld [smem:[#allocation5_spill]] (!%p763_p2)  ;;  %s8202_s4 = smov (!%p763_p2), 32  }
  0x17   : > { %s8196_s0 = sld [smem:[#allocation9_spill]] (!%p763_p2)  ;;  %s8207_s30 = smov (!%p763_p2), 80  }
  0x18   : > { %vm956_vm0 = vcmask 1044480   ;;  %v6853_v0 = vmov 0.0   ;;  %v6572_v1 = vld [vmem:[%s8188_s3] sm:$0x1f]   ;;  %s8209_s5 = smov (!%p836_p3, %s5657_s5), 1  ;;  %vm6854_vm1 = vmmov 0  }
  0x19   : > { %6073 = vmatprep.subr.bf16.mxu0 %v6853_v0  ;;  %6095 = vmatprep.subr.bf16.mxu1 %v6853_v0  ;;  %v958_v2 = vsel %vm956_vm0, %v6572_v1, 0  ;;  %s6445_s6 = smul.u32 80, %s8209_s5  ;;  %vm867_vm2 = vcmask 1046528   ;;  %vm917_vm3 = vcmask 39936   ;;  %vm940_vm4 = vcmask 80896   ;;  %s8197_s12 = sld [smem:[#allocation12_spill]] }
  0x1a   : > { %6075 = vmatprep.mubr.msk.bf16.mxu0 %vm6854_vm1, %v6853_v0  ;;  %6107 = vmatprep.mubr.msk.bf16.mxu1 %vm6854_vm1, %v6853_v0  ;;  %vm1033_vm5 = vcmask 261120   ;;  %vm1051_vm6 = vcmask 260096   ;;  %vm1286_vm7 = vcmask 1045504   ;;  %vm1381_vm8 = vcmask 523264   ;;  %s8201_s3 = smov 64  }
  0x1b   : > { %6074 = vmatpush3.bf16.msra.mxu0 %v958_v2  ;;  %s840_s29 = scalar_lea.vmem %s8189_s11, %s6445_s6  ;;  %s8159_s6 = smov 64   ;;  %vm1433_vm9 = vcmask 785408   ;;  %vm1550_vm11 = vcmask 646144  }
  0x1c   : > { %6127 = vmatprep.subr.mxu0 %v6853_v0  ;;  %v847_v3 = vld [vmem:[%s840_s29] sm:$0xff]  ;;  %v848_v4 = vld [vmem:[%s840_s29 + $0x8] sm:$0xff]  ;;  %v849_v5 = vld [vmem:[%s840_s29 + $0x10] sm:$0xff]  ;;  %s8194_s11 = sld [smem:[#allocation10_spill]] }
  0x1d   : > { %v868_v6 = vrot.slane %v847_v3, 1  ;;  %v869_v7 = vrot.slane %v848_v4, 1  ;;  %v871_v8 = vrot.slane %v849_v5, 1  ;;  %v850_v9 = vld [vmem:[%s840_s29 + $0x18] sm:$0xff]  ;;  %v851_v10 = vld [vmem:[%s840_s29 + $0x20] sm:$0xff]  ;;  %v852_v11 = vld [vmem:[%s840_s29 + $0x28] sm:$0xff] }
  0x1e   : > { %v873_v12 = vrot.slane %v850_v9, 1  ;;  %v875_v13 = vrot.slane %v851_v10, 1  ;;  %v853_v14 = vld [vmem:[%s840_s29 + $0x30] sm:$0xff]  ;;  %v877_v15 = vrot.slane %v852_v11, 1  ;;  %v854_v16 = vld [vmem:[%s840_s29 + $0x38] sm:$0xff]  ;;  %v7035_v17 = vld [vmem:[%s840_s29 + $0x40] sm:$0xff] }
  0x1f   : > { %v870_v18 = vsel %vm867_vm2, %v868_v6, %v869_v7  ;;  %v872_v19 = vsel %vm867_vm2, %v869_v7, %v871_v8  ;;  %v879_v20 = vrot.slane %v853_v14, 1  ;;  %v881_v21 = vrot.slane %v854_v16, 1  ;;  %v856_v22 = vld [vmem:[%s840_s29 + $0x48] sm:$0xff]  ;;  %s8193_s29 = sld [smem:[#allocation7_spill]] }
  0x20   : > { %v6467_v23 = vpack.i.bf16 %v872_v19, %v870_v18  ;;  %v874_v24 = vsel %vm867_vm2, %v871_v8, %v873_v12  ;;  %v876_v25 = vsel %vm867_vm2, %v873_v12, %v875_v13  ;;  %v878_v26 = vsel %vm867_vm2, %v875_v13, %v877_v15 }
  0x21   : > { %v880_v27 = vsel %vm867_vm2, %v877_v15, %v879_v20  ;;  %v882_v28 = vsel %vm867_vm2, %v879_v20, %v881_v21  ;;  %v883_v29 = vrot.slane %v7035_v17, 1  ;;  %v6472_v30 = vpack.i.bf16 %v876_v25, %v874_v24 }
  0x22   : > { %6468 = vrot.lane.b32.xlu0 %v6467_v23, %s6855_s2  ;;  %v6477_v31 = vpack.i.bf16 %v880_v27, %v878_v26  ;;  %v885_v32 = vrot.slane %v856_v22, 1 }
  0x23   : > { %v884_v33 = vsel %vm867_vm2, %v881_v21, %v883_v29 }
  0x24   : > { %6478 = vrot.lane.b32.xlu1 %v6477_v31, %s6855_s2  ;;  %v6482_v34 = vpack.i.bf16 %v884_v33, %v882_v28  ;;  %v886_v35 = vsel %vm867_vm2, %v883_v29, %v885_v32 }
  0x25   : > { %v6487_v36 = vpack.i.bf16 %v885_v32, %v886_v35 }
  0x26   : > { %6473 = vrot.lane.b32.xlu0 %v6472_v30, %s6855_s2 }
  0x28   : > { %6483 = vrot.lane.b32.xlu1 %v6482_v34, %s6855_s2 }
  0x2a   : > { %6488 = vrot.lane.b32.xlu0 %v6487_v36, %s6855_s2  ;;  %s8171_s2 = smov 48  }
  0x94   : > { %v6469_v37 = vpop.permute.xlu0 %6468 }
  0x95   : > { %v6471_v38 = vunpack.i.h.bf16 %v6469_v37  ;;  %v6470_v39 = vunpack.i.l.bf16 %v6469_v37 }
  0x96   : > { %v6479_v48 = vpop.permute.xlu1 %6478 }
  0x97   : > { %v919_v40 = vsel %vm917_vm3, %v848_v4, %v6471_v38  ;;  %v918_v41 = vsel %vm917_vm3, %v847_v3, %v6470_v39  ;;  %v6481_v50 = vunpack.i.h.bf16 %v6479_v48  ;;  %v6480_v51 = vunpack.i.l.bf16 %v6479_v48  ;;  %v6575_v48 = vld [vmem:[%s8190_s1 + $0x18] sm:$0xff]  }
  0x98   : > { %v930_v42 = vpack.c.bf16 %v919_v40, %v918_v41  ;;  %v6474_v43 = vpop.permute.xlu0 %6473 }
  0x99   : > { %v6476_v44 = vunpack.i.h.bf16 %v6474_v43  ;;  %v6475_v45 = vunpack.i.l.bf16 %v6474_v43  ;;  %v923_v52 = vsel %vm917_vm3, %v852_v11, %v6481_v50  ;;  %v922_v53 = vsel %vm917_vm3, %v851_v10, %v6480_v51  ;;  %v6573_v43 = vld [vmem:[%s8190_s1 + $0x28] sm:$0xff]   ;;  %v6576_v51 = vld [vmem:[%s8190_s1 + $0x10] sm:$0xff]  }
  0x9a   : > { %6076 = vmatmul.mubr.msk.bf16.vlgmr.msra.gmra.mxu0 %vm940_vm4, %v930_v42  ;;  %v6484_v54 = vpop.permute.xlu1 %6483  ;;  %v932_v55 = vpack.c.bf16 %v923_v52, %v922_v53  ;;  %6096 = vmatpush3.bf16.msra.mxu1 %v6573_v43 }
  0x9b   : > { %v921_v46 = vsel %vm917_vm3, %v850_v9, %v6476_v44  ;;  %v920_v47 = vsel %vm917_vm3, %v849_v5, %v6475_v45  ;;  %6079 = vmatprep.mubr.msk.bf16.mxu0 %vm6854_vm1, %v6853_v0  ;;  %v6486_v56 = vunpack.i.h.bf16 %v6484_v54  ;;  %v6485_v57 = vunpack.i.l.bf16 %v6484_v54  ;;  %v6574_v45 = vld [vmem:[%s8190_s1 + $0x20] sm:$0xff]   ;;  %6097 = vmatprep.subr.bf16.mxu1 %v6853_v0  ;;  %v6577_v54 = vld [vmem:[%s8190_s1 + $0x8] sm:$0xff]  }
  0x9c   : > { %v931_v49 = vpack.c.bf16 %v921_v46, %v920_v47  ;;  %v6489_v60 = vpop.permute.xlu0 %6488 }
  0x9d   : > { %v925_v58 = vsel %vm917_vm3, %v854_v16, %v6486_v56  ;;  %v924_v59 = vsel %vm917_vm3, %v853_v14, %v6485_v57  ;;  %v6491_v62 = vunpack.i.h.bf16 %v6489_v60  ;;  %v6490_v63 = vunpack.i.l.bf16 %v6489_v60 }
  0x9e   : > { %v933_v61 = vpack.c.bf16 %v925_v58, %v924_v59  ;;  %6098 = vmatpush3.bf16.msra.mxu1 %v6574_v45 }
  0x9f   : > { %v927_v1 = vsel %vm917_vm3, %v856_v22, %v6491_v62  ;;  %v926_v2 = vsel %vm917_vm3, %v7035_v17, %v6490_v63  ;;  %6099 = vmatprep.subr.bf16.mxu1 %v6853_v0  ;;  %vm2101_vm3 = vcmask 1040384  }
  0xa0   : > { %v934_v3 = vpack.c.bf16 %v927_v1, %v926_v2 }
  0xa2   : > { %6080 = vmatmul.mubr.msk.bf16.gmra.mxu0 %vm940_vm4, %v931_v49  ;;  %6100 = vmatpush3.bf16.msra.mxu1 %v6575_v48 }
  0xa3   : > { %6083 = vmatprep.mubr.msk.bf16.mxu0 %vm6854_vm1, %v6853_v0  ;;  %6101 = vmatprep.subr.bf16.mxu1 %v6853_v0 }
  0xa6   : > { %6102 = vmatpush3.bf16.msra.mxu1 %v6576_v51  ;;  %v5671_v51 = vld [vmem:[%s8192_s9] ss:$0 sm:$0xff]  ;;  %s8195_s9 = sld [smem:[#allocation8_spill]] }
  0xa7   : > { %6103 = vmatprep.subr.bf16.mxu1 %v6853_v0 }
  0xaa   : > { %6084 = vmatmul.mubr.msk.bf16.gmra.mxu0 %vm940_vm4, %v932_v55  ;;  %6104 = vmatpush3.bf16.msra.mxu1 %v6577_v54 }
  0xab   : > { %6087 = vmatprep.mubr.msk.bf16.mxu0 %vm6854_vm1, %v6853_v0  ;;  %6105 = vmatprep.subr.bf16.mxu1 %v6853_v0 }
  0xb2   : > { %6088 = vmatmul.mubr.msk.bf16.gmra.mxu0 %vm940_vm4, %v933_v61 }
  0xb3   : > { %6091 = vmatprep.mubr.msk.bf16.mxu0 %vm6854_vm1, %v6853_v0 }
  0xba   : > { %6092 = vmatmul.mubr.msk.bf16.gmra.mxu0 %vm940_vm4, %v934_v3  ;;  %vm2119_vm4 = vcmask 1041408  }
  0xbb   : > { %6147 = vmatprep.mubr.msk.f32.mxu0 %vm6854_vm1, %v6853_v0 }
 0x15a   : > { %v994_v4 = vpop.f32.mrf.mxu0 }
 0x15b   : > { %v1034_v16 = vsel %vm1033_vm5, %v994_v4, 0.0 }
 0x15c   : > { %v6077_v5 = vpop.f32.mrf.mxu0 }
 0x15e   : > { %v997_v6 = vpop.f32.mrf.mxu0 }
 0x15f   : > { %v1035_v14 = vsel %vm1033_vm5, %v997_v6, 0.0 }
 0x160   : > { %v6078_v7 = vpop.f32.mrf.mxu0  ;;  %v1036_v18 = vadd.f32 %v1035_v14, %v1034_v16 }
 0x162   : > { %v1002_v8 = vpop.f32.mrf.mxu0 }
 0x163   : > { %v1037_v17 = vsel %vm1033_vm5, %v1002_v8, 0.0 }
 0x164   : > { %v6081_v9 = vpop.f32.mrf.mxu0  ;;  %v1038_v21 = vadd.f32 %v1037_v17, %v1036_v18 }
 0x166   : > { %v1005_v10 = vpop.f32.mrf.mxu0 }
 0x167   : > { %v1039_v20 = vsel %vm1033_vm5, %v1005_v10, 0.0 }
 0x168   : > { %v6082_v11 = vpop.f32.mrf.mxu0  ;;  %v1040_v24 = vadd.f32 %v1039_v20, %v1038_v21 }
 0x16a   : > { %v1010_v12 = vpop.f32.mrf.mxu0 }
 0x16b   : > { %v1041_v23 = vsel %vm1033_vm5, %v1010_v12, 0.0 }
 0x16c   : > { %v6085_v13 = vpop.f32.mrf.mxu0  ;;  %v1042_v27 = vadd.f32 %v1041_v23, %v1040_v24 }
 0x16e   : > { %v1013_v15 = vpop.f32.mrf.mxu0 }
 0x16f   : > { %v1043_v26 = vsel %vm1033_vm5, %v1013_v15, 0.0 }
 0x170   : > { %v6086_v19 = vpop.f32.mrf.mxu0  ;;  %v1044_v30 = vadd.f32 %v1043_v26, %v1042_v27 }
 0x172   : > { %v1018_v22 = vpop.f32.mrf.mxu0 }
 0x173   : > { %v1045_v29 = vsel %vm1033_vm5, %v1018_v22, 0.0 }
 0x174   : > { %v6089_v25 = vpop.f32.mrf.mxu0  ;;  %v1046_v33 = vadd.f32 %v1045_v29, %v1044_v30 }
 0x176   : > { %v1021_v28 = vpop.f32.mrf.mxu0 }
 0x177   : > { %v1047_v32 = vsel %vm1033_vm5, %v1021_v28, 0.0 }
 0x178   : > { %v6090_v31 = vpop.f32.mrf.mxu0  ;;  %v1048_v36 = vadd.f32 %v1047_v32, %v1046_v33 }
 0x17a   : > { %v1026_v34 = vpop.f32.mrf.mxu0 }
 0x17b   : > { %v1049_v35 = vsel %vm1033_vm5, %v1026_v34, 0.0 }
 0x17c   : > { %v6093_v37 = vpop.f32.mrf.mxu0  ;;  %v1050_v38 = vadd.f32 %v1049_v35, %v1048_v36 }
 0x17e   : > { %v1029_v39 = vpop.f32.mrf.mxu0 }
 0x17f   : > { %v1052_v40 = vsel %vm1051_vm6, %v1029_v39, 0.0 }
 0x180   : > { %v1053_v41 = vadd.f32 %v1052_v40, %v1050_v38  ;;  %v6094_v42 = vpop.f32.mrf.mxu0  ;;  %v5670_v40 = vld [vmem:[%s8191_s7] ss:$0 sm:$0xff]  ;;  %s8169_s7 = smov 112  }
 0x182   : > { %v1054_v44 = vrot.slane %v1053_v41, 4 }
 0x184   : > { %v1055_v46 = vadd.f32 %v1054_v44, %v1053_v41 }
 0x186   : > { %v1056_v47 = vrot.slane %v1055_v46, 2 }
 0x188   : > { %v1057_v49 = vadd.f32 %v1056_v47, %v1055_v46 }
 0x18a   : > { %v1058_v50 = vrot.slane %v1057_v49, 1 }
 0x18c   : > { %v1059_v52 = vadd.f32 %v1058_v50, %v1057_v49 }
 0x18e   : > { %v1061_v53 = vmul.f32 0.012658228, %v1059_v52 }
 0x190   : > { %v1062_v55 = vsub.f32 %v994_v4, %v1061_v53  ;;  %v1063_v56 = vsub.f32 %v997_v6, %v1061_v53  ;;  %v1064_v57 = vsub.f32 %v1002_v8, %v1061_v53  ;;  %v1065_v58 = vsub.f32 %v1005_v10, %v1061_v53 }
 0x191   : > { %v1066_v61 = vsub.f32 %v1010_v12, %v1061_v53  ;;  %v1067_v63 = vsub.f32 %v1013_v15, %v1061_v53  ;;  %v1068_v4 = vsub.f32 %v1018_v22, %v1061_v53  ;;  %v1069_v9 = vsub.f32 %v1021_v28, %v1061_v53 }
 0x192   : > { %v1072_v59 = vmul.f32 %v1062_v55, %v1062_v55  ;;  %v1073_v60 = vmul.f32 %v1063_v56, %v1063_v56  ;;  %v1074_v62 = vmul.f32 %v1064_v57, %v1064_v57  ;;  %v1075_v1 = vmul.f32 %v1065_v58, %v1065_v58 }
 0x193   : > { %v1076_v6 = vmul.f32 %v1066_v61, %v1066_v61  ;;  %v1077_v10 = vmul.f32 %v1067_v63, %v1067_v63  ;;  %v1070_v13 = vsub.f32 %v1026_v34, %v1061_v53  ;;  %v1078_v14 = vmul.f32 %v1068_v4, %v1068_v4 }
 0x194   : > { %v1082_v2 = vsel %vm1033_vm5, %v1072_v59, 0.0  ;;  %v1083_v3 = vsel %vm1033_vm5, %v1073_v60, 0.0  ;;  %v1085_v7 = vsel %vm1033_vm5, %v1074_v62, 0.0  ;;  %v1087_v11 = vsel %vm1033_vm5, %v1075_v1, 0.0 }
 0x195   : > { %v1084_v5 = vadd.f32 %v1083_v3, %v1082_v2  ;;  %v1089_v15 = vsel %vm1033_vm5, %v1076_v6, 0.0  ;;  %v1071_v17 = vsub.f32 %v1029_v39, %v1061_v53  ;;  %v1079_v18 = vmul.f32 %v1069_v9, %v1069_v9 }
 0x196   : > { %v1091_v19 = vsel %vm1033_vm5, %v1077_v10, 0.0  ;;  %v1080_v21 = vmul.f32 %v1070_v13, %v1070_v13  ;;  %v1093_v22 = vsel %vm1033_vm5, %v1078_v14, 0.0 }
 0x197   : > { %v1086_v8 = vadd.f32 %v1085_v7, %v1084_v5  ;;  %v1081_v24 = vmul.f32 %v1071_v17, %v1071_v17  ;;  %v1095_v25 = vsel %vm1033_vm5, %v1079_v18, 0.0 }
 0x198   : > { %v1097_v27 = vsel %vm1033_vm5, %v1080_v21, 0.0 }
 0x199   : > { %v1088_v12 = vadd.f32 %v1087_v11, %v1086_v8  ;;  %v1099_v29 = vsel %vm1051_vm6, %v1081_v24, 0.0  ;;  %vm2563_vm6 = vcmask 149504  }
 0x19b   : > { %v1090_v16 = vadd.f32 %v1089_v15, %v1088_v12 }
 0x19d   : > { %v1092_v20 = vadd.f32 %v1091_v19, %v1090_v16 }
 0x19f   : > { %v1094_v23 = vadd.f32 %v1093_v22, %v1092_v20 }
 0x1a1   : > { %v1096_v26 = vadd.f32 %v1095_v25, %v1094_v23 }
 0x1a3   : > { %v1098_v28 = vadd.f32 %v1097_v27, %v1096_v26 }
 0x1a5   : > { %v1100_v30 = vadd.f32 %v1099_v29, %v1098_v28 }
 0x1a7   : > { %v1101_v31 = vrot.slane %v1100_v30, 4 }
 0x1a9   : > { %v1102_v32 = vadd.f32 %v1101_v31, %v1100_v30 }
 0x1ab   : > { %v1103_v33 = vrot.slane %v1102_v32, 2 }
 0x1ad   : > { %v1104_v34 = vadd.f32 %v1103_v33, %v1102_v32 }
 0x1af   : > { %v1105_v35 = vrot.slane %v1104_v34, 1 }
 0x1b1   : > { %v1106_v36 = vadd.f32 %v1105_v35, %v1104_v34 }
 0x1b3   : > { %v1107_v37 = vmul.f32 0.012658228, %v1106_v36 }
 0x1b5   : > { %v1108_v38 = vadd.f32 1e-05, %v1107_v37 }
 0x1b7   : > { %6657 = vrsqrt.f32 %v1108_v38 }
 0x1c4   : > { %v6658_v39 = vpop.eup %6657 }
 0x1c5   : > { %v1110_v41 = vmul.f32 %v6658_v39, %v1062_v55  ;;  %v1111_v42 = vmul.f32 %v6658_v39, %v1063_v56  ;;  %v1112_v43 = vmul.f32 %v6658_v39, %v1064_v57  ;;  %v1113_v44 = vmul.f32 %v6658_v39, %v1065_v58 }
 0x1c6   : > { %v1114_v45 = vmul.f32 %v6658_v39, %v1066_v61  ;;  %v1115_v46 = vmul.f32 %v6658_v39, %v1067_v63  ;;  %v1116_v47 = vmul.f32 %v6658_v39, %v1068_v4  ;;  %v1117_v48 = vmul.f32 %v6658_v39, %v1069_v9 }
 0x1c7   : > { %v1119_v49 = vmul.f32 %v6658_v39, %v1071_v17  ;;  %v1127_v50 = vmul.f32 %v5670_v40, %v1110_v41  ;;  %v1128_v52 = vmul.f32 %v5670_v40, %v1111_v42  ;;  %v1129_v53 = vmul.f32 %v5670_v40, %v1112_v43 }
 0x1c8   : > { %v1130_v54 = vmul.f32 %v5670_v40, %v1113_v44  ;;  %v1131_v59 = vmul.f32 %v5670_v40, %v1114_v45  ;;  %v1132_v60 = vmul.f32 %v5670_v40, %v1115_v46  ;;  %v1118_v55 = vmul.f32 %v6658_v39, %v1070_v13 }
 0x1c9   : > { %v1136_v62 = vmul.f32 %v5670_v40, %v1119_v49  ;;  %v1133_v56 = vmul.f32 %v5670_v40, %v1116_v47  ;;  %v7121_v58 = vadd.f32 %v5671_v51, %v1127_v50  ;;  %v1134_v61 = vmul.f32 %v5670_v40, %v1117_v48 }
 0x1ca   : > { %v7119_v57 = vadd.f32 %v5671_v51, %v1130_v54  ;;  %v7123_v63 = vadd.f32 %v5671_v51, %v1131_v59  ;;  %v7127_v2 = vadd.f32 %v5671_v51, %v1128_v52  ;;  %v7129_v3 = vadd.f32 %v5671_v51, %v1129_v53 }
 0x1cb   : > { %v7125_v1 = vadd.f32 %v5671_v51, %v1136_v62  ;;  %v1164_v5 = vmul.f32 0.044715, %v7121_v58  ;;  %v7132_v4 = vadd.f32 %v5671_v51, %v1132_v60  ;;  %v1135_v7 = vmul.f32 %v5670_v40, %v1118_v55 }
 0x1cc   : > { %v1167_v6 = vmul.f32 0.044715, %v7119_v57  ;;  %v7135_v8 = vadd.f32 %v5671_v51, %v1133_v56  ;;  %v1165_v9 = vmul.f32 0.044715, %v7127_v2  ;;  %v1166_v10 = vmul.f32 0.044715, %v7129_v3 }
 0x1cd   : > { %v1174_v11 = vmul.f32 %v1164_v5, %v7121_v58  ;;  %v1168_v12 = vmul.f32 0.044715, %v7123_v63  ;;  %v7142_v14 = vadd.f32 %v5671_v51, %v1134_v61  ;;  %v1173_v15 = vmul.f32 0.044715, %v7125_v1 }
 0x1ce   : > { %v1177_v13 = vmul.f32 %v1167_v6, %v7119_v57  ;;  %v1175_v16 = vmul.f32 %v1165_v9, %v7127_v2  ;;  %v1176_v17 = vmul.f32 %v1166_v10, %v7129_v3  ;;  %v1169_v21 = vmul.f32 0.044715, %v7132_v4  ;;  %v6578_v9 = vld [vmem:[%s8190_s1] sm:$0xff]  }
 0x1cf   : > { %v1184_v18 = vmul.f32 %v1174_v11, %v7121_v58  ;;  %v1178_v19 = vmul.f32 %v1168_v12, %v7123_v63  ;;  %v7151_v22 = vadd.f32 %v5671_v51, %v1135_v7  ;;  %v1170_v25 = vmul.f32 0.044715, %v7135_v8  ;;  %6106 = vmatpush3.bf16.msra.mxu1 %v6578_v9 }
 0x1d0   : > { %v1187_v20 = vmul.f32 %v1177_v13, %v7119_v57  ;;  %v1185_v23 = vmul.f32 %v1175_v16, %v7127_v2  ;;  %v1186_v24 = vmul.f32 %v1176_v17, %v7129_v3  ;;  %v1179_v29 = vmul.f32 %v1169_v21, %v7132_v4  ;;  %6182 = vmatprep.subr.mxu1 %v6853_v0 }
 0x1d1   : > { %v1194_v26 = vadd.f32 %v1184_v18, %v7121_v58  ;;  %v1188_v27 = vmul.f32 %v1178_v19, %v7123_v63  ;;  %v1183_v30 = vmul.f32 %v1173_v15, %v7125_v1  ;;  %v1180_v33 = vmul.f32 %v1170_v25, %v7135_v8 }
 0x1d2   : > { %v1197_v28 = vadd.f32 %v1187_v20, %v7119_v57  ;;  %v1195_v31 = vadd.f32 %v1185_v23, %v7127_v2  ;;  %v1196_v32 = vadd.f32 %v1186_v24, %v7129_v3  ;;  %v1189_v37 = vmul.f32 %v1179_v29, %v7132_v4 }
 0x1d3   : > { %v1204_v34 = vmul.f32 0.7978846, %v1194_v26  ;;  %v1198_v35 = vadd.f32 %v1188_v27, %v7123_v63  ;;  %v1190_v40 = vmul.f32 %v1180_v33, %v7135_v8  ;;  %v1171_v41 = vmul.f32 0.044715, %v7142_v14 }
 0x1d4   : > { %v1207_v36 = vmul.f32 0.7978846, %v1197_v28  ;;  %v1205_v38 = vmul.f32 0.7978846, %v1195_v31  ;;  %v1206_v39 = vmul.f32 0.7978846, %v1196_v32  ;;  %v1199_v43 = vadd.f32 %v1189_v37, %v7132_v4 }
 0x1d5   : > { %6659 = vtanh.f32 %v1204_v34  ;;  %v1208_v42 = vmul.f32 0.7978846, %v1198_v35  ;;  %v1172_v44 = vmul.f32 0.044715, %v7151_v22  ;;  %v1200_v45 = vadd.f32 %v1190_v40, %v7135_v8 }
 0x1d6   : > { %6661 = vtanh.f32 %v1205_v38  ;;  %v1181_v46 = vmul.f32 %v1171_v41, %v7142_v14  ;;  %v1209_v47 = vmul.f32 0.7978846, %v1199_v43  ;;  %v1193_v49 = vmul.f32 %v1183_v30, %v7125_v1 }
 0x1d7   : > { %6663 = vtanh.f32 %v1206_v39  ;;  %v1182_v48 = vmul.f32 %v1172_v44, %v7151_v22  ;;  %v1210_v50 = vmul.f32 0.7978846, %v1200_v45  ;;  %v1154_v5 = vmul.f32 0.5, %v7121_v58 }
 0x1d8   : > { %6665 = vtanh.f32 %v1207_v36  ;;  %v1191_v51 = vmul.f32 %v1181_v46, %v7142_v14  ;;  %v1203_v53 = vadd.f32 %v1193_v49, %v7125_v1  ;;  %v1157_v7 = vmul.f32 0.5, %v7119_v57 }
 0x1d9   : > { %6667 = vtanh.f32 %v1208_v42  ;;  %v1192_v52 = vmul.f32 %v1182_v48, %v7151_v22  ;;  %v1155_v11 = vmul.f32 0.5, %v7127_v2  ;;  %v1156_v12 = vmul.f32 0.5, %v7129_v3 }
 0x1da   : > { %6669 = vtanh.f32 %v1209_v47  ;;  %v1201_v54 = vadd.f32 %v1191_v51, %v7142_v14  ;;  %v1213_v62 = vmul.f32 0.7978846, %v1203_v53  ;;  %v1158_v15 = vmul.f32 0.5, %v7123_v63 }
 0x1db   : > { %6671 = vtanh.f32 %v1210_v50  ;;  %v1202_v59 = vadd.f32 %v1192_v52, %v7151_v22  ;;  %v1159_v58 = vmul.f32 0.5, %v7132_v4  ;;  %v1160_v57 = vmul.f32 0.5, %v7135_v8 }
 0x1dc   : > { %v1211_v60 = vmul.f32 0.7978846, %v1201_v54  ;;  %v1161_v2 = vmul.f32 0.5, %v7142_v14  ;;  %v1162_v3 = vmul.f32 0.5, %v7151_v22  ;;  %v1163_v54 = vmul.f32 0.5, %v7125_v1 }
 0x1dd   : > { %v1212_v55 = vmul.f32 0.7978846, %v1202_v59 }
 0x1de   : > { %6673 = vtanh.f32 %v1211_v60 }
 0x1df   : > { %6675 = vtanh.f32 %v1212_v55 }
 0x1e0   : > { %6677 = vtanh.f32 %v1213_v62 }
 0x1e2   : > { %v6660_v56 = vpop.eup %6659 }
 0x1e3   : > { %v6662_v61 = vpop.eup %6661  ;;  %v1224_v6 = vadd.f32 1.0, %v6660_v56 }
 0x1e4   : > { %v6664_v10 = vpop.eup %6663  ;;  %v1225_v13 = vadd.f32 1.0, %v6662_v61 }
 0x1e5   : > { %v6666_v16 = vpop.eup %6665  ;;  %v1226_v17 = vadd.f32 1.0, %v6664_v10  ;;  %v7187_v18 = vmul.f32 %v1224_v6, %v1154_v5 }
 0x1e6   : > { %v6668_v19 = vpop.eup %6667  ;;  %v7191_v20 = vmul.f32 %v1225_v13, %v1155_v11  ;;  %v1227_v21 = vadd.f32 1.0, %v6666_v16 }
 0x1e7   : > { %v6670_v63 = vpop.eup %6669  ;;  %v7196_v23 = vmul.f32 %v1226_v17, %v1156_v12  ;;  %v1288_v24 = vrot.slane %v7187_v18, 2  ;;  %v1266_v4 = vrot.slane %v7187_v18, 1  ;;  %v1228_v25 = vadd.f32 1.0, %v6668_v19 }
 0x1e8   : > { %v6672_v8 = vpop.eup %6671  ;;  %v1289_v26 = vrot.slane %v7191_v20, 2  ;;  %v1267_v27 = vrot.slane %v7191_v20, 1  ;;  %v7202_v28 = vmul.f32 %v1227_v21, %v1157_v7  ;;  %v1229_v14 = vadd.f32 1.0, %v6670_v63 }
 0x1e9   : > { %v1291_v22 = vrot.slane %v7196_v23, 2  ;;  %v1269_v29 = vrot.slane %v7196_v23, 1  ;;  %v7206_v30 = vmul.f32 %v1228_v25, %v1158_v15  ;;  %v1230_v31 = vadd.f32 1.0, %v6672_v8 }
 0x1ea   : > { %v1290_v32 = vsel %vm1286_vm7, %v1288_v24, %v1289_v26  ;;  %v1268_v33 = vsel %vm867_vm2, %v1266_v4, %v1267_v27  ;;  %v1293_v34 = vrot.slane %v7202_v28, 2  ;;  %v1271_v35 = vrot.slane %v7202_v28, 1 }
 0x1eb   : > { %v6674_v36 = vpop.eup %6673  ;;  %v1292_v37 = vsel %vm1286_vm7, %v1289_v26, %v1291_v22  ;;  %v1270_v38 = vsel %vm867_vm2, %v1267_v27, %v1269_v29  ;;  %v1295_v39 = vrot.slane %v7206_v30, 2  ;;  %v1273_v40 = vrot.slane %v7206_v30, 1 }
 0x1ec   : > { %v6676_v41 = vpop.eup %6675  ;;  %v6497_v42 = vpack.i.bf16 %v1292_v37, %v1290_v32  ;;  %v6492_v43 = vpack.i.bf16 %v1270_v38, %v1268_v33  ;;  %v1294_v44 = vsel %vm1286_vm7, %v1291_v22, %v1293_v34  ;;  %v1272_v45 = vsel %vm867_vm2, %v1269_v29, %v1271_v35 }
 0x1ed   : > { %v6678_v46 = vpop.eup %6677  ;;  %v1296_v47 = vsel %vm1286_vm7, %v1293_v34, %v1295_v39  ;;  %v1274_v48 = vsel %vm867_vm2, %v1271_v35, %v1273_v40  ;;  %v7220_v49 = vmul.f32 %v1229_v14, %v1159_v58  ;;  %v7222_v50 = vmul.f32 %v1230_v31, %v1160_v57 }
 0x1ee   : > { %6498 = vrot.lane.b32.xlu0 %v6497_v42, %s8159_s6  ;;  %6493 = vrot.lane.b32.xlu1 %v6492_v43, %s8157_s10  ;;  %v6507_v51 = vpack.i.bf16 %v1296_v47, %v1294_v44  ;;  %v1231_v52 = vadd.f32 1.0, %v6674_v36  ;;  %v1232_v53 = vadd.f32 1.0, %v6676_v41  ;;  %v6502_v56 = vpack.i.bf16 %v1274_v48, %v1272_v45 }
 0x1ef   : > { %v1297_v59 = vrot.slane %v7220_v49, 2  ;;  %v1299_v60 = vrot.slane %v7222_v50, 2  ;;  %v1275_v62 = vrot.slane %v7220_v49, 1  ;;  %v1277_v55 = vrot.slane %v7222_v50, 1 }
 0x1f0   : > { %v7231_v61 = vmul.f32 %v1231_v52, %v1161_v2  ;;  %v7233_v5 = vmul.f32 %v1232_v53, %v1162_v3  ;;  %v1233_v6 = vadd.f32 1.0, %v6678_v46 }
 0x1f1   : > { %v1298_v7 = vsel %vm1286_vm7, %v1295_v39, %v1297_v59  ;;  %v1300_v9 = vsel %vm1286_vm7, %v1297_v59, %v1299_v60  ;;  %v1276_v1 = vsel %vm867_vm2, %v1273_v40, %v1275_v62  ;;  %v1278_v10 = vsel %vm867_vm2, %v1275_v62, %v1277_v55 }
 0x1f2   : > { %6508 = vrot.lane.b32.xlu0 %v6507_v51, %s8159_s6  ;;  %6503 = vrot.lane.b32.xlu1 %v6502_v56, %s8157_s10  ;;  %v1301_v11 = vrot.slane %v7231_v61, 2  ;;  %v1303_v12 = vrot.slane %v7233_v5, 2  ;;  %v1279_v13 = vrot.slane %v7231_v61, 1  ;;  %v1281_v15 = vrot.slane %v7233_v5, 1 }
 0x1f3   : > { %v7245_v16 = vmul.f32 %v1233_v6, %v1163_v54  ;;  %v6517_v17 = vpack.i.bf16 %v1300_v9, %v1298_v7  ;;  %v6512_v58 = vpack.i.bf16 %v1278_v10, %v1276_v1 }
 0x1f4   : > { %v1302_v57 = vsel %vm1286_vm7, %v1299_v60, %v1301_v11  ;;  %v1304_v19 = vsel %vm1286_vm7, %v1301_v11, %v1303_v12  ;;  %v1280_v21 = vsel %vm867_vm2, %v1277_v55, %v1279_v13  ;;  %v1282_v2 = vsel %vm867_vm2, %v1279_v13, %v1281_v15 }
 0x1f5   : > { %v1305_v3 = vrot.slane %v7245_v16, 2  ;;  %v1283_v63 = vrot.slane %v7245_v16, 1  ;;  %v6527_v24 = vpack.i.bf16 %v1304_v19, %v1302_v57  ;;  %v6522_v4 = vpack.i.bf16 %v1282_v2, %v1280_v21 }
 0x1f6   : > { %6518 = vrot.lane.b32.xlu0 %v6517_v17, %s8159_s6  ;;  %6513 = vrot.lane.b32.xlu1 %v6512_v58, %s8157_s10 }
 0x1f7   : > { %v1306_v25 = vsel %vm1286_vm7, %v1303_v12, %v1305_v3  ;;  %v1308_v8 = vsel %vm956_vm0, %v1305_v3, 0.0  ;;  %v1284_v26 = vsel %vm867_vm2, %v1281_v15, %v1283_v63  ;;  %v1287_v27 = vsel %vm1286_vm7, %v1283_v63, 0.0 }
 0x1f8   : > { %v6537_v14 = vpack.i.bf16 %v1308_v8, %v1306_v25  ;;  %v6532_v22 = vpack.i.bf16 %v1287_v27, %v1284_v26  ;;  %vm1841_vm0 = vcmask 318464  }
 0x1fa   : > { %6528 = vrot.lane.b32.xlu0 %v6527_v24, %s8159_s6  ;;  %6523 = vrot.lane.b32.xlu1 %v6522_v4, %s8157_s10 }
 0x1fe   : > { %6538 = vrot.lane.b32.xlu0 %v6537_v14, %s8159_s6  ;;  %6533 = vrot.lane.b32.xlu1 %v6532_v22, %s8157_s10 }
 0x260   : > { %v6499_v29 = vpop.permute.xlu0 %6498  ;;  %v6494_v31 = vpop.permute.xlu1 %6493 }
 0x261   : > { %v6501_v32 = vunpack.i.h.bf16 %v6499_v29  ;;  %v6500_v33 = vunpack.i.l.bf16 %v6499_v29  ;;  %v6496_v34 = vunpack.i.h.bf16 %v6494_v31  ;;  %v6495_v35 = vunpack.i.l.bf16 %v6494_v31 }
 0x263   : > { %v1372_v36 = vsel %vm1033_vm5, %v7191_v20, %v6496_v34  ;;  %v1371_v37 = vsel %vm1033_vm5, %v7187_v18, %v6495_v35 }
 0x264   : > { %v6509_v38 = vpop.permute.xlu0 %6508  ;;  %v6504_v39 = vpop.permute.xlu1 %6503  ;;  %v1382_v40 = vsel %vm1381_vm8, %v1371_v37, %v6500_v33  ;;  %v1383_v41 = vsel %vm1381_vm8, %v1372_v36, %v6501_v32 }
 0x265   : > { %v6506_v42 = vunpack.i.h.bf16 %v6504_v39  ;;  %v6505_v43 = vunpack.i.l.bf16 %v6504_v39  ;;  %v1392_v44 = vpack.c.bf16 %v1383_v41, %v1382_v40  ;;  %v6511_v45 = vunpack.i.h.bf16 %v6509_v38 }
 0x266   : > { %v6510_v46 = vunpack.i.l.bf16 %v6509_v38 }
 0x267   : > { %v1374_v47 = vsel %vm1033_vm5, %v7202_v28, %v6506_v42  ;;  %v1373_v20 = vsel %vm1033_vm5, %v7196_v23, %v6505_v43  ;;  %6108 = vmatmul.mubr.msk.bf16.vlgmr.msra.gmra.mxu1 %vm1433_vm9, %v1392_v44  ;;  %v1522_v42 = vlaneseq }
 0x268   : > { %v6514_v18 = vpop.permute.xlu1 %6513  ;;  %6111 = vmatprep.mubr.msk.bf16.mxu1 %vm6854_vm1, %v6853_v0  ;;  %v1384_v48 = vsel %vm1381_vm8, %v1373_v20, %v6510_v46  ;;  %v1385_v51 = vsel %vm1381_vm8, %v1374_v47, %v6511_v45  ;;  %v6519_v52 = vpop.permute.xlu0 %6518 }
 0x269   : > { %v6516_v53 = vunpack.i.h.bf16 %v6514_v18  ;;  %v6515_v54 = vunpack.i.l.bf16 %v6514_v18  ;;  %v1393_v59 = vpack.c.bf16 %v1385_v51, %v1384_v48  ;;  %v6521_v60 = vunpack.i.h.bf16 %v6519_v52 }
 0x26a   : > { %v6520_v62 = vunpack.i.l.bf16 %v6519_v52  ;;  %v7312_v43 = vshrl.u32 %v1522_v42, 7  ;;  %v1529_v44 = vand.u32 127, %v1522_v42  ;;  %v6582_v42 = vld [vmem:[%s8193_s29] sm:$0xff]  }
 0x26b   : > { %v1376_v28 = vsel %vm1033_vm5, %v7220_v49, %v6516_v53  ;;  %v1375_v23 = vsel %vm1033_vm5, %v7206_v30, %v6515_v54 }
 0x26c   : > { %v6524_v55 = vpop.permute.xlu1 %6523  ;;  %v1386_v56 = vsel %vm1381_vm8, %v1375_v23, %v6520_v62  ;;  %v1387_v6 = vsel %vm1381_vm8, %v1376_v28, %v6521_v60  ;;  %v6529_v7 = vpop.permute.xlu0 %6528  ;;  %v1530_v45 = vmul.u32 2, %v7312_v43  ;;  %v1524_v46 = vadd.s32 8, %v7312_v43  ;;  %v6579_v23 = vld [vmem:[%s8193_s29 + $0x18] sm:$0xff]  }
 0x26d   : > { %v6526_v9 = vunpack.i.h.bf16 %v6524_v55  ;;  %v6525_v1 = vunpack.i.l.bf16 %v6524_v55  ;;  %v1394_v10 = vpack.c.bf16 %v1387_v6, %v1386_v56  ;;  %v6531_v11 = vunpack.i.h.bf16 %v6529_v7  ;;  %v6580_v55 = vld [vmem:[%s8193_s29 + $0x10] sm:$0xff]   ;;  %v6581_v56 = vld [vmem:[%s8193_s29 + $0x8] sm:$0xff]  }
 0x26e   : > { %v6530_v12 = vunpack.i.l.bf16 %v6529_v7  ;;  %vm1535_vm10 = vcmp.eq.s32.totalorder %v1529_v44, %v1530_v45  ;;  %v1531_v47 = vmul.u32 2, %v1524_v46  ;;  %v1525_v20 = vadd.s32 16, %v7312_v43 }
 0x26f   : > { %6112 = vmatmul.mubr.msk.bf16.gmra.mxu1 %vm1433_vm9, %v1393_v59  ;;  %v1378_v49 = vsel %vm1033_vm5, %v7231_v61, %v6526_v9  ;;  %v1377_v30 = vsel %vm1033_vm5, %v7222_v50, %v6525_v1  ;;  %v7323_v18 = vsel %vm1535_vm10, 1.0, %v6853_v0  ;;  %v1526_v51 = vadd.s32 24, %v7312_v43 }
 0x270   : > { %6115 = vmatprep.mubr.msk.bf16.mxu1 %vm6854_vm1, %v6853_v0  ;;  %v6534_v13 = vpop.permute.xlu1 %6533  ;;  %v1388_v15 = vsel %vm1381_vm8, %v1377_v30, %v6530_v12  ;;  %v1389_v17 = vsel %vm1381_vm8, %v1378_v49, %v6531_v11  ;;  %v6539_v58 = vpop.permute.xlu0 %6538  ;;  %vm1536_vm12 = vcmp.eq.s32.totalorder %v1529_v44, %v1531_v47  ;;  %v1532_v48 = vmul.u32 2, %v1525_v20 }
 0x271   : > { %v6536_v57 = vunpack.i.h.bf16 %v6534_v13  ;;  %v6535_v19 = vunpack.i.l.bf16 %v6534_v13  ;;  %v1395_v21 = vpack.c.bf16 %v1389_v17, %v1388_v15  ;;  %v6541_v2 = vunpack.i.h.bf16 %v6539_v58 }
 0x272   : > { %v6540_v3 = vunpack.i.l.bf16 %v6539_v58  ;;  %v7333_v52 = vsel %vm1536_vm12, 1.0, %v6853_v0  ;;  %vm1537_vm13 = vcmp.eq.s32.totalorder %v1529_v44, %v1532_v48  ;;  %v1533_v53 = vmul.u32 2, %v1526_v51 }
 0x273   : > { %v1380_v61 = vsel %vm1033_vm5, %v7245_v16, %v6536_v57  ;;  %v1379_v50 = vsel %vm1033_vm5, %v7233_v5, %v6535_v19  ;;  %v1527_v54 = vadd.s32 32, %v7312_v43  ;;  %v7341_v59 = vsel %vm1537_vm13, 1.0, %v6853_v0 }
 0x274   : > { %v1390_v63 = vsel %vm1381_vm8, %v1379_v50, %v6540_v3  ;;  %v1391_v24 = vsel %vm1381_vm8, %v1380_v61, %v6541_v2  ;;  %vm1538_vm14 = vcmp.eq.s32.totalorder %v1529_v44, %v1533_v53 }
 0x275   : > { %v1396_v4 = vpack.c.bf16 %v1391_v24, %v1390_v63  ;;  %v1534_v60 = vmul.u32 2, %v1527_v54  ;;  %v5686_v62 = vsel %vm1538_vm14, 1.0, %v6853_v0 }
 0x277   : > { %6116 = vmatmul.mubr.msk.bf16.gmra.mxu1 %vm1433_vm9, %v1394_v10  ;;  %vm1539_vm15 = vcmp.eq.s32.totalorder %v1529_v44, %v1534_v60 }
 0x278   : > { %6119 = vmatprep.mubr.msk.bf16.mxu1 %vm6854_vm1, %v6853_v0  ;;  %v5687_v28 = vsel %vm1539_vm15, 1.0, %v6853_v0 }
 0x27f   : > { %6120 = vmatmul.mubr.msk.bf16.gmra.mxu1 %vm1433_vm9, %v1395_v21 }
 0x280   : > { %6123 = vmatprep.mubr.msk.bf16.mxu1 %vm6854_vm1, %v6853_v0 }
 0x287   : > { %6124 = vmatmul.mubr.msk.bf16.gmra.mxu1 %vm1433_vm9, %v1396_v4 }
 0x288   : > { %6192 = vmatprep.mubr.msk.f32.mxu1 %vm6854_vm1, %v6853_v0 }
 0x327   : > { %v1483_v25 = vpop.f32.mrf.mxu1 }
 0x329   : > { %v6109_v16 = vpop.f32.mrf.mxu1 }
 0x32b   : > { %v1486_v8 = vpop.f32.mrf.mxu1 }
 0x32d   : > { %v6110_v26 = vpop.f32.mrf.mxu1 }
 0x32f   : > { %v1491_v5 = vpop.f32.mrf.mxu1 }
 0x331   : > { %v6113_v27 = vpop.f32.mrf.mxu1 }
 0x333   : > { %v1494_v14 = vpop.f32.mrf.mxu1 }
 0x335   : > { %v6114_v22 = vpop.f32.mrf.mxu1 }
 0x337   : > { %v1499_v29 = vpop.f32.mrf.mxu1 }
 0x339   : > { %v6117_v31 = vpop.f32.mrf.mxu1 }
 0x33b   : > { %v1502_v32 = vpop.f32.mrf.mxu1 }
 0x33d   : > { %v6118_v33 = vpop.f32.mrf.mxu1 }
 0x33f   : > { %v1507_v34 = vpop.f32.mrf.mxu1 }
 0x341   : > { %v6121_v35 = vpop.f32.mrf.mxu1 }
 0x343   : > { %v1510_v36 = vpop.f32.mrf.mxu1 }
 0x345   : > { %v6122_v37 = vpop.f32.mrf.mxu1 }
 0x347   : > { %v1515_v38 = vpop.f32.mrf.mxu1 }
 0x349   : > { %v6125_v39 = vpop.f32.mrf.mxu1 }
 0x34b   : > { %v1518_v40 = vpop.f32.mrf.mxu1 }
 0x34c   : > { %6128 = vmatpush3.msk.msra.mxu0 %vm867_vm2, %v1518_v40 }
 0x34d   : > { %v6126_v41 = vpop.f32.mrf.mxu1  ;;  %6129 = vmatprep.subr.mxu0 %v6853_v0 }
 0x34e   : > { %6130 = vmatpush3.msra.mxu0 %v1515_v38 }
 0x34f   : > { %6131 = vmatprep.subr.mxu0 %v6853_v0 }
 0x350   : > { %6132 = vmatpush3.msra.mxu0 %v1510_v36 }
 0x351   : > { %6133 = vmatprep.subr.mxu0 %v6853_v0 }
 0x352   : > { %6134 = vmatpush3.msra.mxu0 %v1507_v34 }
 0x353   : > { %6135 = vmatprep.subr.mxu0 %v6853_v0 }
 0x354   : > { %6136 = vmatpush3.msra.mxu0 %v1502_v32 }
 0x355   : > { %6137 = vmatprep.subr.mxu0 %v6853_v0 }
 0x356   : > { %6138 = vmatpush3.msra.mxu0 %v1499_v29 }
 0x357   : > { %6139 = vmatprep.subr.mxu0 %v6853_v0 }
 0x358   : > { %6140 = vmatpush3.msra.mxu0 %v1494_v14 }
 0x359   : > { %6141 = vmatprep.subr.mxu0 %v6853_v0 }
 0x35a   : > { %6142 = vmatpush3.msra.mxu0 %v1491_v5 }
 0x35b   : > { %6143 = vmatprep.subr.mxu0 %v6853_v0 }
 0x35c   : > { %6144 = vmatpush3.msra.mxu0 %v1486_v8 }
 0x35d   : > { %6145 = vmatprep.subr.mxu0 %v6853_v0 }
 0x35e   : > { %6146 = vmatpush3.msra.mxu0 %v1483_v25 }
 0x35f   : > { %6148 = vmatmul.mubr.msk.f32.vlgmr.msra.gmra.mxu0 %vm1550_vm11, %v7323_v18  ;;  %6162 = vmatprep.subr.bf16.mxu0 %v6853_v0 }
 0x360   : > { %6150 = vmatprep.mubr.msk.f32.mxu0 %vm6854_vm1, %v6853_v0  ;;  %6163 = vmatpush3.bf16.msra.mxu0 %v6579_v23 }
 0x361   : > { %6164 = vmatprep.subr.bf16.mxu0 %v6853_v0 }
 0x363   : > { %6151 = vmatmul.mubr.msk.f32.gmra.mxu0 %vm1550_vm11, %v7333_v52 }
 0x364   : > { %6153 = vmatprep.mubr.msk.f32.mxu0 %vm6854_vm1, %v6853_v0  ;;  %6165 = vmatpush3.bf16.msra.mxu0 %v6580_v55 }
 0x365   : > { %6166 = vmatprep.subr.bf16.mxu0 %v6853_v0 }
 0x367   : > { %6154 = vmatmul.mubr.msk.f32.gmra.mxu0 %vm1550_vm11, %v7341_v59 }
 0x368   : > { %6156 = vmatprep.mubr.msk.f32.mxu0 %vm6854_vm1, %v6853_v0  ;;  %6167 = vmatpush3.bf16.msra.mxu0 %v6581_v56 }
 0x369   : > { %6168 = vmatprep.subr.bf16.mxu0 %v6853_v0 }
 0x36b   : > { %6157 = vmatmul.mubr.msk.f32.gmra.mxu0 %vm1550_vm11, %v5686_v62 }
 0x36c   : > { %6159 = vmatprep.mubr.msk.f32.mxu0 %vm6854_vm1, %v6853_v0  ;;  %6169 = vmatpush3.bf16.msra.mxu0 %v6582_v42 }
 0x36f   : > { %6160 = vmatmul.mubr.msk.f32.gmra.mxu0 %vm1550_vm11, %v5687_v28 }
 0x370   : > { %6170 = vmatprep.mubr.msk.bf16.mxu0 %vm6854_vm1, %v6853_v0 }
 0x41f   : > { %v1635_v6 = vpop.f32.mrf.mxu0 }
 0x420   : > { %v1664_v7 = vmul.f32 0.044715, %v1635_v6  ;;  %v1659_v39 = vmul.f32 0.5, %v1635_v6 }
 0x421   : > { %v6149_v9 = vpop.f32.mrf.mxu0 }
 0x422   : > { %v1669_v1 = vmul.f32 %v1664_v7, %v1635_v6 }
 0x423   : > { %v1640_v10 = vpop.f32.mrf.mxu0 }
 0x424   : > { %v1674_v11 = vmul.f32 %v1669_v1, %v1635_v6  ;;  %v1665_v12 = vmul.f32 0.044715, %v1640_v10  ;;  %v1660_v37 = vmul.f32 0.5, %v1640_v10 }
 0x425   : > { %v6152_v49 = vpop.f32.mrf.mxu0 }
 0x426   : > { %v1679_v30 = vadd.f32 %v1674_v11, %v1635_v6  ;;  %v1670_v13 = vmul.f32 %v1665_v12, %v1640_v10 }
 0x427   : > { %v1645_v15 = vpop.f32.mrf.mxu0 }
 0x428   : > { %v1684_v17 = vmul.f32 0.7978846, %v1679_v30  ;;  %v1675_v58 = vmul.f32 %v1670_v13, %v1640_v10  ;;  %v1666_v57 = vmul.f32 0.044715, %v1645_v15  ;;  %v1661_v45 = vmul.f32 0.5, %v1645_v15 }
 0x429   : > { %v6155_v19 = vpop.f32.mrf.mxu0 }
 0x42a   : > { %v1680_v21 = vadd.f32 %v1675_v58, %v1640_v10  ;;  %v1671_v2 = vmul.f32 %v1666_v57, %v1645_v15  ;;  %6679 = vtanh.f32 %v1684_v17 }
 0x42b   : > { %v1650_v3 = vpop.f32.mrf.mxu0 }
 0x42c   : > { %v1685_v61 = vmul.f32 0.7978846, %v1680_v21  ;;  %v1676_v50 = vmul.f32 %v1671_v2, %v1645_v15  ;;  %v1667_v63 = vmul.f32 0.044715, %v1650_v3  ;;  %v1662_v51 = vmul.f32 0.5, %v1650_v3 }
 0x42d   : > { %v6158_v24 = vpop.f32.mrf.mxu0 }
 0x42e   : > { %6681 = vtanh.f32 %v1685_v61  ;;  %v1681_v4 = vadd.f32 %v1676_v50, %v1645_v15  ;;  %v1672_v25 = vmul.f32 %v1667_v63, %v1650_v3 }
 0x42f   : > { %v1655_v16 = vpop.f32.mrf.mxu0 }
 0x430   : > { %v1686_v8 = vmul.f32 0.7978846, %v1681_v4  ;;  %v1677_v26 = vmul.f32 %v1672_v25, %v1650_v3  ;;  %v1668_v5 = vmul.f32 0.044715, %v1655_v16  ;;  %v1663_v6 = vmul.f32 0.5, %v1655_v16 }
 0x431   : > { %v6161_v27 = vpop.f32.mrf.mxu0 }
 0x432   : > { %6683 = vtanh.f32 %v1686_v8  ;;  %v1682_v14 = vadd.f32 %v1677_v26, %v1650_v3  ;;  %v1673_v22 = vmul.f32 %v1668_v5, %v1655_v16 }
 0x434   : > { %v1687_v29 = vmul.f32 0.7978846, %v1682_v14  ;;  %v1678_v31 = vmul.f32 %v1673_v22, %v1655_v16 }
 0x436   : > { %6685 = vtanh.f32 %v1687_v29  ;;  %v1683_v32 = vadd.f32 %v1678_v31, %v1655_v16 }
 0x437   : > { %v6680_v34 = vpop.eup %6679 }
 0x438   : > { %v1688_v33 = vmul.f32 0.7978846, %v1683_v32  ;;  %v1694_v36 = vadd.f32 1.0, %v6680_v34 }
 0x43a   : > { %6687 = vtanh.f32 %v1688_v33  ;;  %v1699_v44 = vmul.f32 %v1694_v36, %v1659_v39 }
 0x43b   : > { %v6682_v35 = vpop.eup %6681 }
 0x43c   : > { %v1695_v38 = vadd.f32 1.0, %v6682_v35  ;;  %v1717_v54 = vrot.slane %v1699_v44, 1 }
 0x43e   : > { %v1700_v40 = vmul.f32 %v1695_v38, %v1660_v37 }
 0x43f   : > { %v6684_v41 = vpop.eup %6683 }
 0x440   : > { %v1696_v46 = vadd.f32 1.0, %v6684_v41  ;;  %v1718_v20 = vrot.slane %v1700_v40, 1 }
 0x442   : > { %v1701_v47 = vmul.f32 %v1696_v46, %v1661_v45  ;;  %v1719_v28 = vsel %vm867_vm2, %v1717_v54, %v1718_v20 }
 0x443   : > { %v6686_v48 = vpop.eup %6685 }
 0x444   : > { %v1697_v53 = vadd.f32 1.0, %v6686_v48  ;;  %v1720_v60 = vrot.slane %v1701_v47, 1 }
 0x446   : > { %v1702_v62 = vmul.f32 %v1697_v53, %v1662_v51  ;;  %v1721_v23 = vsel %vm867_vm2, %v1718_v20, %v1720_v60 }
 0x447   : > { %v6688_v55 = vpop.eup %6687  ;;  %v6542_v56 = vpack.i.bf16 %v1721_v23, %v1719_v28 }
 0x448   : > { %v1698_v7 = vadd.f32 1.0, %v6688_v55  ;;  %v1722_v1 = vrot.slane %v1702_v62, 1 }
 0x449   : > { %6543 = vrot.lane.b32.xlu1 %v6542_v56, %s8157_s10 }
 0x44a   : > { %v1703_v9 = vmul.f32 %v1698_v7, %v1663_v6  ;;  %v1723_v12 = vsel %vm867_vm2, %v1720_v60, %v1722_v1 }
 0x44c   : > { %v1724_v10 = vrot.slane %v1703_v9, 1 }
 0x44e   : > { %v1727_v11 = vsel %vm1286_vm7, %v1724_v10, 0.0  ;;  %v1725_v49 = vsel %vm867_vm2, %v1722_v1, %v1724_v10  ;;  %vm3524_vm7 = vcmask 518144  }
 0x44f   : > { %1737 = vrot.lane.b32.xlu1 %v1727_v11, %s8157_s10  ;;  %v6547_v30 = vpack.i.bf16 %v1725_v49, %v1723_v12 }
 0x451   : > { %6548 = vrot.lane.b32.xlu0 %v6547_v30, %s8157_s10 }
 0x4bb   : > { %v6544_v13 = vpop.permute.xlu1 %6543 }
 0x4bc   : > { %v6546_v15 = vunpack.i.h.bf16 %v6544_v13  ;;  %v6545_v17 = vunpack.i.l.bf16 %v6544_v13 }
 0x4be   : > { %v1745_v58 = vsel %vm1033_vm5, %v1700_v40, %v6546_v15  ;;  %v1744_v57 = vsel %vm1033_vm5, %v1699_v44, %v6545_v17 }
 0x4bf   : > { %v1749_v19 = vpack.c.bf16 %v1745_v58, %v1744_v57 }
 0x4c1   : > { %6171 = vmatmul.mubr.msk.bf16.vlgmr.msra.gmra.mxu0 %vm1381_vm8, %v1749_v19  ;;  %v1738_v24 = vpop.permute.xlu1 %1737 }
 0x4c2   : > { %6174 = vmatprep.mubr.msk.bf16.mxu0 %vm6854_vm1, %v6853_v0  ;;  %v1748_v4 = vsel %vm1033_vm5, %v1703_v9, %v1738_v24 }
 0x4c3   : > { %v6549_v21 = vpop.permute.xlu0 %6548  ;;  %v1751_v25 = vpack.c.bf16 %v1748_v4, %v1748_v4 }
 0x4c4   : > { %v6551_v2 = vunpack.i.h.bf16 %v6549_v21  ;;  %v6550_v3 = vunpack.i.l.bf16 %v6549_v21 }
 0x4c6   : > { %v1747_v61 = vsel %vm1033_vm5, %v1702_v62, %v6551_v2  ;;  %v1746_v50 = vsel %vm1033_vm5, %v1701_v47, %v6550_v3 }
 0x4c7   : > { %v1750_v63 = vpack.c.bf16 %v1747_v61, %v1746_v50 }
 0x4c9   : > { %6175 = vmatmul.mubr.msk.bf16.gmra.mxu0 %vm1381_vm8, %v1750_v63 }
 0x4ca   : > { %6178 = vmatprep.mubr.msk.bf16.mxu0 %vm6854_vm1, %v6853_v0 }
 0x4d1   : > { %6179 = vmatmul.mubr.msk.bf16.gmra.mxu0 %vm1381_vm8, %v1751_v25 }
 0x581   : > { %v1819_v16 = vpop.f32.mrf.mxu0 }
 0x583   : > { %v6172_v8 = vpop.f32.mrf.mxu0 }
 0x584   : > { %v6584_v8 = vld [vmem:[%s8194_s11] sm:$0xff]  }
 0x585   : > { %v1822_v26 = vpop.f32.mrf.mxu0 }
 0x587   : > { %v6173_v5 = vpop.f32.mrf.mxu0 }
 0x589   : > { %v1827_v27 = vpop.f32.mrf.mxu0 }
 0x58b   : > { %v6176_v14 = vpop.f32.mrf.mxu0 }
 0x58d   : > { %v1830_v22 = vpop.f32.mrf.mxu0 }
 0x58f   : > { %v6177_v29 = vpop.f32.mrf.mxu0 }
 0x591   : > { %v1835_v31 = vpop.f32.mrf.mxu0 }
 0x592   : > { %6183 = vmatpush3.msk.msra.mxu1 %vm867_vm2, %v1835_v31 }
 0x593   : > { %v6180_v32 = vpop.f32.mrf.mxu0  ;;  %6184 = vmatprep.subr.mxu1 %v6853_v0 }
 0x594   : > { %6185 = vmatpush3.msra.mxu1 %v1830_v22 }
 0x595   : > { %v1838_v33 = vpop.f32.mrf.mxu0  ;;  %6186 = vmatprep.subr.mxu1 %v6853_v0 }
 0x596   : > { %6187 = vmatpush3.msra.mxu1 %v1827_v27 }
 0x597   : > { %v6181_v34 = vpop.f32.mrf.mxu0  ;;  %6188 = vmatprep.subr.mxu1 %v6853_v0 }
 0x598   : > { %6189 = vmatpush3.msra.mxu1 %v1822_v26 }
 0x599   : > { %6190 = vmatprep.subr.mxu1 %v6853_v0 }
 0x59a   : > { %6191 = vmatpush3.msra.mxu1 %v1819_v16  ;;  %v6583_v16 = vld [vmem:[%s8194_s11 + $0x8] sm:$0xff]   ;;  %s8200_s11 = sld [smem:[#allocation13_spill]] }
 0x59b   : > { %6193 = vmatmul.mubr.msk.f32.vlgmr.msra.gmra.mxu1 %vm1841_vm0, %v7323_v18  ;;  %6201 = vmatprep.subr.bf16.mxu1 %v6583_v16 }
 0x59c   : > { %6195 = vmatprep.mubr.msk.f32.mxu1 %vm6854_vm1, %v6853_v0  ;;  %6202 = vmatpush3.bf16.msra.mxu1 %v6583_v16 }
 0x59d   : > { %6203 = vmatprep.subr.bf16.mxu1 %v6584_v8 }
 0x59f   : > { %6196 = vmatmul.mubr.msk.f32.gmra.mxu1 %vm1841_vm0, %v7333_v52 }
 0x5a0   : > { %6198 = vmatprep.mubr.msk.f32.mxu1 %vm6854_vm1, %v6853_v0  ;;  %vm1966_vm1 = vcmask 256000   ;;  %6204 = vmatpush3.bf16.msra.mxu1 %v6584_v8 }
 0x5a3   : > { %6199 = vmatmul.mubr.msk.f32.gmra.mxu1 %vm1841_vm0, %v7341_v59 }
 0x65b   : > { %v1917_v35 = vpop.f32.mrf.mxu1 }
 0x65c   : > { %v1934_v36 = vmul.f32 0.044715, %v1917_v35  ;;  %v1931_v62 = vmul.f32 0.5, %v1917_v35 }
 0x65d   : > { %v6194_v37 = vpop.f32.mrf.mxu1 }
 0x65e   : > { %v1937_v38 = vmul.f32 %v1934_v36, %v1917_v35  ;;  %v5705_v36 = vld [vmem:[%s8195_s9] ss:$0 sm:$0xff]  ;;  %s8198_s9 = sld [smem:[#allocation11_spill]] }
 0x65f   : > { %v1922_v39 = vpop.f32.mrf.mxu1 }
 0x660   : > { %v1940_v40 = vmul.f32 %v1937_v38, %v1917_v35  ;;  %v1935_v41 = vmul.f32 0.044715, %v1922_v39  ;;  %v1932_v6 = vmul.f32 0.5, %v1922_v39 }
 0x661   : > { %v6197_v42 = vpop.f32.mrf.mxu1 }
 0x662   : > { %v1943_v44 = vadd.f32 %v1940_v40, %v1917_v35  ;;  %v1938_v18 = vmul.f32 %v1935_v41, %v1922_v39  ;;  %v5706_v40 = vld [vmem:[%s8196_s0] ss:$0 sm:$0xff]  ;;  %s8199_s0 = sld [smem:[#allocation14_spill]] }
 0x663   : > { %v1927_v45 = vpop.f32.mrf.mxu1 }
 0x664   : > { %v1941_v46 = vmul.f32 %v1938_v18, %v1922_v39  ;;  %v1936_v47 = vmul.f32 0.044715, %v1927_v45  ;;  %v1946_v20 = vmul.f32 0.7978846, %v1943_v44  ;;  %v1933_v11 = vmul.f32 0.5, %v1927_v45 }
 0x665   : > { %v6200_v52 = vpop.f32.mrf.mxu1 }
 0x666   : > { %v1944_v48 = vadd.f32 %v1941_v46, %v1922_v39  ;;  %v1939_v51 = vmul.f32 %v1936_v47, %v1927_v45  ;;  %6689 = vtanh.f32 %v1946_v20 }
 0x668   : > { %v1942_v0 = vmul.f32 %v1939_v51, %v1927_v45  ;;  %v1947_v59 = vmul.f32 0.7978846, %v1944_v48  ;;  %v6585_v48 = vld [vmem:[%s8197_s12 + $0x38] sm:$0xff]   ;;  %v6858_v51 = vmov 0  }
 0x669   : > { %2246 = vmatprep.subr.bf16.mxu0 %v6858_v51 }
 0x66a   : > { %v1945_v53 = vadd.f32 %v1942_v0, %v1927_v45  ;;  %6691 = vtanh.f32 %v1947_v59  ;;  %2247 = vmatpush1.bf16.msra.mxu0 %v6585_v48  ;;  %v6586_v0 = vld [vmem:[%s8197_s12 + $0x30] sm:$0xff]   ;;  %v6587_v59 = vld [vmem:[%s8197_s12 + $0x28] sm:$0xff]  }
 0x66b   : > { %2248 = vmatprep.subr.bf16.mxu0 %v6858_v51 }
 0x66c   : > { %v1948_v54 = vmul.f32 0.7978846, %v1945_v53  ;;  %v6588_v53 = vld [vmem:[%s8197_s12 + $0x20] sm:$0xff]  }
 0x66e   : > { %6693 = vtanh.f32 %v1948_v54  ;;  %2249 = vmatpush1.bf16.msra.mxu0 %v6586_v0  ;;  %v6589_v54 = vld [vmem:[%s8197_s12 + $0x18] sm:$0xff]  }
 0x66f   : > { %2250 = vmatprep.subr.bf16.mxu0 %v6858_v51 }
 0x672   : > { %2251 = vmatpush1.bf16.msra.mxu0 %v6587_v59 }
 0x673   : > { %v6690_v60 = vpop.eup %6689  ;;  %2252 = vmatprep.subr.bf16.mxu0 %v6858_v51 }
 0x674   : > { %v1952_v28 = vadd.f32 1.0, %v6690_v60  ;;  %v6590_v60 = vld [vmem:[%s8197_s12 + $0x10] sm:$0xff]  }
 0x676   : > { %v1955_v23 = vmul.f32 %v1952_v28, %v1931_v62  ;;  %2253 = vmatpush1.bf16.msra.mxu0 %v6588_v53  ;;  %v6591_v62 = vld [vmem:[%s8197_s12 + $0x8] sm:$0xff]   ;;  %v6592_v28 = vld [vmem:[%s8197_s12] sm:$0xff]  }
 0x677   : > { %v6692_v55 = vpop.eup %6691  ;;  %2254 = vmatprep.subr.bf16.mxu0 %v6858_v51 }
 0x678   : > { %v1960_v56 = vsel %vm1033_vm5, %v1955_v23, 0.0  ;;  %v1953_v7 = vadd.f32 1.0, %v6692_v55  ;;  %v6594_v55 = vld [vmem:[%s8197_s12 + $0x50] sm:$0xff]  }
 0x679   : > { %1961 = vadd.xlane.f32.xlu0 %v1960_v56  ;;  %v6595_v56 = vld [vmem:[%s8197_s12 + $0x48] sm:$0xff]  }
 0x67a   : > { %v1956_v9 = vmul.f32 %v1953_v7, %v1932_v6  ;;  %2255 = vmatpush1.bf16.msra.mxu0 %v6589_v54  ;;  %v5707_v6 = vld [vmem:[%s8198_s9] ss:$0 sm:$0xff]  ;;  %s8167_s9 = smov 96  }
 0x67b   : > { %v6694_v1 = vpop.eup %6693  ;;  %2256 = vmatprep.subr.bf16.mxu0 %v6858_v51 }
 0x67c   : > { %v1963_v10 = vsel %vm1033_vm5, %v1956_v9, 0.0  ;;  %v1954_v12 = vadd.f32 1.0, %v6694_v1  ;;  %v6596_v1 = vld [vmem:[%s8197_s12 + $0x40] sm:$0xff]  }
 0x67d   : > { %1964 = vadd.xlane.f32.xlu1 %v1963_v10 }
 0x67e   : > { %v1957_v49 = vmul.f32 %v1954_v12, %v1933_v11  ;;  %2257 = vmatpush1.bf16.msra.mxu0 %v6590_v60 }
 0x67f   : > { %2258 = vmatprep.subr.bf16.mxu0 %v6858_v51 }
 0x680   : > { %v1967_v30 = vsel %vm1966_vm1, %v1957_v49, 0.0 }
 0x681   : > { %1968 = vadd.xlane.f32.xlu0 %v1967_v30 }
 0x682   : > { %2259 = vmatpush1.bf16.msra.mxu0 %v6591_v62 }
 0x683   : > { %2260 = vmatprep.subr.bf16.mxu0 %v6858_v51 }
 0x686   : > { %2261 = vmatpush1.bf16.msra.mxu0 %v6592_v28 }
 0x687   : > { %2270 = vmatprep.subr.bf16.mxu0 %v6858_v51 }
 0x702   : > { %v1962_v13 = vpop.xlane.xlu0 %1961 }
 0x703   : > { %v1971_v15 = vmul.f32 0.03125, %v1962_v13 }
 0x705   : > { %v1974_v17 = vsub.f32 %v1955_v23, %v1971_v15  ;;  %v6593_v23 = vld [vmem:[%s8197_s12 + $0x58] sm:$0xff]  }
 0x706   : > { %v1965_v58 = vpop.xlane.xlu1 %1964  ;;  %2271 = vmatpush2.bf16.msra.mxu0 %v6593_v23 }
 0x707   : > { %v1972_v57 = vmul.f32 0.03125, %v1965_v58  ;;  %v1977_v19 = vmul.f32 %v1974_v17, %v1974_v17  ;;  %2272 = vmatprep.subr.bf16.mxu0 %v6858_v51 }
 0x709   : > { %v1975_v21 = vsub.f32 %v1956_v9, %v1972_v57  ;;  %v1980_v2 = vsel %vm1033_vm5, %v1977_v19, 0.0 }
 0x70a   : > { %1981 = vadd.xlane.f32.xlu0 %v1980_v2  ;;  %v1969_v3 = vpop.xlane.xlu0 %1968  ;;  %2273 = vmatpush2.bf16.msra.mxu0 %v6594_v55 }
 0x70b   : > { %v1973_v61 = vmul.f32 0.03125, %v1969_v3  ;;  %v1978_v50 = vmul.f32 %v1975_v21, %v1975_v21  ;;  %2274 = vmatprep.subr.bf16.mxu0 %v6858_v51 }
 0x70d   : > { %v1976_v63 = vsub.f32 %v1957_v49, %v1973_v61  ;;  %v1983_v24 = vsel %vm1033_vm5, %v1978_v50, 0.0  ;;  %v6859_v49 = vmov 65535  }
 0x70e   : > { %1984 = vadd.xlane.f32.xlu1 %v1983_v24  ;;  %2275 = vmatpush2.bf16.msra.mxu0 %v6595_v56  ;;  %v2601_v30 = vsel %vm2101_vm3, 4294967295, %v6859_v49 }
 0x70f   : > { %v1979_v4 = vmul.f32 %v1976_v63, %v1976_v63  ;;  %2276 = vmatprep.subr.bf16.mxu0 %v6858_v51  ;;  %v7482_v15 = vsel %vm2119_vm4, %v2601_v30, 0 }
 0x711   : > { %v1986_v25 = vsel %vm1966_vm1, %v1979_v4, 0.0 }
 0x712   : > { %1987 = vadd.xlane.f32.xlu0 %v1986_v25  ;;  %2277 = vmatpush2.bf16.msra.mxu0 %v6596_v1 }
 0x793   : > { %v1982_v26 = vpop.xlane.xlu0 %1981 }
 0x794   : > { %v1989_v5 = vmul.f32 0.03125, %v1982_v26 }
 0x796   : > { %v1992_v27 = vadd.f32 1e-05, %v1989_v5 }
 0x797   : > { %v1985_v14 = vpop.xlane.xlu1 %1984 }
 0x798   : > { %6695 = vrsqrt.f32 %v1992_v27  ;;  %v1990_v22 = vmul.f32 0.03125, %v1985_v14 }
 0x79a   : > { %v1993_v29 = vadd.f32 1e-05, %v1990_v22 }
 0x79b   : > { %v1988_v31 = vpop.xlane.xlu0 %1987 }
 0x79c   : > { %6697 = vrsqrt.f32 %v1993_v29  ;;  %v1991_v32 = vmul.f32 0.03125, %v1988_v31 }
 0x79e   : > { %v1994_v33 = vadd.f32 1e-05, %v1991_v32 }
 0x7a0   : > { %6699 = vrsqrt.f32 %v1994_v33 }
 0x7a5   : > { %v6696_v34 = vpop.eup %6695 }
 0x7a6   : > { %v1998_v35 = vmul.f32 %v6696_v34, %v1974_v17 }
 0x7a8   : > { %v2007_v39 = vmul.f32 %v5705_v36, %v1998_v35  ;;  %v6597_v35 = vld [vmem:[%s8199_s0 + $0x30] ss:$8 sps:$4 sm:$0xff]  }
 0x7a9   : > { %v6698_v37 = vpop.eup %6697 }
 0x7aa   : > { %v1999_v38 = vmul.f32 %v6698_v37, %v1975_v21  ;;  %v2016_v18 = vadd.f32 %v5706_v40, %v2007_v39  ;;  %v6602_v37 = vld [vmem:[%s8199_s0 + $0x24] ss:$8 sps:$4 sm:$0xff]   ;;  %v6605_v39 = vld [vmem:[%s8199_s0 + $0x14] ss:$8 sps:$4 sm:$0xff]  }
 0x7ac   : > { %v2008_v41 = vmul.f32 %v5705_v36, %v1999_v38  ;;  %v6600_v38 = vld [vmem:[%s8199_s0 + $0x20] ss:$8 sps:$4 sm:$0xff]  }
 0x7ad   : > { %v6700_v42 = vpop.eup %6699 }
 0x7ae   : > { %v2000_v44 = vmul.f32 %v6700_v42, %v1976_v63  ;;  %v2017_v45 = vadd.f32 %v5706_v40, %v2008_v41  ;;  %v6608_v41 = vld [vmem:[%s8199_s0 + $0x4] ss:$8 sps:$4 sm:$0xff]   ;;  %v6606_v42 = vld [vmem:[%s8199_s0] ss:$8 sps:$4 sm:$0xff]  }
 0x7b0   : > { %v2009_v46 = vmul.f32 %v5705_v36, %v2000_v44  ;;  %v2023_v47 = vpack.c.bf16 %v2017_v45, %v2016_v18  ;;  %v6599_v36 = vld [vmem:[%s8199_s0 + $0x34] ss:$8 sps:$4 sm:$0xff]   ;;  %v5712_v44 = vld [vmem:[%s8200_s11] ss:$0 sm:$0xff]  ;;  %s8165_s11 = smov 16  }
 0x7b1   : > { %2408 = vmatprep.subr.bf16.mxu1 %v6599_v36 }
 0x7b2   : > { %v2018_v20 = vadd.f32 %v5706_v40, %v2009_v46  ;;  %6205 = vmatprep.mubr.msk.bf16.mxu1 %vm1033_vm5, %v2023_v47  ;;  %v6603_v40 = vld [vmem:[%s8199_s0 + $0x10] ss:$8 sps:$4 sm:$0xff]  }
 0x7b4   : > { %v2024_v52 = vpack.c.bf16 %v2018_v20, %v2018_v20 }
 0x7b6   : > { %6206 = vmatmul.mubr.msk.bf16.vlgmr.msra.gmra.mxu1 %vm1033_vm5, %v2024_v52  ;;  %vm2556_vm5 = vcmask 154624  }
 0x7b7   : > { %2432 = vmatprep.mubr.bf16.mxu1 %v6858_v51  ;;  %2409 = vmatpush1.bf16.msra.mxu1 %v6597_v35 }
 0x7b8   : > { %2410 = vmatprep.subr.bf16.mxu1 %v6602_v37 }
 0x7bb   : > { %2411 = vmatpush1.bf16.msra.mxu1 %v6600_v38 }
 0x7bc   : > { %2412 = vmatprep.subr.bf16.mxu1 %v6605_v39 }
 0x7bf   : > { %2413 = vmatpush1.bf16.msra.mxu1 %v6603_v40 }
 0x7c0   : > { %2414 = vmatprep.subr.bf16.mxu1 %v6608_v41 }
 0x7c3   : > { %2415 = vmatpush1.bf16.msra.mxu1 %v6606_v42 }
 0x876   : > { %v6207_v7 = vpop.f32.mrf.mxu1 }
 0x877   : > { %v7471_v9 = vadd.f32 %v6207_v7, %v5707_v6 }
 0x878   : > { %v2084_v10 = vpop.f32.mrf.mxu1 }
 0x879   : > { %2125 = vrot.lane.b32.xlu0 %v7471_v9, %s8159_s6  ;;  %v7478_v12 = vadd.f32 %v5707_v6, %v2084_v10  ;;  %v2114_v58 = vrot.slane %v7471_v9, 1  ;;  %v2105_v31 = vrot.slane %v7471_v9, 7 }
 0x87a   : > { %v6208_v11 = vpop.f32.mrf.mxu1 }
 0x87b   : > { %v2111_v57 = vrot.slane %v7478_v12, 1  ;;  %v2102_v50 = vrot.slane %v7478_v12, 7  ;;  %v2120_v26 = vsel %vm2119_vm4, %v2114_v58, 0.0 }
 0x87c   : > { %v2087_v13 = vpop.f32.mrf.mxu1  ;;  %v2160_v22 = vpack.c.bf16 %v2120_v26, %v2120_v26 }
 0x87d   : > { %v7484_v17 = vadd.f32 %v5707_v6, %v2087_v13  ;;  %v2110_v8 = vsel %vm2101_vm3, 0.0, %v2102_v50 }
 0x87f   : > { %v2112_v19 = vrot.slane %v7484_v17, 1  ;;  %v6552_v21 = vpack.i.bf16 %v7484_v17, %v7478_v12  ;;  %v2103_v63 = vrot.slane %v7484_v17, 7 }
 0x881   : > { %6553 = vrot.lane.b32.xlu1 %v6552_v21, %s8159_s6  ;;  %v2113_v2 = vsel %vm867_vm2, %v2111_v57, %v2112_v19  ;;  %v2115_v3 = vsel %vm867_vm2, %v2112_v19, %v2114_v58  ;;  %v2104_v16 = vsel %vm2101_vm3, %v2102_v50, %v2103_v63  ;;  %v2106_v32 = vsel %vm2101_vm3, %v2103_v63, %v2105_v31  ;;  %s8163_s6 = smov 80  }
 0x882   : > { %v2158_v61 = vpack.c.bf16 %v2115_v3, %v2113_v2  ;;  %vm2501_vm2 = vcmask 130048  }
 0x884   : > { %5725 = vmatprep.mubr.msk.bf16.mxu0 %vm1381_vm8, %v2158_v61 }
 0x8eb   : > { %v2126_v29 = vpop.permute.xlu0 %2125 }
 0x8ec   : > { %v2132_v33 = vsel %vm1381_vm8, %v2106_v32, %v2126_v29  ;;  %v2350_v29 = vsub.s32 1, %v7312_v43 }
 0x8ed   : > { %v2159_v34 = vpack.c.bf16 %v2132_v33, %v2132_v33 }
 0x8f3   : > { %v6554_v24 = vpop.permute.xlu1 %6553 }
 0x8f4   : > { %v6556_v4 = vunpack.i.h.bf16 %v6554_v24  ;;  %v6555_v25 = vunpack.i.l.bf16 %v6554_v24 }
 0x8f6   : > { %v2130_v5 = vsel %vm1381_vm8, %v2110_v8, %v6555_v25  ;;  %v2131_v27 = vsel %vm1381_vm8, %v2104_v16, %v6556_v4 }
 0x8f7   : > { %v2157_v14 = vpack.c.bf16 %v2131_v27, %v2130_v5 }
 0x8f9   : > { %2279 = vmatmul.mubr.bf16.vlgmr.msra.gmra.mxu0 %v2157_v14 }
 0x8fa   : > { %5726 = vmatprep.mubr.msk.bf16.mxu0 %vm1381_vm8, %v2160_v22 }
 0x901   : > { %2287 = vmatmul.mubr.bf16.gmra.mxu0 %v2159_v34 }
 0x9b9   : > { %v2280_v18 = vpop.f32.mrf.mxu0 }
 0x9ba   : > { %v2281_v45 = vadd.f32 %v5712_v44, %v2280_v18 }
 0x9bb   : > { %v2282_v46 = vpop.f32.mrf.mxu0 }
 0x9bc   : > { %v2297_v47 = vmul.f32 0.044715, %v2281_v45  ;;  %v2294_v21 = vmul.f32 0.5, %v2281_v45 }
 0x9bd   : > { %v2283_v20 = vpop.f32.mrf.mxu0 }
 0x9be   : > { %v2300_v52 = vmul.f32 %v2297_v47, %v2281_v45  ;;  %v2284_v48 = vadd.f32 %v5712_v44, %v2283_v20 }
 0x9bf   : > { %v2285_v0 = vpop.f32.mrf.mxu0 }
 0x9c0   : > { %v2303_v59 = vmul.f32 %v2300_v52, %v2281_v45  ;;  %v2298_v53 = vmul.f32 0.044715, %v2284_v48  ;;  %v2295_v61 = vmul.f32 0.5, %v2284_v48 }
 0x9c1   : > { %v2288_v54 = vpop.f32.mrf.mxu0 }
 0x9c2   : > { %v2306_v60 = vadd.f32 %v2303_v59, %v2281_v45  ;;  %v2301_v62 = vmul.f32 %v2298_v53, %v2284_v48  ;;  %v2289_v28 = vadd.f32 %v5712_v44, %v2288_v54 }
 0x9c3   : > { %v2290_v23 = vpop.f32.mrf.mxu0 }
 0x9c4   : > { %v2309_v55 = vmul.f32 0.7978846, %v2306_v60  ;;  %v2304_v56 = vmul.f32 %v2301_v62, %v2284_v48  ;;  %v2299_v6 = vmul.f32 0.044715, %v2289_v28  ;;  %v2296_v4 = vmul.f32 0.5, %v2289_v28 }
 0x9c5   : > { %v2291_v7 = vpop.f32.mrf.mxu0 }
 0x9c6   : > { %6701 = vtanh.f32 %v2309_v55  ;;  %v2307_v1 = vadd.f32 %v2304_v56, %v2284_v48  ;;  %v2302_v10 = vmul.f32 %v2299_v6, %v2289_v28 }
 0x9c7   : > { %v2292_v11 = vpop.f32.mrf.mxu0 }
 0x9c8   : > { %v2310_v49 = vmul.f32 0.7978846, %v2307_v1  ;;  %v2305_v30 = vmul.f32 %v2302_v10, %v2289_v28 }
 0x9ca   : > { %6703 = vtanh.f32 %v2310_v49  ;;  %v2308_v13 = vadd.f32 %v2305_v30, %v2289_v28 }
 0x9cc   : > { %v2311_v58 = vmul.f32 0.7978846, %v2308_v13 }
 0x9ce   : > { %6705 = vtanh.f32 %v2311_v58 }
 0x9d3   : > { %v6702_v57 = vpop.eup %6701 }
 0x9d4   : > { %v2315_v19 = vadd.f32 1.0, %v6702_v57 }
 0x9d6   : > { %v2318_v3 = vmul.f32 %v2315_v19, %v2294_v21 }
 0x9d7   : > { %v6704_v2 = vpop.eup %6703 }
 0x9d8   : > { %v2316_v50 = vadd.f32 1.0, %v6704_v2  ;;  %v7534_v25 = vadd.f32 %v2318_v3, %v7478_v12  ;;  %v2346_v12 = vsub.s32 0, %v7312_v43 }
 0x9da   : > { %v2319_v63 = vmul.f32 %v2316_v50, %v2295_v61 }
 0x9db   : > { %v6706_v24 = vpop.eup %6705 }
 0x9dc   : > { %v7537_v16 = vadd.f32 %v2319_v63, %v7484_v17  ;;  %v2317_v8 = vadd.f32 1.0, %v6706_v24  ;;  %v2342_v17 = vld [vmem:[%s8136_s13] sm:$0x3] }
 0x9dd   : > { %v2347_v22 = vrot.slane %v2342_v17, %v2346_v12  ;;  %v2351_v33 = vrot.slane %v2342_v17, %v2350_v29 }
 0x9de   : > { %v2340_v26 = vpack.c.bf16 %v7537_v16, %v7534_v25  ;;  %v2320_v5 = vmul.f32 %v2317_v8, %v2296_v4 }
 0x9e0   : > { %5735 = vmatmul.mubr.msk.bf16.vlgmr.msra.gmra.mxu1 %vm1381_vm8, %v2340_v26  ;;  %v7544_v27 = vadd.f32 %v2320_v5, %v7471_v9 }
 0x9e1   : > { %2442 = vmatprep.mubr.bf16.mxu1 %v6858_v51 }
 0x9e2   : > { %v2341_v14 = vpack.c.bf16 %v7544_v27, %v7544_v27 }
 0x9e8   : > { %5736 = vmatmul.mubr.msk.bf16.gmra.mxu1 %vm1381_vm8, %v2341_v14 }
 0xaa0   : > { %v2434_v31 = vpop.f32.mrf.mxu1 }
 0xaa1   : > { %v7556_v32 = vadd.f32 %v2434_v31, %v2347_v22 }
 0xaa2   : > { %v2436_v9 = vpop.f32.mrf.mxu1 }
 0xaa3   : > { %2457 = vrot.lane.b32.xlu1 %v7556_v32, %s8201_s3  ;;  %v2437_v37 = vadd.f32 %v2436_v9, %v2351_v33  ;;  %v2451_v39 = vmul.f32 0.25, %v7556_v32 }
 0xaa4   : > { %v2438_v34 = vpop.f32.mrf.mxu1 }
 0xaa5   : > { %v7562_v35 = vadd.f32 %v2438_v34, %v2347_v22 }
 0xaa6   : > { %v2440_v36 = vpop.f32.mrf.mxu1 }
 0xaa7   : > { %v2441_v38 = vadd.f32 %v2440_v36, %v2351_v33  ;;  %2459 = vrot.lane.b32.xlu1 %v7562_v35, %s8201_s3  ;;  %v2452_v40 = vmul.f32 0.25, %v7562_v35  ;;  %v7596_v49 = vpack.i.bf16 %v7562_v35, %v7556_v32 }
 0xaa8   : > { %v2444_v41 = vpop.f32.mrf.mxu1 }
 0xaa9   : > { %v7568_v42 = vpack.c.bf16 %v2441_v38, %v2437_v37  ;;  %v7570_v44 = vadd.f32 %v2444_v41, %v2347_v22  ;;  %v7572_v18 = vpack.c.bf16 %v2452_v40, %v2451_v39 }
 0xaaa   : > { %v2446_v45 = vpop.f32.mrf.mxu1 }
 0xaab   : > { %2461 = vrot.lane.b32.xlu0 %v7570_v44, %s8201_s3  ;;  %6211 = vmatprep.mubr.msk.bf16.mxu1 %vm2501_vm2, %v7572_v18  ;;  %v2447_v0 = vadd.f32 %v2446_v45, %v2351_v33  ;;  %v2453_v60 = vmul.f32 0.25, %v7570_v44 }
 0xaac   : > { %v2448_v46 = vpop.f32.mrf.mxu1 }
 0xaad   : > { %v7580_v53 = vpack.c.bf16 %v2447_v0, %v2447_v0  ;;  %v7585_v23 = vpack.c.bf16 %v2453_v60, %v2453_v60 }
 0xaae   : > { %v2449_v47 = vpop.f32.mrf.mxu1 }
 0xaaf   : > { %v2604_v28 = vand.u32 %v7482_v15, %v7580_v53 }
 0xb15   : > { %v2458_v20 = vpop.permute.xlu1 %2457 }
 0xb16   : > { %2466 = vxpose.xlu1.b32.start [1/3] (short) (narrow) %v2458_v20, 16 }
 0xb19   : > { %v2460_v52 = vpop.permute.xlu1 %2459 }
 0xb1a   : > { %2467 = vxpose.xlu1.b32.cont [2/3] (short) (narrow) %v2460_v52, 16 }
 0xb1d   : > { %v2462_v48 = vpop.permute.xlu0 %2461 }
 0xb1e   : > { %2468 = vxpose.xlu1.b32.end [3/3] (short) (narrow) %v2462_v48, 16 }
 0xb3c   : > { %2660 = vrot.lane.b32.xlu1 %v7570_v44, %s8171_s2 }
 0xb92   : > { %v2482_v59 = vpop.trf.xlu1 }
 0xb96   : > { %v2483_v54 = vpop.trf.xlu1 }
 0xb97   : > { %v2500_v62 = vpack.c.bf16 %v2483_v54, %v2482_v59 }
 0xb99   : > { %6209 = vmatprep.subr.bf16.mxu1 %v2500_v62 }
 0xb9a   : > { %6210 = vmatpush3.bf16.msra.mxu1 %v2500_v62 }
 0xb9b   : > { %6215 = vmatprep.subr.bf16.mxu1 %v2604_v28 }
 0xb9d   : > { %6212 = vmatmul.mubr.msk.bf16.vlgmr.msra.gmra.mxu1 %vm2501_vm2, %v7585_v23 }
 0xb9e   : > { %6216 = vmatpush3.bf16.msra.mxu1 %v2604_v28 }
 0xb9f   : > { %6217 = vmatprep.subr.bf16.mxu1 %v7568_v42 }
 0xba2   : > { %6218 = vmatpush3.bf16.msra.mxu1 %v7568_v42 }
 0xbae   : > { %v2661_v22 = vpop.permute.xlu1 %2660 }
 0xc5d   : > { %v6213_v55 = vpop.f32.mrf.mxu1 }
 0xc5e   : > { %v2564_v11 = vsel %vm2563_vm6, %v6213_v55, -inf }
 0xc5f   : > { %v2542_v56 = vpop.f32.mrf.mxu1 }
 0xc60   : > { %v2557_v6 = vsel %vm2556_vm5, %v2542_v56, -inf }
 0xc61   : > { %2558 = vmax.xlane.f32.xlu0 %v2557_v6  ;;  %v6214_v7 = vpop.f32.mrf.mxu1 }
 0xc63   : > { %v2545_v1 = vpop.f32.mrf.mxu1 }
 0xc64   : > { %v2560_v10 = vsel %vm2556_vm5, %v2545_v1, -inf }
 0xc65   : > { %2561 = vmax.xlane.f32.xlu0 %v2560_v10 }
 0xc69   : > { %2565 = vmax.xlane.f32.xlu0 %v2564_v11 }
 0xc7f   : > { %6558 = vrot.lane.b32.xlu0 %v7596_v49, %s8171_s2 }
 0xcea   : > { %v2559_v30 = vpop.xlane.xlu0 %2558 }
 0xceb   : > { %v2567_v13 = vsub.f32 %v2542_v56, %v2559_v30 }
 0xced   : > { %v2570_v58 = vmul.f32 1.442695, %v2567_v13 }
 0xcee   : > { %v2562_v57 = vpop.xlane.xlu0 %2561 }
 0xcef   : > { %6707 = vpow2.f32 %v2570_v58  ;;  %v2568_v19 = vsub.f32 %v2545_v1, %v2562_v57 }
 0xcf1   : > { %v2572_v21 = vmul.f32 1.442695, %v2568_v19 }
 0xcf2   : > { %v2566_v2 = vpop.xlane.xlu0 %2565 }
 0xcf3   : > { %6709 = vpow2.f32 %v2572_v21  ;;  %v2569_v3 = vsub.f32 %v6213_v55, %v2566_v2 }
 0xcf5   : > { %v2574_v61 = vmul.f32 1.442695, %v2569_v3 }
 0xcf6   : > { %v6559_v5 = vpop.permute.xlu0 %6558 }
 0xcf7   : > { %6711 = vpow2.f32 %v2574_v61  ;;  %v6560_v14 = vunpack.i.l.bf16 %v6559_v5  ;;  %v6561_v17 = vunpack.i.h.bf16 %v6559_v5 }
 0xcfc   : > { %v6708_v50 = vpop.eup %6707 }
 0xcfd   : > { %v2576_v63 = vsel %vm2556_vm5, %v6708_v50, 0.0 }
 0xcfe   : > { %2577 = vadd.xlane.f32.xlu0 %v2576_v63 }
 0xd00   : > { %v6710_v24 = vpop.eup %6709 }
 0xd01   : > { %v2579_v4 = vsel %vm2556_vm5, %v6710_v24, 0.0 }
 0xd02   : > { %2580 = vadd.xlane.f32.xlu1 %v2579_v4 }
 0xd04   : > { %v6712_v8 = vpop.eup %6711 }
 0xd05   : > { %v2582_v26 = vsel %vm2563_vm6, %v6712_v8, 0.0 }
 0xd06   : > { %2583 = vadd.xlane.f32.xlu0 %v2582_v26 }
 0xd13   : > { %2702 = vrot.lane.b32.xlu1 %v7585_v23, %s8169_s7 }
 0xd1c   : > { %2700 = vrot.lane.b32.xlu0 %v7572_v18, %s8169_s7 }
 0xd3a   : > { %2665 = vxpose.xlu0.b32.start [1/3] (short) (narrow) %v6560_v14, 16 }
 0xd3e   : > { %2666 = vxpose.xlu0.b32.cont [2/3] (short) (narrow) %v6561_v17, 16 }
 0xd42   : > { %2667 = vxpose.xlu0.b32.end [3/3] (short) (narrow) %v2661_v22, 16 }
 0xd87   : > { %v2578_v31 = vpop.xlane.xlu0 %2577 }
 0xd88   : > { %6713 = vrcp.f32 %v2578_v31 }
 0xd8b   : > { %v2581_v9 = vpop.xlane.xlu1 %2580 }
 0xd8c   : > { %6715 = vrcp.f32 %v2581_v9 }
 0xd8f   : > { %v2584_v33 = vpop.xlane.xlu0 %2583  ;;  %v2703_v48 = vpop.permute.xlu1 %2702 }
 0xd90   : > { %6717 = vrcp.f32 %v2584_v33 }
 0xd93   : > { %v2701_v46 = vpop.permute.xlu0 %2700 }
 0xd95   : > { %v6714_v34 = vpop.eup %6713 }
 0xd96   : > { %v2588_v37 = vmul.f32 %v6714_v34, %v6708_v50 }
 0xd99   : > { %v6716_v36 = vpop.eup %6715 }
 0xd9a   : > { %v2589_v38 = vmul.f32 %v6716_v36, %v6710_v24 }
 0xd9c   : > { %v2591_v39 = vpack.c.bf16 %v2589_v38, %v2588_v37 }
 0xd9d   : > { %v6718_v40 = vpop.eup %6717 }
 0xd9e   : > { %6219 = vmatprep.mubr.msk.bf16.mxu1 %vm2556_vm5, %v2591_v39  ;;  %v2590_v41 = vmul.f32 %v6718_v40, %v6712_v8 }
 0xda0   : > { %v2592_v45 = vpack.c.bf16 %v2590_v41, %v2590_v41 }
 0xda2   : > { %6220 = vmatmul.mubr.msk.bf16.vlgmr.msra.gmra.mxu1 %vm2556_vm5, %v2592_v45 }
 0xda3   : > { %6225 = vmatprep.mubr.msk.bf16.mxu1 %vm2501_vm2, %v2701_v46 }
 0xdb6   : > { %v2681_v47 = vpop.trf.xlu0 }
 0xdba   : > { %v2682_v20 = vpop.trf.xlu0 }
 0xdbb   : > { %v2697_v52 = vpack.c.bf16 %v2682_v20, %v2681_v47  ;;  %v6610_v47 = vld [vmem:[%s8137_s14 + $0x8] sm:$0xff]  }
 0xdbd   : > { %6223 = vmatprep.subr.bf16.mxu1 %v2697_v52 }
 0xdbe   : > { %6224 = vmatpush3.bf16.msra.mxu1 %v2697_v52 }
 0xdbf   : > { %6237 = vmatprep.subr.bf16.mxu1 %v6610_v47 }
 0xdc1   : > { %6226 = vmatmul.mubr.msk.bf16.vlgmr.msra.gmra.mxu1 %vm2501_vm2, %v2703_v48 }
 0xdc2   : > { %6238 = vmatpush3.bf16.msra.mxu1 %v6610_v47 }
 0xe62   : > { %v7611_v0 = vpop.f32.mrf.mxu1 }
 0xe63   : > { %v2655_v46 = vpack.c.bf16 %v7611_v0, %v7611_v0 }
 0xe64   : > { %v7613_v59 = vpop.f32.mrf.mxu1 }
 0xe66   : > { %v6222_v54 = vpop.f32.mrf.mxu1 }
 0xe68   : > { %v7615_v60 = vpop.f32.mrf.mxu1 }
 0xe69   : > { %v2654_v62 = vpack.c.bf16 %v7615_v60, %v7613_v59 }
 0xe81   : > { %v6227_v28 = vpop.f32.mrf.mxu1 }
 0xe82   : > { %v2764_v1 = vsel %vm2563_vm6, %v6227_v28, -inf }
 0xe83   : > { %v2744_v55 = vpop.f32.mrf.mxu1 }
 0xe84   : > { %v2758_v56 = vsel %vm2556_vm5, %v2744_v55, -inf }
 0xe85   : > { %2759 = vmax.xlane.f32.xlu1 %v2758_v56  ;;  %v6228_v6 = vpop.f32.mrf.mxu1 }
 0xe87   : > { %v2747_v7 = vpop.f32.mrf.mxu1 }
 0xe88   : > { %v2761_v10 = vsel %vm2556_vm5, %v2747_v7, -inf }
 0xe89   : > { %2765 = vmax.xlane.f32.xlu1 %v2764_v1  ;;  %2762 = vmax.xlane.f32.xlu0 %v2761_v10 }
 0xe9a   : > { %2797 = vrot.lane.b32.xlu1 %v7580_v53, %s8169_s7 }
 0xe9f   : > { %2979 = vrot.lane.b32.xlu0 %v7556_v32, %s8202_s4 }
 0xf0e   : > { %v2760_v11 = vpop.xlane.xlu1 %2759 }
 0xf0f   : > { %v2767_v30 = vsub.f32 %v2744_v55, %v2760_v11 }
 0xf11   : > { %v2770_v19 = vmul.f32 1.442695, %v2767_v30 }
 0xf12   : > { %v2766_v13 = vpop.xlane.xlu1 %2765  ;;  %v2763_v58 = vpop.xlane.xlu0 %2762 }
 0xf13   : > { %v2769_v57 = vsub.f32 %v6227_v28, %v2766_v13  ;;  %v2768_v2 = vsub.f32 %v2747_v7, %v2763_v58 }
 0xf15   : > { %v2774_v21 = vmul.f32 1.442695, %v2769_v57  ;;  %v2772_v50 = vmul.f32 1.442695, %v2768_v2 }
 0xf16   : > { %v2798_v3 = vpop.permute.xlu1 %2797  ;;  %v2980_v5 = vpop.permute.xlu0 %2979 }
 0xf17   : > { %6719 = vpow2.f32 %v2774_v21  ;;  %v2807_v61 = vand.u32 %v2798_v3, %v7482_v15 }
 0xf18   : > { %6721 = vpow2.f32 %v2770_v19 }
 0xf19   : > { %6229 = vmatprep.subr.bf16.mxu0 %v2807_v61  ;;  %6723 = vpow2.f32 %v2772_v50 }
 0xf1a   : > { %6230 = vmatpush3.bf16.msra.mxu0 %v2807_v61 }
 0xf24   : > { %v6720_v63 = vpop.eup %6719 }
 0xf25   : > { %v2782_v32 = vsel %vm2563_vm6, %v6720_v63, 0.0  ;;  %v6722_v24 = vpop.eup %6721 }
 0xf26   : > { %2783 = vadd.xlane.f32.xlu1 %v2782_v32  ;;  %v2776_v4 = vsel %vm2556_vm5, %v6722_v24, 0.0  ;;  %v6724_v8 = vpop.eup %6723 }
 0xf27   : > { %v2779_v26 = vsel %vm2556_vm5, %v6724_v8, 0.0 }
 0xf2a   : > { %2777 = vadd.xlane.f32.xlu1 %v2776_v4 }
 0xf2e   : > { %2780 = vadd.xlane.f32.xlu1 %v2779_v26 }
 0xf3f   : > { %2795 = vrot.lane.b32.xlu1 %v7568_v42, %s8169_s7  ;;  %s8203_s7 = smov 48  }
 0xf43   : > { %2981 = vrot.lane.b32.xlu1 %v7562_v35, %s8202_s4  ;;  %v6609_v35 = vld [vmem:[%s8137_s14] sm:$0xff]  }
 0xf47   : > { %2983 = vrot.lane.b32.xlu1 %v7570_v44, %s8202_s4 }
 0xf4b   : > { %3021 = vrot.lane.b32.xlu1 %v7572_v18, %s8167_s9 }
 0xf4f   : > { %3023 = vrot.lane.b32.xlu1 %v7585_v23, %s8167_s9 }
 0xf78   : > { %2988 = vxpose.xlu1.b32.start [1/3] (short) (narrow) %v2980_v5, 16 }
 0xfaf   : > { %v2784_v14 = vpop.xlane.xlu1 %2783 }
 0xfb0   : > { %6725 = vrcp.f32 %v2784_v14 }
 0xfb3   : > { %v2778_v17 = vpop.xlane.xlu1 %2777 }
 0xfb4   : > { %6727 = vrcp.f32 %v2778_v17 }
 0xfb7   : > { %v2781_v22 = vpop.xlane.xlu1 %2780 }
 0xfb8   : > { %6729 = vrcp.f32 %v2781_v22 }
 0xfbb   : > { %v2796_v31 = vpop.permute.xlu1 %2795 }
 0xfbc   : > { %6231 = vmatprep.subr.bf16.mxu0 %v2796_v31 }
 0xfbd   : > { %6232 = vmatpush3.bf16.msra.mxu0 %v2796_v31  ;;  %v6726_v33 = vpop.eup %6725 }
 0xfbe   : > { %6243 = vmatprep.subr.bf16.mxu0 %v6609_v35  ;;  %v2790_v38 = vmul.f32 %v6726_v33, %v6720_v63 }
 0xfbf   : > { %v2982_v9 = vpop.permute.xlu1 %2981 }
 0xfc0   : > { %2989 = vxpose.xlu1.b32.cont [2/3] (short) (narrow) %v2982_v9, 16  ;;  %v2792_v45 = vpack.c.bf16 %v2790_v38, %v2790_v38 }
 0xfc1   : > { %v6728_v34 = vpop.eup %6727 }
 0xfc2   : > { %v2788_v39 = vmul.f32 %v6728_v34, %v6722_v24 }
 0xfc3   : > { %v2984_v36 = vpop.permute.xlu1 %2983 }
 0xfc4   : > { %2990 = vxpose.xlu1.b32.end [3/3] (short) (narrow) %v2984_v36, 16 }
 0xfc5   : > { %v6730_v37 = vpop.eup %6729 }
 0xfc6   : > { %v2789_v40 = vmul.f32 %v6730_v37, %v6724_v8 }
 0xfc7   : > { %v3022_v20 = vpop.permute.xlu1 %3021 }
 0xfc8   : > { %v2791_v41 = vpack.c.bf16 %v2789_v40, %v2788_v39 }
 0xfca   : > { %6233 = vmatprep.mubr.msk.bf16.mxu0 %vm2556_vm5, %v2791_v41 }
 0xfcb   : > { %6234 = vmatmul.mubr.msk.bf16.vlgmr.msra.gmra.mxu0 %vm2556_vm5, %v2792_v45  ;;  %v3024_v52 = vpop.permute.xlu1 %3023 }
 0xfcc   : > { %6245 = vmatprep.mubr.msk.bf16.mxu0 %vm2501_vm2, %v2654_v62  ;;  %6244 = vmatpush3.bf16.msra.mxu0 %v6609_v35 }
 0xfd3   : > { %6246 = vmatmul.mubr.msk.bf16.vlgmr.msra.gmra.mxu0 %vm2501_vm2, %v2655_v46 }
 0xfe2   : > { %3245 = vrot.lane.b32.xlu1 %v7570_v44, %s8165_s11 }
0x1038   : > { %v3004_v48 = vpop.trf.xlu1 }
0x103c   : > { %v3005_v59 = vpop.trf.xlu1 }
0x103d   : > { %v3020_v54 = vpack.c.bf16 %v3005_v59, %v3004_v48 }
0x103f   : > { %6249 = vmatprep.subr.bf16.mxu1 %v3020_v54 }
0x1054   : > { %v3246_v38 = vpop.permute.xlu1 %3245 }
0x108b   : > { %v6235_v60 = vpop.f32.mrf.mxu0 }
0x108c   : > { %v2858_v56 = vpack.c.bf16 %v6235_v60, %v6235_v60 }
0x108d   : > { %v2843_v0 = vpop.f32.mrf.mxu0 }
0x108f   : > { %v6236_v62 = vpop.f32.mrf.mxu0 }
0x1091   : > { %v2846_v28 = vpop.f32.mrf.mxu0 }
0x1092   : > { %v2857_v55 = vpack.c.bf16 %v2846_v28, %v2843_v0 }
0x1093   : > { %v7657_v6 = vpop.f32.mrf.mxu0 }
0x1094   : > { %6239 = vmatprep.mubr.msk.bf16.mxu1 %vm2501_vm2, %v2857_v55  ;;  %v6611_v55 = vld [vmem:[%s8137_s14 + $0x10] sm:$0xff]  }
0x1095   : > { %6240 = vmatmul.mubr.msk.bf16.vlgmr.msra.gmra.mxu1 %vm2501_vm2, %v2858_v56  ;;  %v7661_v44 = vpop.f32.mrf.mxu0 }
0x1096   : > { %6251 = vmatprep.mubr.msk.bf16.mxu1 %vm2501_vm2, %v3022_v20  ;;  %6250 = vmatpush3.bf16.msra.mxu1 %v3020_v54 }
0x1097   : > { %v6248_v7 = vpop.f32.mrf.mxu0  ;;  %6263 = vmatprep.subr.bf16.mxu1 %v6611_v55 }
0x1099   : > { %v7695_v56 = vpop.f32.mrf.mxu0 }
0x109d   : > { %6252 = vmatmul.mubr.msk.bf16.vlgmr.msra.gmra.mxu1 %vm2501_vm2, %v3024_v52 }
0x109e   : > { %6264 = vmatpush3.bf16.msra.mxu1 %v6611_v55 }
0x1155   : > { %v7665_v1 = vpop.f32.mrf.mxu1 }
0x1157   : > { %v7667_v10 = vpop.f32.mrf.mxu1 }
0x1159   : > { %v6242_v11 = vpop.f32.mrf.mxu1 }
0x115b   : > { %v7669_v30 = vpop.f32.mrf.mxu1 }
0x115d   : > { %v6253_v13 = vpop.f32.mrf.mxu1 }
0x115e   : > { %v3085_v3 = vsel %vm2563_vm6, %v6253_v13, -inf }
0x115f   : > { %v3065_v58 = vpop.f32.mrf.mxu1 }
0x1160   : > { %v3079_v57 = vsel %vm2556_vm5, %v3065_v58, -inf }
0x1161   : > { %3080 = vmax.xlane.f32.xlu0 %v3079_v57  ;;  %v6254_v19 = vpop.f32.mrf.mxu1 }
0x1163   : > { %v3068_v21 = vpop.f32.mrf.mxu1 }
0x1164   : > { %v3082_v2 = vsel %vm2556_vm5, %v3068_v21, -inf }
0x1165   : > { %3083 = vmax.xlane.f32.xlu0 %v3082_v2 }
0x1169   : > { %3086 = vmax.xlane.f32.xlu0 %v3085_v3 }
0x117f   : > { %6563 = vrot.lane.b32.xlu0 %v7596_v49, %s8165_s11  ;;  %s8204_s11 = smov 112  }
0x1183   : > { %3116 = vrot.lane.b32.xlu0 %v7580_v53, %s8167_s9 }
0x11ea   : > { %v3081_v61 = vpop.xlane.xlu0 %3080 }
0x11eb   : > { %v3088_v32 = vsub.f32 %v3065_v58, %v3081_v61 }
0x11ed   : > { %v3091_v26 = vmul.f32 1.442695, %v3088_v32 }
0x11ee   : > { %v3084_v50 = vpop.xlane.xlu0 %3083 }
0x11ef   : > { %v3089_v63 = vsub.f32 %v3068_v21, %v3084_v50 }
0x11f1   : > { %v3093_v24 = vmul.f32 1.442695, %v3089_v63 }
0x11f2   : > { %v3087_v4 = vpop.xlane.xlu0 %3086 }
0x11f3   : > { %6731 = vpow2.f32 %v3093_v24  ;;  %v3090_v8 = vsub.f32 %v6253_v13, %v3087_v4 }
0x11f5   : > { %v3095_v5 = vmul.f32 1.442695, %v3090_v8 }
0x11f6   : > { %v6564_v14 = vpop.permute.xlu0 %6563 }
0x11f7   : > { %6733 = vpow2.f32 %v3095_v5  ;;  %v6565_v36 = vunpack.i.l.bf16 %v6564_v14  ;;  %v6566_v37 = vunpack.i.h.bf16 %v6564_v14 }
0x11f8   : > { %6735 = vpow2.f32 %v3091_v26 }
0x11fa   : > { %v3117_v17 = vpop.permute.xlu0 %3116 }
0x11fb   : > { %v3126_v22 = vand.u32 %v3117_v17, %v7482_v15 }
0x11fd   : > { %6255 = vmatprep.subr.bf16.mxu0 %v3126_v22 }
0x11fe   : > { %6256 = vmatpush3.bf16.msra.mxu0 %v3126_v22 }
0x1200   : > { %v6732_v49 = vpop.eup %6731 }
0x1201   : > { %v3100_v35 = vsel %vm2556_vm5, %v6732_v49, 0.0 }
0x1202   : > { %3101 = vadd.xlane.f32.xlu1 %v3100_v35 }
0x1204   : > { %v6734_v31 = vpop.eup %6733 }
0x1205   : > { %v3103_v9 = vsel %vm2563_vm6, %v6734_v31, 0.0  ;;  %v6736_v33 = vpop.eup %6735 }
0x1206   : > { %3104 = vadd.xlane.f32.xlu0 %v3103_v9  ;;  %v3097_v34 = vsel %vm2556_vm5, %v6736_v33, 0.0 }
0x120a   : > { %3098 = vadd.xlane.f32.xlu0 %v3097_v34 }
0x1213   : > { %3114 = vrot.lane.b32.xlu1 %v7568_v42, %s8167_s9 }
0x1220   : > { %3283 = vrot.lane.b32.xlu0 %v7572_v18, %s8163_s6 }
0x1224   : > { %3285 = vrot.lane.b32.xlu0 %v7585_v23, %s8163_s6 }
0x1242   : > { %3250 = vxpose.xlu0.b32.start [1/3] (short) (narrow) %v6565_v36, 16 }
0x1246   : > { %3251 = vxpose.xlu0.b32.cont [2/3] (short) (narrow) %v6566_v37, 16 }
0x124a   : > { %3252 = vxpose.xlu0.b32.end [3/3] (short) (narrow) %v3246_v38, 16  ;;  %v2974_v38 = vadd.f32 %v7657_v6, %v7665_v1 }
0x128b   : > { %v3102_v39 = vpop.xlane.xlu1 %3101 }
0x128f   : > { %v3105_v40 = vpop.xlane.xlu0 %3104  ;;  %v3115_v41 = vpop.permute.xlu1 %3114 }
0x1290   : > { %6257 = vmatprep.subr.bf16.mxu0 %v3115_v41  ;;  %6737 = vrcp.f32 %v3105_v40  ;;  %v2966_v40 = vadd.f32 %v7661_v44, %v7667_v10 }
0x1291   : > { %6258 = vmatpush3.bf16.msra.mxu0 %v3115_v41  ;;  %6739 = vrcp.f32 %v3102_v39 }
0x1293   : > { %v3099_v45 = vpop.xlane.xlu0 %3098 }
0x1294   : > { %6741 = vrcp.f32 %v3099_v45 }
0x1297   : > { %v3284_v54 = vpop.permute.xlu0 %3283 }
0x129b   : > { %v3286_v60 = vpop.permute.xlu0 %3285 }
0x129d   : > { %v6738_v46 = vpop.eup %6737 }
0x129e   : > { %v6740_v18 = vpop.eup %6739  ;;  %v3111_v20 = vmul.f32 %v6738_v46, %v6734_v31 }
0x129f   : > { %v3110_v52 = vmul.f32 %v6740_v18, %v6732_v49 }
0x12a0   : > { %v3113_v59 = vpack.c.bf16 %v3111_v20, %v3111_v20 }
0x12a1   : > { %v6742_v47 = vpop.eup %6741 }
0x12a2   : > { %v3109_v23 = vmul.f32 %v6742_v47, %v6736_v33 }
0x12a4   : > { %v3112_v48 = vpack.c.bf16 %v3110_v52, %v3109_v23 }
0x12a6   : > { %6259 = vmatprep.mubr.msk.bf16.mxu0 %vm2556_vm5, %v3112_v48 }
0x12a7   : > { %6260 = vmatmul.mubr.msk.bf16.vlgmr.msra.gmra.mxu0 %vm2556_vm5, %v3113_v59 }
0x12a8   : > { %6271 = vmatprep.mubr.msk.bf16.mxu0 %vm2501_vm2, %v3284_v54 }
0x12be   : > { %v3266_v0 = vpop.trf.xlu0 }
0x12c2   : > { %v3267_v62 = vpop.trf.xlu0 }
0x12c3   : > { %v3282_v28 = vpack.c.bf16 %v3267_v62, %v3266_v0 }
0x12c5   : > { %6269 = vmatprep.subr.bf16.mxu0 %v3282_v28 }
0x12c6   : > { %6270 = vmatpush3.bf16.msra.mxu0 %v3282_v28 }
0x12c9   : > { %6272 = vmatmul.mubr.msk.bf16.vlgmr.msra.gmra.mxu0 %vm2501_vm2, %v3286_v60 }
0x1367   : > { %v6261_v7 = vpop.f32.mrf.mxu0 }
0x1368   : > { %v3177_v19 = vpack.c.bf16 %v6261_v7, %v6261_v7 }
0x1369   : > { %v3162_v11 = vpop.f32.mrf.mxu0 }
0x136b   : > { %v6262_v13 = vpop.f32.mrf.mxu0 }
0x136d   : > { %v3165_v58 = vpop.f32.mrf.mxu0 }
0x136e   : > { %v3176_v57 = vpack.c.bf16 %v3165_v58, %v3162_v11 }
0x1370   : > { %6265 = vmatprep.mubr.msk.bf16.mxu1 %vm2501_vm2, %v3176_v57 }
0x1371   : > { %6266 = vmatmul.mubr.msk.bf16.vlgmr.msra.gmra.mxu1 %vm2501_vm2, %v3177_v19  ;;  %v2969_v19 = vadd.f32 %v7695_v56, %v7669_v30 }
0x1389   : > { %v6273_v21 = vpop.f32.mrf.mxu0 }
0x138a   : > { %v3347_v2 = vsel %vm2563_vm6, %v6273_v21, -inf }
0x138b   : > { %3348 = vmax.xlane.f32.xlu0 %v3347_v2  ;;  %v3327_v3 = vpop.f32.mrf.mxu0  ;;  %v5765_v2 = vld [vmem:[%s8138_s15] ss:$0 sm:$0xff] }
0x138c   : > { %v3341_v61 = vsel %vm2556_vm5, %v3327_v3, -inf }
0x138d   : > { %3342 = vmax.xlane.f32.xlu1 %v3341_v61  ;;  %v6274_v50 = vpop.f32.mrf.mxu0 }
0x138f   : > { %v3330_v63 = vpop.f32.mrf.mxu0 }
0x1390   : > { %v3344_v32 = vsel %vm2556_vm5, %v3330_v63, -inf }
0x1391   : > { %3345 = vmax.xlane.f32.xlu1 %v3344_v32 }
0x13a2   : > { %3378 = vrot.lane.b32.xlu1 %v7580_v53, %s8163_s6 }
0x1414   : > { %v3349_v24 = vpop.xlane.xlu0 %3348 }
0x1415   : > { %v3352_v4 = vsub.f32 %v6273_v21, %v3349_v24 }
0x1416   : > { %v3343_v8 = vpop.xlane.xlu1 %3342 }
0x1417   : > { %v3357_v26 = vmul.f32 1.442695, %v3352_v4  ;;  %v3350_v5 = vsub.f32 %v3327_v3, %v3343_v8 }
0x1419   : > { %6743 = vpow2.f32 %v3357_v26  ;;  %v3353_v14 = vmul.f32 1.442695, %v3350_v5 }
0x141a   : > { %v3346_v17 = vpop.xlane.xlu1 %3345 }
0x141b   : > { %6745 = vpow2.f32 %v3353_v14  ;;  %v3351_v22 = vsub.f32 %v3330_v63, %v3346_v17 }
0x141d   : > { %v3355_v49 = vmul.f32 1.442695, %v3351_v22 }
0x141e   : > { %v3379_v35 = vpop.permute.xlu1 %3378 }
0x141f   : > { %6747 = vpow2.f32 %v3355_v49  ;;  %v3388_v31 = vand.u32 %v3379_v35, %v7482_v15 }
0x1421   : > { %6275 = vmatprep.subr.bf16.mxu1 %v3388_v31 }
0x1422   : > { %6276 = vmatpush3.bf16.msra.mxu1 %v3388_v31 }
0x1426   : > { %v6744_v9 = vpop.eup %6743 }
0x1427   : > { %v3365_v53 = vsel %vm2563_vm6, %v6744_v9, 0.0 }
0x1428   : > { %v6746_v33 = vpop.eup %6745  ;;  %3366 = vadd.xlane.f32.xlu1 %v3365_v53 }
0x1429   : > { %v3359_v34 = vsel %vm2556_vm5, %v6746_v33, 0.0 }
0x142c   : > { %v6748_v36 = vpop.eup %6747  ;;  %3360 = vadd.xlane.f32.xlu1 %v3359_v34 }
0x142d   : > { %v3362_v37 = vsel %vm2556_vm5, %v6748_v36, 0.0 }
0x1430   : > { %3363 = vadd.xlane.f32.xlu1 %v3362_v37 }
0x1431   : > { %v6267_v39 = vpop.f32.mrf.mxu1 }
0x1432   : > { %v3240_v41 = vadd.f32 %v6267_v39, %v2974_v38 }
0x1433   : > { %v3224_v45 = vpop.f32.mrf.mxu1 }
0x1434   : > { %v3238_v46 = vadd.f32 %v3224_v45, %v2966_v40  ;;  %v6613_v40 = vld [vmem:[%s8141_s18 + $0x18] sm:$0xff]   ;;  %v6615_v45 = vld [vmem:[%s8141_s18 + $0x8] sm:$0xff]  }
0x1435   : > { %v6268_v18 = vpop.f32.mrf.mxu1 }
0x1437   : > { %v3227_v0 = vpop.f32.mrf.mxu1 }
0x1438   : > { %v3239_v61 = vadd.f32 %v3227_v0, %v2969_v19 }
0x1441   : > { %3376 = vrot.lane.b32.xlu1 %v7568_v42, %s8163_s6  ;;  %v6612_v42 = vld [vmem:[%s8137_s14 + $0x18] sm:$0xff]  }
0x1442   : > { %6283 = vmatprep.subr.bf16.mxu0 %v6612_v42 }
0x1443   : > { %6284 = vmatpush3.bf16.msra.mxu0 %v6612_v42 }
0x14b1   : > { %v3367_v47 = vpop.xlane.xlu1 %3366 }
0x14b2   : > { %6749 = vrcp.f32 %v3367_v47 }
0x14b5   : > { %v3361_v20 = vpop.xlane.xlu1 %3360 }
0x14b6   : > { %6751 = vrcp.f32 %v3361_v20 }
0x14b9   : > { %v3364_v23 = vpop.xlane.xlu1 %3363 }
0x14ba   : > { %6753 = vrcp.f32 %v3364_v23 }
0x14bd   : > { %v3377_v52 = vpop.permute.xlu1 %3376 }
0x14be   : > { %6277 = vmatprep.subr.bf16.mxu1 %v3377_v52 }
0x14bf   : > { %6278 = vmatpush3.bf16.msra.mxu1 %v3377_v52  ;;  %v6750_v6 = vpop.eup %6749 }
0x14c0   : > { %v3373_v44 = vmul.f32 %v6750_v6, %v6744_v9  ;;  %6289 = vmatprep.subr.bf16.mxu1 %v6613_v40 }
0x14c2   : > { %v3375_v60 = vpack.c.bf16 %v3373_v44, %v3373_v44 }
0x14c3   : > { %v6752_v1 = vpop.eup %6751 }
0x14c4   : > { %v3371_v10 = vmul.f32 %v6752_v1, %v6746_v33 }
0x14c7   : > { %v6754_v48 = vpop.eup %6753 }
0x14c8   : > { %v3372_v59 = vmul.f32 %v6754_v48, %v6748_v36 }
0x14ca   : > { %v3374_v54 = vpack.c.bf16 %v3372_v59, %v3371_v10 }
0x14cc   : > { %6279 = vmatprep.mubr.msk.bf16.mxu1 %vm2556_vm5, %v3374_v54  ;;  %v5766_v54 = vld [vmem:[%s8139_s16] ss:$0 sm:$0xff] }
0x14cd   : > { %6280 = vmatmul.mubr.msk.bf16.vlgmr.msra.gmra.mxu1 %vm2556_vm5, %v3375_v60 }
0x14ce   : > { %6290 = vmatpush3.bf16.msra.mxu1 %v6613_v40 }
0x158d   : > { %v6281_v62 = vpop.f32.mrf.mxu1 }
0x158e   : > { %v3439_v13 = vpack.c.bf16 %v6281_v62, %v6281_v62  ;;  %v5767_v62 = vld [vmem:[%s8140_s17] ss:$0 sm:$0xff] }
0x158f   : > { %v3424_v28 = vpop.f32.mrf.mxu1 }
0x1591   : > { %v6282_v55 = vpop.f32.mrf.mxu1 }
0x1593   : > { %v3427_v7 = vpop.f32.mrf.mxu1 }
0x1594   : > { %v3438_v11 = vpack.c.bf16 %v3427_v7, %v3424_v28 }
0x1596   : > { %6285 = vmatprep.mubr.msk.bf16.mxu0 %vm2501_vm2, %v3438_v11 }
0x1597   : > { %6286 = vmatmul.mubr.msk.bf16.vlgmr.msra.gmra.mxu0 %vm2501_vm2, %v3439_v13 }
0x1657   : > { %v6287_v58 = vpop.f32.mrf.mxu0 }
0x1658   : > { %v3502_v50 = vadd.f32 %v6287_v58, %v3240_v41  ;;  %v6614_v41 = vld [vmem:[%s8141_s18 + $0x10] sm:$0xff]  }
0x1659   : > { %v3486_v57 = vpop.f32.mrf.mxu0  ;;  %6291 = vmatprep.subr.bf16.mxu1 %v6614_v41 }
0x165a   : > { %v3500_v21 = vadd.f32 %v3486_v57, %v3238_v46  ;;  %v3512_v8 = vadd.f32 %v5765_v2, %v3502_v50  ;;  %6292 = vmatpush3.bf16.msra.mxu1 %v6614_v41  ;;  %v6616_v46 = vld [vmem:[%s8141_s18] sm:$0xff]  }
0x165b   : > { %v6288_v3 = vpop.f32.mrf.mxu0  ;;  %6293 = vmatprep.subr.bf16.mxu1 %v6615_v45  ;;  %v6620_v50 = vld [vmem:[%s8143_s20 + $0x20] sm:$0xff]  }
0x165c   : > { %v3510_v63 = vadd.f32 %v5765_v2, %v3500_v21  ;;  %v3515_v14 = vadd.f32 %v3512_v8, %v7544_v27  ;;  %v6618_v3 = vld [vmem:[%s8143_s20 + $0x30] sm:$0xff]   ;;  %v5768_v8 = vld [vmem:[%s8142_s19] ss:$0 sm:$0xff] }
0x165d   : > { %v3489_v32 = vpop.f32.mrf.mxu0 }
0x165e   : > { %v3501_v24 = vadd.f32 %v3489_v32, %v3239_v61  ;;  %v3513_v4 = vadd.f32 %v3510_v63, %v7534_v25  ;;  %v3525_v17 = vsel %vm3524_vm7, %v3515_v14, 0.0  ;;  %6294 = vmatpush3.bf16.msra.mxu1 %v6615_v45  ;;  %v6619_v61 = vld [vmem:[%s8143_s20 + $0x28] sm:$0xff]   ;;  %v6621_v63 = vld [vmem:[%s8143_s20 + $0x18] sm:$0xff]   ;;  %v6622_v32 = vld [vmem:[%s8143_s20 + $0x10] sm:$0xff]  }
0x165f   : > { %6295 = vmatprep.subr.bf16.mxu1 %v6616_v46 }
0x1660   : > { %v3511_v26 = vadd.f32 %v5765_v2, %v3501_v24  ;;  %v3518_v5 = vsel %vm1381_vm8, %v3513_v4, 0.0  ;;  %v6617_v2 = vld [vmem:[%s8143_s20 + $0x38] sm:$0xff]   ;;  %v6623_v24 = vld [vmem:[%s8143_s20 + $0x8] sm:$0xff]  }
0x1661   : > { %3519 = vadd.xlane.f32.xlu1 %v3518_v5  ;;  %6301 = vmatprep.subr.bf16.mxu0 %v6617_v2 }
0x1662   : > { %v3514_v30 = vadd.f32 %v3511_v26, %v7537_v16  ;;  %6296 = vmatpush3.bf16.msra.mxu1 %v6616_v46  ;;  %6302 = vmatpush3.bf16.msra.mxu0 %v6617_v2 }
0x1663   : > { %6303 = vmatprep.subr.bf16.mxu0 %v6618_v3 }
0x1664   : > { %v3521_v56 = vsel %vm1381_vm8, %v3514_v30, 0.0 }
0x1665   : > { %3522 = vadd.xlane.f32.xlu0 %v3521_v56 }
0x1666   : > { %6304 = vmatpush3.bf16.msra.mxu0 %v6618_v3 }
0x1667   : > { %6305 = vmatprep.subr.bf16.mxu0 %v6619_v61 }
0x1669   : > { %3526 = vadd.xlane.f32.xlu0 %v3525_v17 }
0x166a   : > { %6306 = vmatpush3.bf16.msra.mxu0 %v6619_v61 }
0x166b   : > { %6307 = vmatprep.subr.bf16.mxu0 %v6620_v50 }
0x166e   : > { %6308 = vmatpush3.bf16.msra.mxu0 %v6620_v50 }
0x166f   : > { %6309 = vmatprep.subr.bf16.mxu0 %v6621_v63 }
0x1672   : > { %6310 = vmatpush3.bf16.msra.mxu0 %v6621_v63 }
0x1673   : > { %6311 = vmatprep.subr.bf16.mxu0 %v6622_v32 }
0x1676   : > { %6312 = vmatpush3.bf16.msra.mxu0 %v6622_v32 }
0x1677   : > { %6313 = vmatprep.subr.bf16.mxu0 %v6623_v24 }
0x167a   : > { %6314 = vmatpush3.bf16.msra.mxu0 %v6623_v24 }
0x16ea   : > { %v3520_v22 = vpop.xlane.xlu1 %3519 }
0x16eb   : > { %v3529_v49 = vmul.f32 0.015625, %v3520_v22 }
0x16ed   : > { %v3532_v35 = vsub.f32 %v3513_v4, %v3529_v49  ;;  %v6624_v4 = vld [vmem:[%s8143_s20] sm:$0xff]  }
0x16ee   : > { %v3523_v25 = vpop.xlane.xlu0 %3522  ;;  %6315 = vmatprep.subr.bf16.mxu0 %v6624_v4 }
0x16ef   : > { %v3530_v31 = vmul.f32 0.015625, %v3523_v25  ;;  %v3535_v9 = vmul.f32 %v3532_v35, %v3532_v35  ;;  %6316 = vmatpush3.bf16.msra.mxu0 %v6624_v4 }
0x16f1   : > { %v3533_v53 = vsub.f32 %v3514_v30, %v3530_v31  ;;  %v3538_v33 = vsel %vm1381_vm8, %v3535_v9, 0.0 }
0x16f2   : > { %3539 = vadd.xlane.f32.xlu0 %v3538_v33  ;;  %v3527_v16 = vpop.xlane.xlu0 %3526 }
0x16f3   : > { %v3531_v34 = vmul.f32 0.015625, %v3527_v16  ;;  %v3536_v36 = vmul.f32 %v3533_v53, %v3533_v53 }
0x16f5   : > { %v3534_v37 = vsub.f32 %v3515_v14, %v3531_v34  ;;  %v3541_v27 = vsel %vm1381_vm8, %v3536_v36, 0.0 }
0x16f6   : > { %3542 = vadd.xlane.f32.xlu0 %v3541_v27 }
0x16f7   : > { %v3537_v38 = vmul.f32 %v3534_v37, %v3534_v37 }
0x16f9   : > { %v3544_v39 = vsel %vm3524_vm7, %v3537_v38, 0.0 }
0x16fa   : > { %3545 = vadd.xlane.f32.xlu0 %v3544_v39 }
0x177b   : > { %v3540_v18 = vpop.xlane.xlu0 %3539 }
0x177c   : > { %v3547_v47 = vmul.f32 0.015625, %v3540_v18 }
0x177e   : > { %v3550_v20 = vadd.f32 1e-05, %v3547_v47 }
0x177f   : > { %v3543_v23 = vpop.xlane.xlu0 %3542 }
0x1780   : > { %6755 = vrsqrt.f32 %v3550_v20  ;;  %v3548_v52 = vmul.f32 0.015625, %v3543_v23 }
0x1782   : > { %v3551_v6 = vadd.f32 1e-05, %v3548_v52 }
0x1783   : > { %v3546_v1 = vpop.xlane.xlu0 %3545 }
0x1784   : > { %6757 = vrsqrt.f32 %v3551_v6  ;;  %v3549_v48 = vmul.f32 0.015625, %v3546_v1 }
0x1786   : > { %v3552_v44 = vadd.f32 1e-05, %v3549_v48 }
0x1788   : > { %6759 = vrsqrt.f32 %v3552_v44 }
0x178d   : > { %v6756_v10 = vpop.eup %6755 }
0x178e   : > { %v3556_v59 = vmul.f32 %v6756_v10, %v3532_v35 }
0x1790   : > { %v3565_v0 = vmul.f32 %v5766_v54, %v3556_v59 }
0x1791   : > { %v6758_v60 = vpop.eup %6757 }
0x1792   : > { %v3557_v42 = vmul.f32 %v6758_v60, %v3533_v53  ;;  %v7753_v11 = vadd.f32 %v5767_v62, %v3565_v0 }
0x1794   : > { %v3566_v28 = vmul.f32 %v5766_v54, %v3557_v42 }
0x1795   : > { %v6760_v55 = vpop.eup %6759 }
0x1796   : > { %v3558_v7 = vmul.f32 %v6760_v55, %v3534_v37  ;;  %v7755_v13 = vadd.f32 %v5767_v62, %v3566_v28 }
0x1798   : > { %v3585_v58 = vpack.c.bf16 %v7755_v13, %v7753_v11  ;;  %v3567_v57 = vmul.f32 %v5766_v54, %v3558_v7  ;;  %v5775_v54 = vld [vmem:[%s8144_s21] ss:$0 sm:$0xff] }
0x179a   : > { %6297 = vmatprep.mubr.msk.bf16.mxu1 %vm1381_vm8, %v3585_v58  ;;  %v7760_v19 = vadd.f32 %v5767_v62, %v3567_v57 }
0x179c   : > { %v3586_v21 = vpack.c.bf16 %v7760_v19, %v7760_v19 }
0x179e   : > { %6298 = vmatmul.mubr.msk.bf16.vlgmr.msra.gmra.mxu1 %vm1381_vm8, %v3586_v21 }
0x179f   : > { %3993 = vmatprep.mubr.bf16.mxu1 %v6858_v51 }
0x185e   : > { %v6299_v26 = vpop.f32.mrf.mxu1 }
0x185f   : > { %v3667_v5 = vadd.f32 %v6299_v26, %v5768_v8 }
0x1860   : > { %v3658_v30 = vpop.f32.mrf.mxu1 }
0x1861   : > { %v3677_v56 = vmul.f32 0.044715, %v3667_v5  ;;  %v3659_v14 = vadd.f32 %v5768_v8, %v3658_v30  ;;  %v3674_v20 = vmul.f32 0.5, %v3667_v5 }
0x1862   : > { %v6300_v17 = vpop.f32.mrf.mxu1 }
0x1863   : > { %v3680_v22 = vmul.f32 %v3677_v56, %v3667_v5  ;;  %v3675_v49 = vmul.f32 0.044715, %v3659_v14  ;;  %v3672_v23 = vmul.f32 0.5, %v3659_v14 }
0x1864   : > { %v3661_v35 = vpop.f32.mrf.mxu1 }
0x1865   : > { %v3683_v25 = vmul.f32 %v3680_v22, %v3667_v5  ;;  %v3678_v31 = vmul.f32 %v3675_v49, %v3659_v14  ;;  %v3662_v9 = vadd.f32 %v5768_v8, %v3661_v35  ;;  %v6625_v22 = vld [vmem:[%s8199_s0 + $0x70] ss:$8 sps:$4 sm:$0xff]   ;;  %v6627_v49 = vld [vmem:[%s8199_s0 + $0x74] ss:$8 sps:$4 sm:$0xff]   ;;  %v6630_v35 = vld [vmem:[%s8199_s0 + $0x64] ss:$8 sps:$4 sm:$0xff]  }
0x1866   : > { %3969 = vmatprep.subr.bf16.mxu1 %v6627_v49 }
0x1867   : > { %v3686_v53 = vadd.f32 %v3683_v25, %v3667_v5  ;;  %v3681_v33 = vmul.f32 %v3678_v31, %v3659_v14  ;;  %v3676_v16 = vmul.f32 0.044715, %v3662_v9  ;;  %v3673_v52 = vmul.f32 0.5, %v3662_v9  ;;  %3970 = vmatpush1.bf16.msra.mxu1 %v6625_v22  ;;  %v6628_v25 = vld [vmem:[%s8199_s0 + $0x60] ss:$8 sps:$4 sm:$0xff]  }
0x1868   : > { %3971 = vmatprep.subr.bf16.mxu1 %v6630_v35  ;;  %v6633_v31 = vld [vmem:[%s8199_s0 + $0x54] ss:$8 sps:$4 sm:$0xff]  }
0x1869   : > { %v3689_v34 = vmul.f32 0.7978846, %v3686_v53  ;;  %v3679_v36 = vmul.f32 %v3676_v16, %v3662_v9  ;;  %v3684_v37 = vadd.f32 %v3681_v33, %v3659_v14  ;;  %v6636_v53 = vld [vmem:[%s8199_s0 + $0x44] ss:$8 sps:$4 sm:$0xff]   ;;  %v6634_v33 = vld [vmem:[%s8199_s0 + $0x40] ss:$8 sps:$4 sm:$0xff]  }
0x186b   : > { %v3682_v27 = vmul.f32 %v3679_v36, %v3662_v9  ;;  %v3687_v38 = vmul.f32 0.7978846, %v3684_v37  ;;  %6761 = vtanh.f32 %v3689_v34  ;;  %3972 = vmatpush1.bf16.msra.mxu1 %v6628_v25 }
0x186c   : > { %3973 = vmatprep.subr.bf16.mxu1 %v6633_v31 }
0x186d   : > { %v3685_v39 = vadd.f32 %v3682_v27, %v3662_v9  ;;  %6763 = vtanh.f32 %v3687_v38  ;;  %v6631_v9 = vld [vmem:[%s8199_s0 + $0x50] ss:$8 sps:$4 sm:$0xff]  }
0x186f   : > { %v3688_v40 = vmul.f32 0.7978846, %v3685_v39  ;;  %3974 = vmatpush1.bf16.msra.mxu1 %v6631_v9 }
0x1870   : > { %3975 = vmatprep.subr.bf16.mxu1 %v6636_v53 }
0x1871   : > { %6765 = vtanh.f32 %v3688_v40 }
0x1873   : > { %3976 = vmatpush1.bf16.msra.mxu1 %v6634_v33 }
0x1878   : > { %v6762_v41 = vpop.eup %6761 }
0x1879   : > { %v3695_v46 = vadd.f32 1.0, %v6762_v41 }
0x187a   : > { %v6764_v45 = vpop.eup %6763 }
0x187b   : > { %v3693_v18 = vadd.f32 1.0, %v6764_v45  ;;  %v3698_v1 = vmul.f32 %v3695_v46, %v3674_v20 }
0x187d   : > { %v3696_v48 = vmul.f32 %v3693_v18, %v3672_v23  ;;  %v3716_v59 = vpack.c.bf16 %v3698_v1, %v3698_v1  ;;  %v5784_v18 = vld [vmem:[%s8145_s22] ss:$0 sm:$0xff] }
0x187e   : > { %v6766_v47 = vpop.eup %6765 }
0x187f   : > { %v3694_v6 = vadd.f32 1.0, %v6766_v47 }
0x1881   : > { %v3697_v44 = vmul.f32 %v3694_v6, %v3673_v52  ;;  %v5785_v6 = vld [vmem:[%s8146_s23] ss:$0 sm:$0xff] }
0x1883   : > { %v3715_v10 = vpack.c.bf16 %v3697_v44, %v3696_v48 }
0x1885   : > { %6317 = vmatprep.mubr.bf16.mxu0 %v3715_v10 }
0x1886   : > { %6318 = vmatmul.mubr.bf16.vlgmr.msra.gmra.mxu0 %v3716_v59 }
0x1946   : > { %v6319_v60 = vpop.f32.mrf.mxu0 }
0x1947   : > { %v3815_v42 = vadd.f32 %v6319_v60, %v5775_v54 }
0x1948   : > { %v3806_v0 = vpop.f32.mrf.mxu0 }
0x1949   : > { %v3807_v62 = vadd.f32 %v5775_v54, %v3806_v0  ;;  %v3822_v28 = vadd.f32 %v3815_v42, %v7760_v19  ;;  %v5802_v0 = vld [vmem:[%s8136_s13 + $0x2] sm:$0x3] }
0x194a   : > { %v6320_v55 = vpop.f32.mrf.mxu0 }
0x194b   : > { %v3831_v7 = vsel %vm3524_vm7, %v3822_v28, 0.0  ;;  %v3820_v58 = vadd.f32 %v3807_v62, %v7753_v11  ;;  %v3908_v62 = vrot.slane %v5802_v0, %v2346_v12  ;;  %v3912_v12 = vrot.slane %v5802_v0, %v2350_v29 }
0x194c   : > { %3832 = vadd.xlane.f32.xlu1 %v3831_v7  ;;  %v3809_v57 = vpop.f32.mrf.mxu0 }
0x194d   : > { %v3810_v21 = vadd.f32 %v5775_v54, %v3809_v57  ;;  %v3825_v2 = vsel %vm1381_vm8, %v3820_v58, 0.0 }
0x194e   : > { %3826 = vadd.xlane.f32.xlu0 %v3825_v2 }
0x194f   : > { %v3821_v3 = vadd.f32 %v3810_v21, %v7755_v13 }
0x1951   : > { %v3828_v61 = vsel %vm1381_vm8, %v3821_v3, 0.0 }
0x1952   : > { %3829 = vadd.xlane.f32.xlu0 %v3828_v61 }
0x19d5   : > { %v3833_v50 = vpop.xlane.xlu1 %3832 }
0x19d6   : > { %v3836_v63 = vmul.f32 0.015625, %v3833_v50 }
0x19d7   : > { %v3827_v32 = vpop.xlane.xlu0 %3826 }
0x19d8   : > { %v3834_v19 = vmul.f32 0.015625, %v3827_v32  ;;  %v3839_v24 = vsub.f32 %v3822_v28, %v3836_v63 }
0x19da   : > { %v3837_v4 = vsub.f32 %v3820_v58, %v3834_v19  ;;  %v3842_v56 = vmul.f32 %v3839_v24, %v3839_v24 }
0x19db   : > { %v3830_v8 = vpop.xlane.xlu0 %3829 }
0x19dc   : > { %v3835_v26 = vmul.f32 0.015625, %v3830_v8  ;;  %v3840_v11 = vmul.f32 %v3837_v4, %v3837_v4  ;;  %v3849_v13 = vsel %vm3524_vm7, %v3842_v56, 0.0 }
0x19de   : > { %v3838_v5 = vsub.f32 %v3821_v3, %v3835_v26  ;;  %v3843_v30 = vsel %vm1381_vm8, %v3840_v11, 0.0 }
0x19df   : > { %3844 = vadd.xlane.f32.xlu0 %v3843_v30 }
0x19e0   : > { %v3841_v14 = vmul.f32 %v3838_v5, %v3838_v5 }
0x19e2   : > { %v3846_v17 = vsel %vm1381_vm8, %v3841_v14, 0.0 }
0x19e3   : > { %3850 = vadd.xlane.f32.xlu0 %v3849_v13  ;;  %3847 = vadd.xlane.f32.xlu1 %v3846_v17 }
0x1a68   : > { %v3845_v16 = vpop.xlane.xlu0 %3844 }
0x1a69   : > { %v3852_v34 = vmul.f32 0.015625, %v3845_v16 }
0x1a6b   : > { %v3855_v36 = vadd.f32 1e-05, %v3852_v34 }
0x1a6c   : > { %v3848_v37 = vpop.xlane.xlu1 %3847  ;;  %v3851_v27 = vpop.xlane.xlu0 %3850 }
0x1a6d   : > { %6767 = vrsqrt.f32 %v3855_v36  ;;  %v3853_v38 = vmul.f32 0.015625, %v3848_v37  ;;  %v3854_v39 = vmul.f32 0.015625, %v3851_v27 }
0x1a6f   : > { %v3856_v40 = vadd.f32 1e-05, %v3853_v38  ;;  %v3857_v41 = vadd.f32 1e-05, %v3854_v39 }
0x1a71   : > { %6769 = vrsqrt.f32 %v3856_v40 }
0x1a72   : > { %6771 = vrsqrt.f32 %v3857_v41 }
0x1a7a   : > { %v6768_v45 = vpop.eup %6767 }
0x1a7b   : > { %v3861_v46 = vmul.f32 %v6768_v45, %v3837_v4 }
0x1a7d   : > { %v3870_v52 = vmul.f32 %v5784_v18, %v3861_v46 }
0x1a7e   : > { %v6770_v47 = vpop.eup %6769 }
0x1a7f   : > { %v6772_v20 = vpop.eup %6771  ;;  %v3862_v23 = vmul.f32 %v6770_v47, %v3838_v5  ;;  %v7835_v44 = vadd.f32 %v5785_v6, %v3870_v52 }
0x1a80   : > { %v3863_v48 = vmul.f32 %v6772_v20, %v3839_v24 }
0x1a81   : > { %v3871_v1 = vmul.f32 %v5784_v18, %v3862_v23 }
0x1a82   : > { %v3872_v54 = vmul.f32 %v5784_v18, %v3863_v48 }
0x1a83   : > { %v7837_v10 = vadd.f32 %v5785_v6, %v3871_v1 }
0x1a84   : > { %v7843_v60 = vadd.f32 %v5785_v6, %v3872_v54 }
0x1a85   : > { %v3900_v59 = vpack.c.bf16 %v7837_v10, %v7835_v44 }
0x1a86   : > { %v3901_v42 = vpack.c.bf16 %v7843_v60, %v7843_v60 }
0x1a87   : > { %5811 = vmatmul.mubr.msk.bf16.vlgmr.msra.gmra.mxu1 %vm1381_vm8, %v3900_v59 }
0x1a88   : > { %4003 = vmatprep.mubr.bf16.mxu1 %v6858_v51 }
0x1a8f   : > { %5812 = vmatmul.mubr.msk.bf16.gmra.mxu1 %vm1381_vm8, %v3901_v42 }
0x1b47   : > { %v3995_v28 = vpop.f32.mrf.mxu1 }
0x1b48   : > { %v7853_v55 = vadd.f32 %v3995_v28, %v3908_v62 }
0x1b49   : > { %v3997_v7 = vpop.f32.mrf.mxu1 }
0x1b4a   : > { %4018 = vrot.lane.b32.xlu1 %v7853_v55, %s8201_s3  ;;  %v4012_v21 = vmul.f32 0.25, %v7853_v55  ;;  %v3998_v29 = vadd.f32 %v3997_v7, %v3912_v12 }
0x1b4b   : > { %v3999_v51 = vpop.f32.mrf.mxu1 }
0x1b4c   : > { %v7857_v58 = vadd.f32 %v3999_v51, %v3908_v62 }
0x1b4d   : > { %v4001_v57 = vpop.f32.mrf.mxu1 }
0x1b4e   : > { %4020 = vrot.lane.b32.xlu0 %v7857_v58, %s8201_s3  ;;  %v4013_v2 = vmul.f32 0.25, %v7857_v58  ;;  %v4002_v24 = vadd.f32 %v4001_v57, %v3912_v12 }
0x1b4f   : > { %v4005_v3 = vpop.f32.mrf.mxu1 }
0x1b50   : > { %v7865_v61 = vadd.f32 %v4005_v3, %v3908_v62  ;;  %v7867_v50 = vpack.c.bf16 %v4013_v2, %v4012_v21  ;;  %v7883_v26 = vpack.c.bf16 %v4002_v24, %v3998_v29 }
0x1b51   : > { %v4007_v63 = vpop.f32.mrf.mxu1 }
0x1b52   : > { %v4008_v32 = vadd.f32 %v4007_v63, %v3912_v12  ;;  %4214 = vrot.lane.b32.xlu0 %v7857_v58, %s8203_s7  ;;  %6323 = vmatprep.mubr.msk.bf16.mxu0 %vm2501_vm2, %v7867_v50  ;;  %v4014_v11 = vmul.f32 0.25, %v7865_v61 }
0x1b53   : > { %4022 = vrot.lane.b32.xlu1 %v7865_v61, %s8201_s3  ;;  %v4009_v19 = vpop.f32.mrf.mxu1  ;;  %s8205_s3 = smov 96  }
0x1b54   : > { %v7875_v4 = vpack.c.bf16 %v4008_v32, %v4008_v32  ;;  %v7890_v5 = vpack.c.bf16 %v4014_v11, %v4014_v11 }
0x1b55   : > { %v4010_v43 = vpop.f32.mrf.mxu1 }
0x1b56   : > { %4256 = vrot.lane.b32.xlu0 %v7867_v50, %s8204_s11  ;;  %v4160_v8 = vand.u32 %v7875_v4, %v7482_v15 }
0x1b57   : > { %4212 = vrot.lane.b32.xlu1 %v7853_v55, %s8203_s7 }
0x1b58   : > { %6327 = vmatprep.subr.bf16.mxu1 %v4160_v8 }
0x1b59   : > { %6328 = vmatpush3.bf16.msra.mxu1 %v4160_v8 }
0x1b5a   : > { %6329 = vmatprep.subr.bf16.mxu1 %v7883_v26 }
0x1b5b   : > { %4216 = vrot.lane.b32.xlu1 %v7865_v61, %s8203_s7 }
0x1b5d   : > { %6330 = vmatpush3.bf16.msra.mxu1 %v7883_v26 }
0x1b5f   : > { %4258 = vrot.lane.b32.xlu1 %v7890_v5, %s8204_s11 }
0x1bbc   : > { %v4019_v30 = vpop.permute.xlu1 %4018 }
0x1bbd   : > { %4027 = vxpose.xlu0.b32.start [1/3] (short) (narrow) %v4019_v30, 16 }
0x1bc0   : > { %v4021_v56 = vpop.permute.xlu0 %4020 }
0x1bc1   : > { %4028 = vxpose.xlu0.b32.cont [2/3] (short) (narrow) %v4021_v56, 16 }
0x1bc4   : > { %v4215_v17 = vpop.permute.xlu0 %4214 }
0x1bc5   : > { %v4023_v14 = vpop.permute.xlu1 %4022 }
0x1bc6   : > { %4029 = vxpose.xlu0.b32.end [3/3] (short) (narrow) %v4023_v14, 16 }
0x1bc8   : > { %v4257_v49 = vpop.permute.xlu0 %4256 }
0x1bc9   : > { %v4213_v13 = vpop.permute.xlu1 %4212 }
0x1bca   : > { %4221 = vxpose.xlu1.b32.start [1/3] (short) (narrow) %v4213_v13, 16 }
0x1bcd   : > { %v4217_v22 = vpop.permute.xlu1 %4216 }
0x1bce   : > { %4222 = vxpose.xlu1.b32.cont [2/3] (short) (narrow) %v4215_v17, 16 }
0x1bd1   : > { %v4259_v9 = vpop.permute.xlu1 %4258 }
0x1bd2   : > { %4223 = vxpose.xlu1.b32.end [3/3] (short) (narrow) %v4217_v22, 16 }
0x1c3a   : > { %v4043_v35 = vpop.trf.xlu0 }
0x1c3e   : > { %v4044_v25 = vpop.trf.xlu0 }
0x1c3f   : > { %v4061_v31 = vpack.c.bf16 %v4044_v25, %v4043_v35 }
0x1c41   : > { %6321 = vmatprep.subr.bf16.mxu0 %v4061_v31 }
0x1c42   : > { %6322 = vmatpush3.bf16.msra.mxu0 %v4061_v31 }
0x1c45   : > { %6324 = vmatmul.mubr.msk.bf16.vlgmr.msra.gmra.mxu0 %vm2501_vm2, %v7890_v5 }
0x1c46   : > { %v4237_v53 = vpop.trf.xlu1  ;;  %6337 = vmatprep.mubr.msk.bf16.mxu0 %vm2501_vm2, %v4257_v49 }
0x1c4a   : > { %v4238_v33 = vpop.trf.xlu1 }
0x1c4b   : > { %v4253_v16 = vpack.c.bf16 %v4238_v33, %v4237_v53 }
0x1c4d   : > { %6335 = vmatprep.subr.bf16.mxu0 %v4253_v16 }
0x1c4e   : > { %6336 = vmatpush3.bf16.msra.mxu0 %v4253_v16 }
0x1c51   : > { %6338 = vmatmul.mubr.msk.bf16.vlgmr.msra.gmra.mxu0 %vm2501_vm2, %v4259_v9 }
0x1d05   : > { %v6325_v34 = vpop.f32.mrf.mxu0 }
0x1d06   : > { %v4122_v39 = vsel %vm2563_vm6, %v6325_v34, -inf }
0x1d07   : > { %v4102_v36 = vpop.f32.mrf.mxu0 }
0x1d08   : > { %v4116_v37 = vsel %vm2556_vm5, %v4102_v36, -inf }
0x1d09   : > { %4117 = vmax.xlane.f32.xlu0 %v4116_v37  ;;  %v6326_v27 = vpop.f32.mrf.mxu0 }
0x1d0b   : > { %v4105_v38 = vpop.f32.mrf.mxu0 }
0x1d0c   : > { %v4119_v40 = vsel %vm2556_vm5, %v4105_v38, -inf }
0x1d0d   : > { %4123 = vmax.xlane.f32.xlu0 %v4122_v39  ;;  %4120 = vmax.xlane.f32.xlu1 %v4119_v40 }
0x1d11   : > { %v6339_v41 = vpop.f32.mrf.mxu0 }
0x1d12   : > { %v4320_v20 = vsel %vm2563_vm6, %v6339_v41, -inf }
0x1d13   : > { %v4300_v45 = vpop.f32.mrf.mxu0 }
0x1d14   : > { %v4314_v46 = vsel %vm2556_vm5, %v4300_v45, -inf }
0x1d15   : > { %4315 = vmax.xlane.f32.xlu0 %v4314_v46  ;;  %v6340_v18 = vpop.f32.mrf.mxu0 }
0x1d17   : > { %v4303_v47 = vpop.f32.mrf.mxu0 }
0x1d18   : > { %v4317_v23 = vsel %vm2556_vm5, %v4303_v47, -inf }
0x1d19   : > { %4321 = vmax.xlane.f32.xlu0 %v4320_v20  ;;  %4318 = vmax.xlane.f32.xlu1 %v4317_v23 }
0x1d92   : > { %v4118_v52 = vpop.xlane.xlu0 %4117 }
0x1d93   : > { %v4125_v6 = vsub.f32 %v4102_v36, %v4118_v52 }
0x1d95   : > { %v4128_v42 = vmul.f32 1.442695, %v4125_v6 }
0x1d96   : > { %v4124_v1 = vpop.xlane.xlu0 %4123  ;;  %v4121_v48 = vpop.xlane.xlu1 %4120 }
0x1d97   : > { %v4127_v59 = vsub.f32 %v6325_v34, %v4124_v1  ;;  %v4126_v54 = vsub.f32 %v4105_v38, %v4121_v48 }
0x1d99   : > { %v4132_v0 = vmul.f32 1.442695, %v4127_v59  ;;  %v4130_v62 = vmul.f32 1.442695, %v4126_v54  ;;  %v6637_v54 = vld [vmem:[%s8137_s14 + $0x20] sm:$0xff]  }
0x1d9b   : > { %6773 = vpow2.f32 %v4132_v0 }
0x1d9c   : > { %6775 = vpow2.f32 %v4130_v62 }
0x1d9d   : > { %6777 = vpow2.f32 %v4128_v42  ;;  %v6638_v42 = vld [vmem:[%s8137_s14 + $0x28] sm:$0xff]  }
0x1d9e   : > { %v4316_v28 = vpop.xlane.xlu0 %4315  ;;  %6349 = vmatprep.subr.bf16.mxu0 %v6638_v42 }
0x1d9f   : > { %v4323_v7 = vsub.f32 %v4300_v45, %v4316_v28  ;;  %6350 = vmatpush3.bf16.msra.mxu0 %v6638_v42 }
0x1da1   : > { %v4326_v3 = vmul.f32 1.442695, %v4323_v7 }
0x1da2   : > { %v4322_v51 = vpop.xlane.xlu0 %4321  ;;  %v4319_v57 = vpop.xlane.xlu1 %4318 }
0x1da3   : > { %v4325_v21 = vsub.f32 %v6339_v41, %v4322_v51  ;;  %v4324_v2 = vsub.f32 %v4303_v47, %v4319_v57 }
0x1da5   : > { %v4330_v12 = vmul.f32 1.442695, %v4325_v21  ;;  %v4328_v63 = vmul.f32 1.442695, %v4324_v2 }
0x1da7   : > { %6779 = vpow2.f32 %v4330_v12 }
0x1da8   : > { %v6774_v32 = vpop.eup %6773  ;;  %6781 = vpow2.f32 %v4328_v63 }
0x1da9   : > { %v6776_v19 = vpop.eup %6775  ;;  %6783 = vpow2.f32 %v4326_v3  ;;  %v4140_v24 = vsel %vm2563_vm6, %v6774_v32, 0.0 }
0x1daa   : > { %v6778_v43 = vpop.eup %6777  ;;  %4141 = vadd.xlane.f32.xlu1 %v4140_v24  ;;  %v4137_v29 = vsel %vm2556_vm5, %v6776_v19, 0.0 }
0x1dab   : > { %4138 = vadd.xlane.f32.xlu0 %v4137_v29  ;;  %v4134_v8 = vsel %vm2556_vm5, %v6778_v43, 0.0 }
0x1dae   : > { %4135 = vadd.xlane.f32.xlu1 %v4134_v8 }
0x1db4   : > { %v6780_v11 = vpop.eup %6779 }
0x1db5   : > { %v6782_v30 = vpop.eup %6781  ;;  %v4338_v56 = vsel %vm2563_vm6, %v6780_v11, 0.0 }
0x1db6   : > { %v6784_v14 = vpop.eup %6783  ;;  %4339 = vadd.xlane.f32.xlu0 %v4338_v56  ;;  %v4335_v13 = vsel %vm2556_vm5, %v6782_v30, 0.0 }
0x1db7   : > { %4336 = vadd.xlane.f32.xlu1 %v4335_v13  ;;  %v4332_v17 = vsel %vm2556_vm5, %v6784_v14, 0.0 }
0x1dba   : > { %4333 = vadd.xlane.f32.xlu0 %v4332_v17 }
0x1dc8   : > { %4353 = vrot.lane.b32.xlu1 %v7875_v4, %s8204_s11 }
0x1dcc   : > { %4535 = vrot.lane.b32.xlu1 %v7853_v55, %s8202_s4 }
0x1dd0   : > { %4537 = vrot.lane.b32.xlu1 %v7857_v58, %s8202_s4  ;;  %4351 = vrot.lane.b32.xlu0 %v7883_v26, %s8204_s11 }
0x1dd4   : > { %4577 = vrot.lane.b32.xlu1 %v7867_v50, %s8205_s3  ;;  %4539 = vrot.lane.b32.xlu0 %v7865_v61, %s8202_s4  ;;  %s8206_s4 = smov 16  }
0x1dd8   : > { %4579 = vrot.lane.b32.xlu0 %v7890_v5, %s8205_s3 }
0x1e33   : > { %v4142_v22 = vpop.xlane.xlu1 %4141 }
0x1e34   : > { %v4139_v49 = vpop.xlane.xlu0 %4138  ;;  %6785 = vrcp.f32 %v4142_v22 }
0x1e35   : > { %6787 = vrcp.f32 %v4139_v49 }
0x1e37   : > { %v4136_v35 = vpop.xlane.xlu1 %4135 }
0x1e38   : > { %6789 = vrcp.f32 %v4136_v35 }
0x1e3f   : > { %v4340_v25 = vpop.xlane.xlu0 %4339 }
0x1e40   : > { %v4337_v31 = vpop.xlane.xlu1 %4336  ;;  %6791 = vrcp.f32 %v4340_v25 }
0x1e41   : > { %v6786_v9 = vpop.eup %6785  ;;  %6793 = vrcp.f32 %v4337_v31 }
0x1e42   : > { %v6788_v53 = vpop.eup %6787  ;;  %v4148_v36 = vmul.f32 %v6786_v9, %v6774_v32 }
0x1e43   : > { %v4334_v33 = vpop.xlane.xlu0 %4333  ;;  %v4147_v38 = vmul.f32 %v6788_v53, %v6776_v19 }
0x1e44   : > { %6795 = vrcp.f32 %v4334_v33  ;;  %v4354_v16 = vpop.permute.xlu1 %4353  ;;  %v4150_v41 = vpack.c.bf16 %v4148_v36, %v4148_v36 }
0x1e45   : > { %v6790_v34 = vpop.eup %6789  ;;  %v4363_v37 = vand.u32 %v4354_v16, %v7482_v15 }
0x1e46   : > { %v4146_v27 = vmul.f32 %v6790_v34, %v6778_v43  ;;  %v6567_v34 = vpack.i.bf16 %v7857_v58, %v7853_v55 }
0x1e47   : > { %6341 = vmatprep.subr.bf16.mxu1 %v4363_v37  ;;  %v4352_v45 = vpop.permute.xlu0 %4351 }
0x1e48   : > { %v4536_v39 = vpop.permute.xlu1 %4535  ;;  %v4149_v40 = vpack.c.bf16 %v4147_v38, %v4146_v27 }
0x1e49   : > { %4544 = vxpose.xlu1.b32.start [1/3] (short) (narrow) %v4536_v39, 16 }
0x1e4a   : > { %6331 = vmatprep.mubr.msk.bf16.mxu1 %vm2556_vm5, %v4149_v40 }
0x1e4b   : > { %6332 = vmatmul.mubr.msk.bf16.vlgmr.msra.gmra.mxu1 %vm2556_vm5, %v4150_v41  ;;  %v4540_v20 = vpop.permute.xlu0 %4539 }
0x1e4c   : > { %6342 = vmatpush3.bf16.msra.mxu1 %v4363_v37  ;;  %v4538_v46 = vpop.permute.xlu1 %4537 }
0x1e4d   : > { %6343 = vmatprep.subr.bf16.mxu1 %v4352_v45  ;;  %4545 = vxpose.xlu1.b32.cont [2/3] (short) (narrow) %v4538_v46, 16  ;;  %v6792_v18 = vpop.eup %6791 }
0x1e4e   : > { %v6794_v47 = vpop.eup %6793  ;;  %v4346_v52 = vmul.f32 %v6792_v18, %v6780_v11 }
0x1e4f   : > { %v4345_v1 = vmul.f32 %v6794_v47, %v6782_v30  ;;  %v4580_v29 = vpop.permute.xlu0 %4579 }
0x1e50   : > { %6344 = vmatpush3.bf16.msra.mxu1 %v4352_v45  ;;  %v4348_v59 = vpack.c.bf16 %v4346_v52, %v4346_v52  ;;  %v4578_v0 = vpop.permute.xlu1 %4577 }
0x1e51   : > { %v6796_v23 = vpop.eup %6795  ;;  %4546 = vxpose.xlu1.b32.end [3/3] (short) (narrow) %v4540_v20, 16  ;;  %6355 = vmatprep.subr.bf16.mxu1 %v6637_v54 }
0x1e52   : > { %v4344_v6 = vmul.f32 %v6796_v23, %v6784_v14 }
0x1e54   : > { %v4347_v48 = vpack.c.bf16 %v4345_v1, %v4344_v6 }
0x1e56   : > { %6345 = vmatprep.mubr.msk.bf16.mxu1 %vm2556_vm5, %v4347_v48 }
0x1e57   : > { %6346 = vmatmul.mubr.msk.bf16.vlgmr.msra.gmra.mxu1 %vm2556_vm5, %v4348_v59 }
0x1e58   : > { %6356 = vmatpush3.bf16.msra.mxu1 %v6637_v54 }
0x1e6f   : > { %4801 = vrot.lane.b32.xlu1 %v7865_v61, %s8206_s4 }
0x1ec5   : > { %v4560_v62 = vpop.trf.xlu1 }
0x1ec9   : > { %v4561_v28 = vpop.trf.xlu1 }
0x1eca   : > { %v4576_v7 = vpack.c.bf16 %v4561_v28, %v4560_v62 }
0x1ecc   : > { %6361 = vmatprep.subr.bf16.mxu0 %v4576_v7 }
0x1ee1   : > { %v4802_v54 = vpop.permute.xlu1 %4801 }
0x1f0b   : > { %v6333_v51 = vpop.f32.mrf.mxu1 }
0x1f0c   : > { %v4211_v3 = vpack.c.bf16 %v6333_v51, %v6333_v51 }
0x1f0d   : > { %v4196_v57 = vpop.f32.mrf.mxu1 }
0x1f0f   : > { %v6334_v61 = vpop.f32.mrf.mxu1 }
0x1f11   : > { %v4199_v21 = vpop.f32.mrf.mxu1 }
0x1f12   : > { %v4210_v2 = vpack.c.bf16 %v4199_v21, %v4196_v57 }
0x1f14   : > { %6357 = vmatprep.mubr.msk.bf16.mxu1 %vm2501_vm2, %v4210_v2 }
0x1f15   : > { %6358 = vmatmul.mubr.msk.bf16.vlgmr.msra.gmra.mxu1 %vm2501_vm2, %v4211_v3 }
0x1f17   : > { %v6347_v12 = vpop.f32.mrf.mxu1 }
0x1f18   : > { %v4414_v43 = vpack.c.bf16 %v6347_v12, %v6347_v12 }
0x1f19   : > { %v4399_v63 = vpop.f32.mrf.mxu1 }
0x1f1b   : > { %v6348_v32 = vpop.f32.mrf.mxu1 }
0x1f1d   : > { %v4402_v19 = vpop.f32.mrf.mxu1 }
0x1f1e   : > { %v4413_v24 = vpack.c.bf16 %v4402_v19, %v4399_v63 }
0x1f20   : > { %6351 = vmatprep.mubr.msk.bf16.mxu0 %vm2501_vm2, %v4413_v24  ;;  %v6639_v24 = vld [vmem:[%s8137_s14 + $0x30] sm:$0xff]  }
0x1f21   : > { %6352 = vmatmul.mubr.msk.bf16.vlgmr.msra.gmra.mxu0 %vm2501_vm2, %v4414_v43 }
0x1f22   : > { %6363 = vmatprep.mubr.msk.bf16.mxu0 %vm2501_vm2, %v4578_v0  ;;  %6362 = vmatpush3.bf16.msra.mxu0 %v4576_v7 }
0x1f23   : > { %6375 = vmatprep.subr.bf16.mxu0 %v6639_v24 }
0x1f29   : > { %6364 = vmatmul.mubr.msk.bf16.vlgmr.msra.gmra.mxu0 %vm2501_vm2, %v4580_v29 }
0x1f2a   : > { %6376 = vmatpush3.bf16.msra.mxu0 %v6639_v24 }
0x1fd5   : > { %v6359_v8 = vpop.f32.mrf.mxu1 }
0x1fd7   : > { %v4521_v11 = vpop.f32.mrf.mxu1 }
0x1fd9   : > { %v6360_v30 = vpop.f32.mrf.mxu1 }
0x1fdb   : > { %v7974_v43 = vpop.f32.mrf.mxu1 }
0x1fe1   : > { %v6353_v56 = vpop.f32.mrf.mxu0 }
0x1fe2   : > { %v7943_v14 = vadd.f32 %v6359_v8, %v6353_v56 }
0x1fe3   : > { %v4461_v13 = vpop.f32.mrf.mxu0 }
0x1fe4   : > { %v7945_v17 = vadd.f32 %v4521_v11, %v4461_v13 }
0x1fe5   : > { %v6354_v22 = vpop.f32.mrf.mxu0 }
0x1fe7   : > { %v7947_v49 = vpop.f32.mrf.mxu0 }
0x1fe9   : > { %v6365_v35 = vpop.f32.mrf.mxu0 }
0x1fea   : > { %v4641_v16 = vsel %vm2563_vm6, %v6365_v35, -inf }
0x1feb   : > { %v4621_v25 = vpop.f32.mrf.mxu0 }
0x1fec   : > { %v4635_v31 = vsel %vm2556_vm5, %v4621_v25, -inf }
0x1fed   : > { %4636 = vmax.xlane.f32.xlu0 %v4635_v31  ;;  %v6366_v9 = vpop.f32.mrf.mxu0 }
0x1fef   : > { %v4624_v53 = vpop.f32.mrf.mxu0 }
0x1ff0   : > { %v4638_v33 = vsel %vm2556_vm5, %v4624_v53, -inf }
0x1ff1   : > { %4639 = vmax.xlane.f32.xlu0 %v4638_v33 }
0x1ff5   : > { %4642 = vmax.xlane.f32.xlu0 %v4641_v16 }
0x200b   : > { %6568 = vrot.lane.b32.xlu0 %v6567_v34, %s8206_s4  ;;  %s6446_s4 = smul.u32 24, %s8209_s5 }
0x200f   : > { %4672 = vrot.lane.b32.xlu0 %v7875_v4, %s8205_s3 }
0x2076   : > { %v4637_v36 = vpop.xlane.xlu0 %4636 }
0x2077   : > { %v4644_v38 = vsub.f32 %v4621_v25, %v4637_v36 }
0x2079   : > { %v4647_v45 = vmul.f32 1.442695, %v4644_v38 }
0x207a   : > { %v4640_v37 = vpop.xlane.xlu0 %4639 }
0x207b   : > { %v4645_v27 = vsub.f32 %v4624_v53, %v4640_v37 }
0x207d   : > { %v4649_v39 = vmul.f32 1.442695, %v4645_v27 }
0x207e   : > { %v4643_v40 = vpop.xlane.xlu0 %4642 }
0x207f   : > { %6797 = vpow2.f32 %v4649_v39  ;;  %v4646_v41 = vsub.f32 %v6365_v35, %v4643_v40 }
0x2081   : > { %v4651_v46 = vmul.f32 1.442695, %v4646_v41 }
0x2082   : > { %v6569_v18 = vpop.permute.xlu0 %6568 }
0x2083   : > { %6799 = vpow2.f32 %v4651_v46  ;;  %v6570_v48 = vunpack.i.l.bf16 %v6569_v18  ;;  %v6571_v59 = vunpack.i.h.bf16 %v6569_v18 }
0x2084   : > { %6801 = vpow2.f32 %v4647_v45 }
0x2086   : > { %v4673_v47 = vpop.permute.xlu0 %4672 }
0x2087   : > { %v4682_v55 = vand.u32 %v4673_v47, %v7482_v15 }
0x2089   : > { %6367 = vmatprep.subr.bf16.mxu1 %v4682_v55 }
0x208a   : > { %6368 = vmatpush3.bf16.msra.mxu1 %v4682_v55 }
0x208c   : > { %v6798_v58 = vpop.eup %6797 }
0x208d   : > { %v4656_v20 = vsel %vm2556_vm5, %v6798_v58, 0.0 }
0x208e   : > { %4657 = vadd.xlane.f32.xlu1 %v4656_v20 }
0x2090   : > { %v6800_v23 = vpop.eup %6799 }
0x2091   : > { %v4659_v52 = vsel %vm2563_vm6, %v6800_v23, 0.0  ;;  %v6802_v6 = vpop.eup %6801 }
0x2092   : > { %4660 = vadd.xlane.f32.xlu0 %v4659_v52  ;;  %v4653_v1 = vsel %vm2556_vm5, %v6802_v6, 0.0 }
0x2096   : > { %4654 = vadd.xlane.f32.xlu0 %v4653_v1 }
0x209f   : > { %4670 = vrot.lane.b32.xlu1 %v7883_v26, %s8205_s3 }
0x20ac   : > { %4839 = vrot.lane.b32.xlu0 %v7867_v50, %s8207_s30 }
0x20b0   : > { %4841 = vrot.lane.b32.xlu0 %v7890_v5, %s8207_s30 }
0x20ce   : > { %4806 = vxpose.xlu0.b32.start [1/3] (short) (narrow) %v6570_v48, 16 }
0x20d2   : > { %4807 = vxpose.xlu0.b32.cont [2/3] (short) (narrow) %v6571_v59, 16 }
0x20d6   : > { %4808 = vxpose.xlu0.b32.end [3/3] (short) (narrow) %v4802_v54, 16 }
0x2117   : > { %v4658_v42 = vpop.xlane.xlu1 %4657 }
0x211b   : > { %v4661_v0 = vpop.xlane.xlu0 %4660  ;;  %v4671_v62 = vpop.permute.xlu1 %4670 }
0x211c   : > { %6369 = vmatprep.subr.bf16.mxu1 %v4671_v62  ;;  %6803 = vrcp.f32 %v4661_v0 }
0x211d   : > { %6370 = vmatpush3.bf16.msra.mxu1 %v4671_v62  ;;  %6805 = vrcp.f32 %v4658_v42 }
0x211f   : > { %v4655_v28 = vpop.xlane.xlu0 %4654 }
0x2120   : > { %6807 = vrcp.f32 %v4655_v28 }
0x2123   : > { %v4840_v3 = vpop.permute.xlu0 %4839 }
0x2127   : > { %v4842_v12 = vpop.permute.xlu0 %4841 }
0x2129   : > { %v6804_v7 = vpop.eup %6803 }
0x212a   : > { %v6806_v50 = vpop.eup %6805  ;;  %v4667_v57 = vmul.f32 %v6804_v7, %v6800_v23 }
0x212b   : > { %v4666_v61 = vmul.f32 %v6806_v50, %v6798_v58 }
0x212c   : > { %v4669_v2 = vpack.c.bf16 %v4667_v57, %v4667_v57 }
0x212d   : > { %v6808_v51 = vpop.eup %6807 }
0x212e   : > { %v4665_v5 = vmul.f32 %v6808_v51, %v6802_v6 }
0x2130   : > { %v4668_v21 = vpack.c.bf16 %v4666_v61, %v4665_v5 }
0x2132   : > { %6371 = vmatprep.mubr.msk.bf16.mxu1 %vm2556_vm5, %v4668_v21 }
0x2133   : > { %6372 = vmatmul.mubr.msk.bf16.vlgmr.msra.gmra.mxu1 %vm2556_vm5, %v4669_v2 }
0x2134   : > { %6383 = vmatprep.mubr.msk.bf16.mxu1 %vm2501_vm2, %v4840_v3 }
0x214a   : > { %v4822_v63 = vpop.trf.xlu0 }
0x214e   : > { %v4823_v32 = vpop.trf.xlu0 }
0x214f   : > { %v4838_v19 = vpack.c.bf16 %v4823_v32, %v4822_v63 }
0x2151   : > { %6381 = vmatprep.subr.bf16.mxu1 %v4838_v19 }
0x2152   : > { %6382 = vmatpush3.bf16.msra.mxu1 %v4838_v19  ;;  %v4525_v19 = vadd.f32 %v7974_v43, %v7947_v49 }
0x2155   : > { %6384 = vmatmul.mubr.msk.bf16.vlgmr.msra.gmra.mxu1 %vm2501_vm2, %v4842_v12 }
0x21f3   : > { %v6373_v29 = vpop.f32.mrf.mxu1 }
0x21f4   : > { %v4733_v13 = vpack.c.bf16 %v6373_v29, %v6373_v29  ;;  %v5842_v29 = vld [vmem:[%s8138_s15 + $0x1] ss:$0 sm:$0xff] }
0x21f5   : > { %v4718_v8 = vpop.f32.mrf.mxu1 }
0x21f7   : > { %v6374_v11 = vpop.f32.mrf.mxu1 }
0x21f9   : > { %v4721_v30 = vpop.f32.mrf.mxu1 }
0x21fa   : > { %v4732_v56 = vpack.c.bf16 %v4721_v30, %v4718_v8 }
0x21fc   : > { %6377 = vmatprep.mubr.msk.bf16.mxu0 %vm2501_vm2, %v4732_v56 }
0x21fd   : > { %6378 = vmatmul.mubr.msk.bf16.vlgmr.msra.gmra.mxu0 %vm2501_vm2, %v4733_v13 }
0x2215   : > { %v6385_v22 = vpop.f32.mrf.mxu1 }
0x2216   : > { %v4903_v53 = vsel %vm2563_vm6, %v6385_v22, -inf }
0x2217   : > { %v4883_v35 = vpop.f32.mrf.mxu1 }
0x2218   : > { %v4897_v25 = vsel %vm2556_vm5, %v4883_v35, -inf }
0x2219   : > { %4898 = vmax.xlane.f32.xlu1 %v4897_v25  ;;  %v6386_v31 = vpop.f32.mrf.mxu1 }
0x221b   : > { %v4886_v9 = vpop.f32.mrf.mxu1 }
0x221c   : > { %v4900_v33 = vsel %vm2556_vm5, %v4886_v9, -inf }
0x221d   : > { %4904 = vmax.xlane.f32.xlu1 %v4903_v53  ;;  %4901 = vmax.xlane.f32.xlu0 %v4900_v33 }
0x222e   : > { %4934 = vrot.lane.b32.xlu1 %v7875_v4, %s8207_s30 }
0x22a2   : > { %v4899_v16 = vpop.xlane.xlu1 %4898 }
0x22a3   : > { %v4906_v34 = vsub.f32 %v4883_v35, %v4899_v16 }
0x22a5   : > { %v4909_v38 = vmul.f32 1.442695, %v4906_v34 }
0x22a6   : > { %v4905_v36 = vpop.xlane.xlu1 %4904  ;;  %v4902_v37 = vpop.xlane.xlu0 %4901 }
0x22a7   : > { %v4908_v27 = vsub.f32 %v6385_v22, %v4905_v36  ;;  %v4907_v40 = vsub.f32 %v4886_v9, %v4902_v37 }
0x22a9   : > { %v4913_v39 = vmul.f32 1.442695, %v4908_v27  ;;  %v4911_v46 = vmul.f32 1.442695, %v4907_v40 }
0x22aa   : > { %v4935_v41 = vpop.permute.xlu1 %4934 }
0x22ab   : > { %6809 = vpow2.f32 %v4913_v39  ;;  %v4944_v45 = vand.u32 %v4935_v41, %v7482_v15 }
0x22ac   : > { %6811 = vpow2.f32 %v4909_v38 }
0x22ad   : > { %6387 = vmatprep.subr.bf16.mxu0 %v4944_v45  ;;  %6813 = vpow2.f32 %v4911_v46 }
0x22ae   : > { %6388 = vmatpush3.bf16.msra.mxu0 %v4944_v45 }
0x22b8   : > { %v6810_v18 = vpop.eup %6809 }
0x22b9   : > { %v4921_v4 = vsel %vm2563_vm6, %v6810_v18, 0.0  ;;  %v6812_v47 = vpop.eup %6811 }
0x22ba   : > { %4922 = vadd.xlane.f32.xlu1 %v4921_v4  ;;  %v4915_v58 = vsel %vm2556_vm5, %v6812_v47, 0.0  ;;  %v6814_v20 = vpop.eup %6813  ;;  %v6641_v4 = vld [vmem:[%s8141_s18 + $0x38] sm:$0xff]  }
0x22bb   : > { %v4918_v1 = vsel %vm2556_vm5, %v6814_v20, 0.0 }
0x22bd   : > { %v6379_v55 = vpop.f32.mrf.mxu0 }
0x22be   : > { %v4796_v23 = vadd.f32 %v6379_v55, %v7943_v14  ;;  %4916 = vadd.xlane.f32.xlu1 %v4915_v58  ;;  %v6643_v55 = vld [vmem:[%s8141_s18 + $0x28] sm:$0xff]   ;;  %v6644_v58 = vld [vmem:[%s8141_s18 + $0x20] sm:$0xff]  }
0x22bf   : > { %v4780_v52 = vpop.f32.mrf.mxu0 }
0x22c0   : > { %v4794_v15 = vadd.f32 %v4780_v52, %v7945_v17 }
0x22c1   : > { %v6380_v6 = vpop.f32.mrf.mxu0 }
0x22c2   : > { %4919 = vadd.xlane.f32.xlu1 %v4918_v1 }
0x22c3   : > { %v4783_v57 = vpop.f32.mrf.mxu0 }
0x22c4   : > { %v4795_v11 = vadd.f32 %v4783_v57, %v4525_v19  ;;  %v6648_v19 = vld [vmem:[%s8143_s20 + $0x60] sm:$0xff]  }
0x22d3   : > { %4932 = vrot.lane.b32.xlu1 %v7883_v26, %s8207_s30  ;;  %v6640_v26 = vld [vmem:[%s8137_s14 + $0x38] sm:$0xff]   ;;  %s845_s30 = scalar_lea.vmem %s8151_s28, %s6446_s4 }
0x22d4   : > { %6395 = vmatprep.subr.bf16.mxu1 %v6640_v26 }
0x22d5   : > { %6396 = vmatpush3.bf16.msra.mxu1 %v6640_v26 }
0x2343   : > { %v4923_v48 = vpop.xlane.xlu1 %4922 }
0x2344   : > { %6815 = vrcp.f32 %v4923_v48 }
0x2347   : > { %v4917_v59 = vpop.xlane.xlu1 %4916 }
0x2348   : > { %6817 = vrcp.f32 %v4917_v59 }
0x234b   : > { %v4920_v54 = vpop.xlane.xlu1 %4919 }
0x234c   : > { %6819 = vrcp.f32 %v4920_v54 }
0x234f   : > { %v4933_v42 = vpop.permute.xlu1 %4932 }
0x2350   : > { %6389 = vmatprep.subr.bf16.mxu0 %v4933_v42 }
0x2351   : > { %6390 = vmatpush3.bf16.msra.mxu0 %v4933_v42  ;;  %v6816_v14 = vpop.eup %6815 }
0x2352   : > { %v4929_v17 = vmul.f32 %v6816_v14, %v6810_v18  ;;  %6401 = vmatprep.subr.bf16.mxu0 %v6641_v4 }
0x2354   : > { %v4931_v51 = vpack.c.bf16 %v4929_v17, %v4929_v17 }
0x2355   : > { %v6818_v0 = vpop.eup %6817 }
0x2356   : > { %v4927_v28 = vmul.f32 %v6818_v0, %v6812_v47  ;;  %v6642_v47 = vld [vmem:[%s8141_s18 + $0x30] sm:$0xff]   ;;  %v5845_v0 = vld [vmem:[%s8139_s16 + $0x1] ss:$0 sm:$0xff] }
0x2359   : > { %v6820_v62 = vpop.eup %6819 }
0x235a   : > { %v4928_v7 = vmul.f32 %v6820_v62, %v6814_v20 }
0x235c   : > { %v4930_v50 = vpack.c.bf16 %v4928_v7, %v4927_v28  ;;  %v5846_v7 = vld [vmem:[%s8140_s17 + $0x1] ss:$0 sm:$0xff] }
0x235e   : > { %6391 = vmatprep.mubr.msk.bf16.mxu0 %vm2556_vm5, %v4930_v50 }
0x235f   : > { %6392 = vmatmul.mubr.msk.bf16.vlgmr.msra.gmra.mxu0 %vm2556_vm5, %v4931_v51 }
0x2360   : > { %6402 = vmatpush3.bf16.msra.mxu0 %v6641_v4 }
0x2361   : > { %6403 = vmatprep.subr.bf16.mxu0 %v6642_v47 }
0x2364   : > { %6404 = vmatpush3.bf16.msra.mxu0 %v6642_v47 }
0x2365   : > { %6405 = vmatprep.subr.bf16.mxu0 %v6643_v55 }
0x2368   : > { %6406 = vmatpush3.bf16.msra.mxu0 %v6643_v55 }
0x2369   : > { %6407 = vmatprep.subr.bf16.mxu0 %v6644_v58 }
0x236c   : > { %6408 = vmatpush3.bf16.msra.mxu0 %v6644_v58 }
0x241f   : > { %v6393_v5 = vpop.f32.mrf.mxu0 }
0x2420   : > { %v4995_v12 = vpack.c.bf16 %v6393_v5, %v6393_v5 }
0x2421   : > { %v4980_v61 = vpop.f32.mrf.mxu0 }
0x2423   : > { %v6394_v21 = vpop.f32.mrf.mxu0 }
0x2425   : > { %v4983_v2 = vpop.f32.mrf.mxu0 }
0x2426   : > { %v4994_v3 = vpack.c.bf16 %v4983_v2, %v4980_v61 }
0x2428   : > { %6397 = vmatprep.mubr.msk.bf16.mxu1 %vm2501_vm2, %v4994_v3 }
0x2429   : > { %6398 = vmatmul.mubr.msk.bf16.vlgmr.msra.gmra.mxu1 %vm2501_vm2, %v4995_v12  ;;  %v6645_v12 = vld [vmem:[%s8143_s20 + $0x78] sm:$0xff]  }
0x242a   : > { %6413 = vmatprep.subr.bf16.mxu1 %v6645_v12 }
0x242b   : > { %6414 = vmatpush3.bf16.msra.mxu1 %v6645_v12 }
0x24e9   : > { %v6399_v63 = vpop.f32.mrf.mxu1 }
0x24ea   : > { %v5058_v30 = vadd.f32 %v6399_v63, %v4796_v23  ;;  %v6646_v63 = vld [vmem:[%s8143_s20 + $0x70] sm:$0xff]  }
0x24eb   : > { %v5042_v32 = vpop.f32.mrf.mxu1  ;;  %6415 = vmatprep.subr.bf16.mxu1 %v6646_v63 }
0x24ec   : > { %v5056_v24 = vadd.f32 %v5042_v32, %v4794_v15  ;;  %v5069_v25 = vadd.f32 %v5842_v29, %v5058_v30  ;;  %v6647_v32 = vld [vmem:[%s8143_s20 + $0x68] sm:$0xff]   ;;  %6416 = vmatpush3.bf16.msra.mxu1 %v6646_v63  ;;  %v5856_v30 = vld [vmem:[%s8142_s19 + $0x1] ss:$0 sm:$0xff] }
0x24ed   : > { %v6400_v8 = vpop.f32.mrf.mxu1  ;;  %6417 = vmatprep.subr.bf16.mxu1 %v6647_v32 }
0x24ee   : > { %v5067_v56 = vadd.f32 %v5842_v29, %v5056_v24  ;;  %v5072_v53 = vadd.f32 %v5069_v25, %v7843_v60  ;;  %v6649_v24 = vld [vmem:[%s8143_s20 + $0x58] sm:$0xff]   ;;  %v6651_v8 = vld [vmem:[%s8143_s20 + $0x48] sm:$0xff]  }
0x24ef   : > { %v5045_v13 = vpop.f32.mrf.mxu1 }
0x24f0   : > { %v5057_v22 = vadd.f32 %v5045_v13, %v4795_v11  ;;  %v5070_v35 = vadd.f32 %v5067_v56, %v7835_v44  ;;  %v5083_v33 = vsel %vm3524_vm7, %v5072_v53, 0.0  ;;  %6418 = vmatpush3.bf16.msra.mxu1 %v6647_v32  ;;  %v6652_v11 = vld [vmem:[%s8143_s20 + $0x40] sm:$0xff]  }
0x24f1   : > { %6419 = vmatprep.subr.bf16.mxu1 %v6648_v19 }
0x24f2   : > { %v5068_v31 = vadd.f32 %v5842_v29, %v5057_v22  ;;  %v5077_v9 = vsel %vm1381_vm8, %v5070_v35, 0.0  ;;  %v6650_v29 = vld [vmem:[%s8143_s20 + $0x50] sm:$0xff]  }
0x24f3   : > { %5078 = vadd.xlane.f32.xlu1 %v5077_v9 }
0x24f4   : > { %v5071_v49 = vadd.f32 %v5068_v31, %v7837_v10  ;;  %6420 = vmatpush3.bf16.msra.mxu1 %v6648_v19 }
0x24f5   : > { %6421 = vmatprep.subr.bf16.mxu1 %v6649_v24 }
0x24f6   : > { %v5080_v43 = vsel %vm1381_vm8, %v5071_v49, 0.0 }
0x24f7   : > { %5081 = vadd.xlane.f32.xlu0 %v5080_v43 }
0x24f8   : > { %6422 = vmatpush3.bf16.msra.mxu1 %v6649_v24 }
0x24f9   : > { %6423 = vmatprep.subr.bf16.mxu1 %v6650_v29 }
0x24fb   : > { %5084 = vadd.xlane.f32.xlu0 %v5083_v33 }
0x24fc   : > { %6424 = vmatpush3.bf16.msra.mxu1 %v6650_v29 }
0x24fd   : > { %6425 = vmatprep.subr.bf16.mxu1 %v6651_v8 }
0x2500   : > { %6426 = vmatpush3.bf16.msra.mxu1 %v6651_v8 }
0x2501   : > { %6427 = vmatprep.subr.bf16.mxu1 %v6652_v11 }
0x2504   : > { %6428 = vmatpush3.bf16.msra.mxu1 %v6652_v11 }
0x257c   : > { %v5079_v16 = vpop.xlane.xlu1 %5078 }
0x257d   : > { %v5086_v34 = vmul.f32 0.015625, %v5079_v16 }
0x257f   : > { %v5089_v36 = vsub.f32 %v5070_v35, %v5086_v34 }
0x2580   : > { %v5082_v37 = vpop.xlane.xlu0 %5081 }
0x2581   : > { %v5087_v44 = vmul.f32 0.015625, %v5082_v37  ;;  %v5092_v27 = vmul.f32 %v5089_v36, %v5089_v36 }
0x2583   : > { %v5090_v38 = vsub.f32 %v5071_v49, %v5087_v44  ;;  %v5095_v39 = vsel %vm1381_vm8, %v5092_v27, 0.0 }
0x2584   : > { %5096 = vadd.xlane.f32.xlu0 %v5095_v39  ;;  %v5085_v40 = vpop.xlane.xlu0 %5084 }
0x2585   : > { %v5088_v10 = vmul.f32 0.015625, %v5085_v40  ;;  %v5093_v41 = vmul.f32 %v5090_v38, %v5090_v38 }
0x2587   : > { %v5091_v45 = vsub.f32 %v5072_v53, %v5088_v10  ;;  %v5098_v60 = vsel %vm1381_vm8, %v5093_v41, 0.0 }
0x2588   : > { %5099 = vadd.xlane.f32.xlu0 %v5098_v60 }
0x2589   : > { %v5094_v46 = vmul.f32 %v5091_v45, %v5091_v45 }
0x258b   : > { %v5101_v18 = vsel %vm3524_vm7, %v5094_v46, 0.0 }
0x258c   : > { %5102 = vadd.xlane.f32.xlu0 %v5101_v18 }
0x260d   : > { %v5097_v20 = vpop.xlane.xlu0 %5096 }
0x260e   : > { %v5104_v23 = vmul.f32 0.015625, %v5097_v20 }
0x2610   : > { %v5107_v52 = vadd.f32 1e-05, %v5104_v23 }
0x2611   : > { %v5100_v15 = vpop.xlane.xlu0 %5099 }
0x2612   : > { %6821 = vrsqrt.f32 %v5107_v52  ;;  %v5105_v6 = vmul.f32 0.015625, %v5100_v15 }
0x2614   : > { %v5108_v1 = vadd.f32 1e-05, %v5105_v6 }
0x2615   : > { %v5103_v48 = vpop.xlane.xlu0 %5102 }
0x2616   : > { %6823 = vrsqrt.f32 %v5108_v1  ;;  %v5106_v59 = vmul.f32 0.015625, %v5103_v48 }
0x2618   : > { %v5109_v54 = vadd.f32 1e-05, %v5106_v59  ;;  %v5880_v59 = vld [vmem:[%s8144_s21 + $0x1] ss:$0 sm:$0xff] }
0x261a   : > { %6825 = vrsqrt.f32 %v5109_v54 }
0x261f   : > { %v6822_v42 = vpop.eup %6821 }
0x2620   : > { %v5113_v14 = vmul.f32 %v6822_v42, %v5089_v36 }
0x2622   : > { %v5122_v28 = vmul.f32 %v5845_v0, %v5113_v14 }
0x2623   : > { %v6824_v62 = vpop.eup %6823 }
0x2624   : > { %v5114_v17 = vmul.f32 %v6824_v62, %v5090_v38  ;;  %v8030_v57 = vadd.f32 %v5846_v7, %v5122_v28 }
0x2626   : > { %v5123_v50 = vmul.f32 %v5845_v0, %v5114_v17 }
0x2627   : > { %v6826_v51 = vpop.eup %6825 }
0x2628   : > { %v5115_v26 = vmul.f32 %v6826_v51, %v5091_v45  ;;  %v8032_v5 = vadd.f32 %v5846_v7, %v5123_v50 }
0x262a   : > { %v5143_v61 = vpack.c.bf16 %v8032_v5, %v8030_v57  ;;  %v5124_v21 = vmul.f32 %v5845_v0, %v5115_v26 }
0x262c   : > { %6409 = vmatprep.mubr.msk.bf16.mxu0 %vm1381_vm8, %v5143_v61  ;;  %v8037_v2 = vadd.f32 %v5846_v7, %v5124_v21 }
0x262e   : > { %v5144_v3 = vpack.c.bf16 %v8037_v2, %v8037_v2 }
0x2630   : > { %6410 = vmatmul.mubr.msk.bf16.vlgmr.msra.gmra.mxu0 %vm1381_vm8, %v5144_v3 }
0x26f0   : > { %v6411_v56 = vpop.f32.mrf.mxu0 }
0x26f1   : > { %v5226_v13 = vadd.f32 %v6411_v56, %v5856_v30 }
0x26f2   : > { %v5217_v22 = vpop.f32.mrf.mxu0 }
0x26f3   : > { %v5236_v35 = vmul.f32 0.044715, %v5226_v13  ;;  %v5218_v25 = vadd.f32 %v5856_v30, %v5217_v22  ;;  %v5233_v47 = vmul.f32 0.5, %v5226_v13 }
0x26f4   : > { %v6412_v31 = vpop.f32.mrf.mxu0 }
0x26f5   : > { %v5239_v9 = vmul.f32 %v5236_v35, %v5226_v13  ;;  %v5234_v49 = vmul.f32 0.044715, %v5218_v25  ;;  %v5231_v55 = vmul.f32 0.5, %v5218_v25 }
0x26f6   : > { %v5220_v43 = vpop.f32.mrf.mxu0 }
0x26f7   : > { %v5242_v53 = vmul.f32 %v5239_v9, %v5226_v13  ;;  %v5237_v33 = vmul.f32 %v5234_v49, %v5218_v25  ;;  %v5221_v16 = vadd.f32 %v5856_v30, %v5220_v43 }
0x26f9   : > { %v5245_v34 = vadd.f32 %v5242_v53, %v5226_v13  ;;  %v5240_v36 = vmul.f32 %v5237_v33, %v5218_v25  ;;  %v5235_v37 = vmul.f32 0.044715, %v5221_v16  ;;  %v5232_v58 = vmul.f32 0.5, %v5221_v16 }
0x26fb   : > { %v5248_v44 = vmul.f32 0.7978846, %v5245_v34  ;;  %v5238_v27 = vmul.f32 %v5235_v37, %v5221_v16  ;;  %v5243_v38 = vadd.f32 %v5240_v36, %v5218_v25  ;;  %v5892_v36 = vld [vmem:[%s8146_s23 + $0x1] ss:$0 sm:$0xff] }
0x26fd   : > { %v5241_v39 = vmul.f32 %v5238_v27, %v5221_v16  ;;  %v5246_v40 = vmul.f32 0.7978846, %v5243_v38  ;;  %6827 = vtanh.f32 %v5248_v44 }
0x26ff   : > { %v5244_v10 = vadd.f32 %v5241_v39, %v5221_v16  ;;  %6829 = vtanh.f32 %v5246_v40  ;;  %v5891_v16 = vld [vmem:[%s8145_s22 + $0x1] ss:$0 sm:$0xff] }
0x2701   : > { %v5247_v41 = vmul.f32 0.7978846, %v5244_v10 }
0x2703   : > { %6831 = vtanh.f32 %v5247_v41 }
0x270a   : > { %v6828_v45 = vpop.eup %6827 }
0x270b   : > { %v5254_v46 = vadd.f32 1.0, %v6828_v45 }
0x270c   : > { %v6830_v60 = vpop.eup %6829 }
0x270d   : > { %v5252_v18 = vadd.f32 1.0, %v6830_v60  ;;  %v5257_v23 = vmul.f32 %v5254_v46, %v5233_v47 }
0x270f   : > { %v5255_v52 = vmul.f32 %v5252_v18, %v5231_v55  ;;  %v5276_v1 = vpack.c.bf16 %v5257_v23, %v5257_v23 }
0x2710   : > { %v6832_v4 = vpop.eup %6831 }
0x2711   : > { %v5253_v20 = vadd.f32 1.0, %v6832_v4 }
0x2713   : > { %v5256_v15 = vmul.f32 %v5253_v20, %v5232_v58 }
0x2715   : > { %v5275_v6 = vpack.c.bf16 %v5256_v15, %v5255_v52 }
0x2717   : > { %6429 = vmatprep.mubr.bf16.mxu1 %v5275_v6 }
0x2718   : > { %6430 = vmatmul.mubr.bf16.vlgmr.msra.gmra.mxu1 %v5276_v1 }
0x27d8   : > { %v6431_v48 = vpop.f32.mrf.mxu1 }
0x27d9   : > { %v5376_v17 = vadd.f32 %v6431_v48, %v5880_v59 }
0x27da   : > { %v5367_v54 = vpop.f32.mrf.mxu1 }
0x27db   : > { %v5368_v42 = vadd.f32 %v5880_v59, %v5367_v54  ;;  %v5383_v51 = vadd.f32 %v5376_v17, %v8037_v2  ;;  %v6654_v17 = vld [vmem:[%s8149_s26 + $0x10] sm:$0xff]  }
0x27dc   : > { %v6432_v14 = vpop.f32.mrf.mxu1 }
0x27dd   : > { %v5381_v0 = vadd.f32 %v5368_v42, %v8030_v57  ;;  %v5394_v61 = vsel %vm3524_vm7, %v5383_v51, 0.0 }
0x27de   : > { %v5370_v62 = vpop.f32.mrf.mxu1 }
0x27df   : > { %v5371_v28 = vadd.f32 %v5880_v59, %v5370_v62  ;;  %v5388_v7 = vsel %vm1381_vm8, %v5381_v0, 0.0  ;;  %v6653_v62 = vld [vmem:[%s8149_s26 + $0x18] sm:$0xff]  }
0x27e0   : > { %5389 = vadd.xlane.f32.xlu0 %v5388_v7  ;;  %6433 = vmatprep.subr.bf16.mxu0 %v6653_v62  ;;  %v6656_v7 = vld [vmem:[%s8149_s26] sm:$0xff]  }
0x27e1   : > { %v5382_v50 = vadd.f32 %v5371_v28, %v8032_v5  ;;  %6434 = vmatpush3.bf16.msra.mxu0 %v6653_v62  ;;  %v6655_v28 = vld [vmem:[%s8149_s26 + $0x8] sm:$0xff]  }
0x27e2   : > { %6435 = vmatprep.subr.bf16.mxu0 %v6654_v17 }
0x27e3   : > { %v5391_v26 = vsel %vm1381_vm8, %v5382_v50, 0.0 }
0x27e4   : > { %5392 = vadd.xlane.f32.xlu0 %v5391_v26 }
0x27e5   : > { %6436 = vmatpush3.bf16.msra.mxu0 %v6654_v17 }
0x27e6   : > { %6437 = vmatprep.subr.bf16.mxu0 %v6655_v28 }
0x27e8   : > { %5395 = vadd.xlane.f32.xlu0 %v5394_v61 }
0x27e9   : > { %6438 = vmatpush3.bf16.msra.mxu0 %v6655_v28 }
0x27ea   : > { %6439 = vmatprep.subr.bf16.mxu0 %v6656_v7 }
0x27ed   : > { %6440 = vmatpush3.bf16.msra.mxu0 %v6656_v7 }
0x2869   : > { %v5390_v21 = vpop.xlane.xlu0 %5389 }
0x286a   : > { %v5397_v3 = vmul.f32 0.015625, %v5390_v21 }
0x286c   : > { %v5400_v12 = vsub.f32 %v5381_v0, %v5397_v3 }
0x286d   : > { %v5393_v57 = vpop.xlane.xlu0 %5392 }
0x286e   : > { %v5398_v63 = vmul.f32 0.015625, %v5393_v57  ;;  %v5403_v32 = vmul.f32 %v5400_v12, %v5400_v12 }
0x2870   : > { %v5401_v19 = vsub.f32 %v5382_v50, %v5398_v63  ;;  %v5406_v24 = vsel %vm1381_vm8, %v5403_v32, 0.0 }
0x2871   : > { %5407 = vadd.xlane.f32.xlu1 %v5406_v24  ;;  %v5396_v29 = vpop.xlane.xlu0 %5395  ;;  %v5893_v24 = vld [vmem:[%s8147_s24] ss:$0 sm:$0xff] }
0x2872   : > { %v5399_v5 = vmul.f32 0.015625, %v5396_v29  ;;  %v5404_v8 = vmul.f32 %v5401_v19, %v5401_v19 }
0x2874   : > { %v5402_v2 = vsub.f32 %v5383_v51, %v5399_v5  ;;  %v5409_v11 = vsel %vm1381_vm8, %v5404_v8, 0.0 }
0x2875   : > { %5410 = vadd.xlane.f32.xlu0 %v5409_v11 }
0x2876   : > { %v5405_v30 = vmul.f32 %v5402_v2, %v5402_v2 }
0x2878   : > { %v5412_v56 = vsel %vm3524_vm7, %v5405_v30, 0.0 }
0x2879   : > { %5413 = vadd.xlane.f32.xlu1 %v5412_v56 }
0x28fa   : > { %v5408_v13 = vpop.xlane.xlu1 %5407 }
0x28fb   : > { %v5415_v22 = vmul.f32 0.015625, %v5408_v13 }
0x28fd   : > { %v5418_v35 = vadd.f32 1e-05, %v5415_v22 }
0x28fe   : > { %v5411_v25 = vpop.xlane.xlu0 %5410 }
0x28ff   : > { %6833 = vrsqrt.f32 %v5418_v35  ;;  %v5416_v31 = vmul.f32 0.015625, %v5411_v25 }
0x2901   : > { %v5419_v9 = vadd.f32 1e-05, %v5416_v31 }
0x2902   : > { %v5414_v49 = vpop.xlane.xlu1 %5413 }
0x2903   : > { %6835 = vrsqrt.f32 %v5419_v9  ;;  %v5417_v43 = vmul.f32 0.015625, %v5414_v49  ;;  %v5895_v49 = vld [vmem:[%s8150_s27] ss:$0 sm:$0xff] }
0x2905   : > { %v5420_v53 = vadd.f32 1e-05, %v5417_v43 }
0x2907   : > { %6837 = vrsqrt.f32 %v5420_v53 }
0x290c   : > { %v6834_v33 = vpop.eup %6833 }
0x290d   : > { %v5424_v34 = vmul.f32 %v6834_v33, %v5400_v12 }
0x290f   : > { %v5433_v37 = vmul.f32 %v5891_v16, %v5424_v34 }
0x2910   : > { %v6836_v44 = vpop.eup %6835 }
0x2911   : > { %v5442_v27 = vadd.f32 %v5892_v36, %v5433_v37  ;;  %v5425_v38 = vmul.f32 %v6836_v44, %v5401_v19 }
0x2913   : > { %v5447_v39 = vsel %vm1381_vm8, %v5442_v27, 0.0  ;;  %v5434_v40 = vmul.f32 %v5891_v16, %v5425_v38 }
0x2914   : > { %v6838_v10 = vpop.eup %6837  ;;  %5448 = vadd.xlane.f32.xlu0 %v5447_v39 }
0x2915   : > { %v5443_v41 = vadd.f32 %v5892_v36, %v5434_v40  ;;  %v5426_v45 = vmul.f32 %v6838_v10, %v5402_v2  ;;  %v5894_v2 = vld [vmem:[%s8148_s25] ss:$0 sm:$0xff] }
0x2917   : > { %v5450_v60 = vsel %vm1381_vm8, %v5443_v41, 0.0  ;;  %v5435_v46 = vmul.f32 %v5891_v16, %v5426_v45 }
0x2918   : > { %5451 = vadd.xlane.f32.xlu1 %v5450_v60 }
0x2919   : > { %v5444_v18 = vadd.f32 %v5892_v36, %v5435_v46 }
0x291b   : > { %v5453_v4 = vsel %vm3524_vm7, %v5444_v18, 0.0 }
0x291c   : > { %5454 = vadd.xlane.f32.xlu0 %v5453_v4 }
0x299d   : > { %v5449_v47 = vpop.xlane.xlu0 %5448 }
0x299e   : > { %v5456_v55 = vmul.f32 0.015625, %v5449_v47 }
0x29a0   : > { %v5459_v58 = vsub.f32 %v5442_v27, %v5456_v55 }
0x29a1   : > { %v5452_v20 = vpop.xlane.xlu1 %5451 }
0x29a2   : > { %v5457_v23 = vmul.f32 0.015625, %v5452_v20  ;;  %v5462_v52 = vmul.f32 %v5459_v58, %v5459_v58 }
0x29a4   : > { %v5460_v15 = vsub.f32 %v5443_v41, %v5457_v23  ;;  %v5465_v6 = vsel %vm1381_vm8, %v5462_v52, 0.0 }
0x29a5   : > { %5466 = vadd.xlane.f32.xlu1 %v5465_v6  ;;  %v5455_v1 = vpop.xlane.xlu0 %5454 }
0x29a6   : > { %v5458_v48 = vmul.f32 0.015625, %v5455_v1  ;;  %v5463_v59 = vmul.f32 %v5460_v15, %v5460_v15 }
0x29a8   : > { %v5461_v54 = vsub.f32 %v5444_v18, %v5458_v48  ;;  %v5468_v42 = vsel %vm1381_vm8, %v5463_v59, 0.0 }
0x29a9   : > { %5469 = vadd.xlane.f32.xlu0 %v5468_v42 }
0x29aa   : > { %v5464_v14 = vmul.f32 %v5461_v54, %v5461_v54 }
0x29ac   : > { %v5471_v0 = vsel %vm3524_vm7, %v5464_v14, 0.0 }
0x29ad   : > { %5472 = vadd.xlane.f32.xlu1 %v5471_v0 }
0x2a2e   : > { %v5467_v50 = vpop.xlane.xlu1 %5466 }
0x2a2f   : > { %v5474_v51 = vmul.f32 0.015625, %v5467_v50 }
0x2a31   : > { %v5477_v26 = vadd.f32 1e-05, %v5474_v51 }
0x2a32   : > { %v5470_v61 = vpop.xlane.xlu0 %5469 }
0x2a33   : > { %6839 = vrsqrt.f32 %v5477_v26  ;;  %v5475_v21 = vmul.f32 0.015625, %v5470_v61 }
0x2a35   : > { %v5478_v3 = vadd.f32 1e-05, %v5475_v21 }
0x2a36   : > { %v5473_v12 = vpop.xlane.xlu1 %5472 }
0x2a37   : > { %6841 = vrsqrt.f32 %v5478_v3  ;;  %v5476_v57 = vmul.f32 0.015625, %v5473_v12 }
0x2a39   : > { %v5479_v63 = vadd.f32 1e-05, %v5476_v57 }
0x2a3b   : > { %6843 = vrsqrt.f32 %v5479_v63 }
0x2a40   : > { %v6840_v32 = vpop.eup %6839 }
0x2a41   : > { %v5483_v19 = vmul.f32 %v6840_v32, %v5459_v58 }
0x2a43   : > { %v5492_v8 = vmul.f32 %v5893_v24, %v5483_v19 }
0x2a44   : > { %v6842_v29 = vpop.eup %6841 }
0x2a45   : > { %v5484_v5 = vmul.f32 %v6842_v29, %v5460_v15  ;;  %v5501_v13 = vadd.f32 %v5894_v2, %v5492_v8 }
0x2a47   : > { %v5493_v11 = vmul.f32 %v5893_v24, %v5484_v5 }
0x2a48   : > { %v6844_v30 = vpop.eup %6843 }
0x2a49   : > { %v5485_v56 = vmul.f32 %v6844_v30, %v5461_v54  ;;  %v5502_v22 = vadd.f32 %v5894_v2, %v5493_v11 }
0x2a4b   : > { %v5512_v35 = vpack.c.bf16 %v5502_v22, %v5501_v13  ;;  %v5494_v25 = vmul.f32 %v5893_v24, %v5485_v56 }
0x2a4d   : > { %6441 = vmatprep.mubr.msk.bf16.mxu0 %vm1381_vm8, %v5512_v35  ;;  %v5503_v31 = vadd.f32 %v5894_v2, %v5494_v25 }
0x2a4f   : > { %v5513_v9 = vpack.c.bf16 %v5503_v31, %v5503_v31 }
0x2a51   : > { %6442 = vmatmul.mubr.msk.bf16.vlgmr.msra.gmra.mxu0 %vm1381_vm8, %v5513_v9 }
0x2b11   : > { %v6443_v43 = vpop.f32.mrf.mxu0 }
0x2b12   : > { %v5594_v53 = vadd.f32 %v6443_v43, %v5895_v49 }
0x2b13   : > { %v5585_v33 = vpop.f32.mrf.mxu0 }
0x2b14   : > { %5601 = vst [vmem:[%s845_s30 + $0x10] sm:$0x7] %v5594_v53  ;;  %v5586_v16 = vadd.f32 %v5895_v49, %v5585_v33 }
0x2b15   : > { %v6444_v34 = vpop.f32.mrf.mxu0 }
0x2b16   : > { %5599 = vst [vmem:[%s845_s30] sm:$0xff] %v5586_v16 }
0x2b17   : > { %v5588_v36 = vpop.f32.mrf.mxu0 }
0x2b18   : > { %v5589_v37 = vadd.f32 %v5895_v49, %v5588_v36 }
0x2b1a   : > { %5600 = vst [vmem:[%s845_s30 + $0x8] sm:$0xff] %v5589_v37 }
0x2b1b PF: > { %s38_s8 = sadd.s32 1, %s6851_s8  }
0x2b1c   : > { %p35_p4 = scmp.ge.s32.totalorder %s38_s8, 4  }
0x2b1e   :  { %37 = sbr.rel (!%p35_p4) target bundleno = 14 (0xe), region = 174 }

</bundles_post_ra>
